<compile_context>
chip_gen: v7x
topology: tpu7x:2x2x1
jax: 0.10.0
libtpu: 0.0.40
codegen_flags: <defaults>
</compile_context>

<pallas_src>
import functools
import numpy as np
import jax
import jax.numpy as jnp
from jax.experimental import pallas as pl
from jax.experimental.pallas import tpu as pltpu

# ---- module hyperparameters (logMel defaults) ----
SAMPLE_RATE = 32000
WINDOW_SIZE = 1024            # n_fft == win_length
HOP_SIZE = 320
MEL_BINS = 64
FMIN = 1.0
FMAX = 10000.0
REF = 1.0
AMIN = 1e-10
TOP_DB = None                 # top_db=None -> no clipping in power_to_db
N_FREQ = WINDOW_SIZE // 2 + 1                 # 513
F_KEEP = 384                                  # 3*128; mel weights are zero for all bins >= 321
MEL_PAD = 128                                 # lane-dense output width (sliced back to 64)
DB_OFFSET = float(10.0 * np.log10(max(AMIN, REF)))   # ref=1.0 -> 0.0
MAX_TILE_M = 1024                             # frame-rows (B*T) per grid step
VMEM_LIMIT_BYTES = 48 * 1024 * 1024           # <= 64 MiB v7x physical; plenty on v5e/v6e


# ---------------- deterministic parameter construction (what __init__ builds) ----------------
def _hann_window(n):
    # periodic hann (librosa get_window('hann', n, fftbins=True))
    return 0.5 - 0.5 * np.cos(2.0 * np.pi * np.arange(n) / n)


def _hz_to_mel(f):
    f = np.asarray(f, dtype=np.float64)
    f_sp = 200.0 / 3.0
    mels = f / f_sp
    min_log_hz = 1000.0
    min_log_mel = min_log_hz / f_sp
    logstep = np.log(6.4) / 27.0
    return np.where(f >= min_log_hz,
                    min_log_mel + np.log(np.maximum(f, 1e-12) / min_log_hz) / logstep,
                    mels)


def _mel_to_hz(m):
    m = np.asarray(m, dtype=np.float64)
    f_sp = 200.0 / 3.0
    freqs = m * f_sp
    min_log_hz = 1000.0
    min_log_mel = min_log_hz / f_sp
    logstep = np.log(6.4) / 27.0
    return np.where(m >= min_log_mel,
                    min_log_hz * np.exp(logstep * (m - min_log_mel)),
                    freqs)


def _mel_filterbank(sr, n_fft, n_mels, fmin, fmax):
    # librosa.filters.mel, htk=False, norm='slaney'  -> shape (n_mels, n_fft//2+1)
    fftfreqs = np.linspace(0.0, sr / 2.0, 1 + n_fft // 2)
    mel_f = _mel_to_hz(np.linspace(_hz_to_mel(fmin), _hz_to_mel(fmax), n_mels + 2))
    fdiff = np.diff(mel_f)
    ramps = mel_f[:, None] - fftfreqs[None, :]
    lower = -ramps[:-2] / fdiff[:-1, None]
    upper = ramps[2:] / fdiff[1:, None]
    weights = np.maximum(0.0, np.minimum(lower, upper))
    enorm = 2.0 / (mel_f[2:n_mels + 2] - mel_f[:n_mels])
    weights *= enorm[:, None]
    return weights.astype(np.float64)


def _build_params():
    """Packed DFT weight (WINDOW_SIZE, 2*F_KEEP) f32 and lane-padded mel matrix (F_KEEP, MEL_PAD) f32."""
    win = _hann_window(WINDOW_SIZE)
    n = np.arange(WINDOW_SIZE)[:, None].astype(np.float64)
    k = np.arange(F_KEEP)[None, :].astype(np.float64)
    ang = 2.0 * np.pi * n * k / WINDOW_SIZE
    wr = np.cos(ang) * win[:, None]               # real DFT basis * window
    wi = -np.sin(ang) * win[:, None]              # imag DFT basis * window
    w = np.concatenate([wr, wi], axis=1).astype(np.float32)      # (WINDOW_SIZE, 2*F_KEEP)

    mel_full = _mel_filterbank(SAMPLE_RATE, WINDOW_SIZE, MEL_BINS, FMIN, FMAX)   # (64, 513)
    # With fmax=10 kHz, bins >= 321 carry zero mel weight -> dropping 384.. is exact.
    assert np.allclose(mel_full[:, F_KEEP:], 0.0), "frequency truncation would not be exact"
    mel_pad = np.zeros((F_KEEP, MEL_PAD), dtype=np.float32)       # lane-dense (384, 128)
    mel_pad[:, :MEL_BINS] = mel_full[:, :F_KEEP].T
    return w, mel_pad


@functools.lru_cache(maxsize=1)
def _get_weights():
    w_np, mel_np = _build_params()
    w = jnp.asarray(w_np)                                    # f32 (1024, 768)
    w_hi = w.astype(jnp.bfloat16)                            # bf16 high part
    w_lo = (w - w_hi.astype(jnp.float32)).astype(jnp.bfloat16)   # bf16 residual part
    melW = jnp.asarray(mel_np).astype(jnp.bfloat16)          # bf16 (384, 128), cols 64.. are zero
    return w_hi, w_lo, melW


# ---------------- Pallas kernel: split-bf16 STFT matmul + power + mel matmul + log ----------------
def logmel_kernel(frames_ref, wh_ref, wl_ref, mel_ref, out_ref):
    # frames_ref: (tile_m, WINDOW_SIZE) f32
    # wh_ref/wl_ref: (WINDOW_SIZE, 2*F_KEEP) bf16 (hi/lo split of the f32 DFT basis)
    # mel_ref: (F_KEEP, MEL_PAD) bf16        out_ref: (tile_m, MEL_PAD) f32
    x = frames_ref[...]
    xh = x.astype(jnp.bfloat16)
    xl = (x - xh.astype(jnp.float32)).astype(jnp.bfloat16)
    # Error-compensated bf16 matmul: x @ W ~= xh@Wh + xl@Wh + xh@Wl  (f32 accumulate).
    # Keeps the MXU bf16 fast path while giving ~f32 accuracy (no dB blow-up in
    # low-energy bins from re/im cancellation).
    s = jnp.dot(xh, wh_ref[...], preferred_element_type=jnp.float32)
    s = s + jnp.dot(xl, wh_ref[...], preferred_element_type=jnp.float32)
    s = s + jnp.dot(xh, wl_ref[...], preferred_element_type=jnp.float32)
    re = s[:, :F_KEEP]                        # lane-aligned slices (384 = 3*128)
    im = s[:, F_KEEP:]
    power = re * re + im * im                 # power spectrogram (f32, positive)
    # Mel matmul: positive summands -> bf16 inputs with f32 accumulation are safe (<0.02 dB).
    mel = jnp.dot(power.astype(jnp.bfloat16), mel_ref[...],
                  preferred_element_type=jnp.float32)         # (tile_m, MEL_PAD)
    out_ref[...] = 10.0 * jnp.log10(jnp.maximum(mel, AMIN)) - DB_OFFSET


def _round_up(x, m):
    return (x + m - 1) // m * m


@jax.jit
def _log_mel_jit(x, w_hi, w_lo, melW):
    B, L = x.shape
    pad = WINDOW_SIZE // 2
    xp = jnp.pad(x, ((0, 0), (pad, pad)), mode="reflect")          # center=True, pad_mode='reflect'
    T = L // HOP_SIZE + 1
    idx = np.arange(T)[:, None] * HOP_SIZE + np.arange(WINDOW_SIZE)[None, :]
    frames = xp[:, idx]                                            # (B, T, n_fft) f32
    # TODO(synk): for long audio, stream the raw padded waveform per tile (manual DMA with
    # memory_space=pl.ANY + make_async_copy) instead of materializing the ~3.2x-expanded
    # frames array in HBM; blocked on non-128-aligned per-row windowing (HOP=320).

    M = B * T
    frames = frames.reshape(M, WINDOW_SIZE)
    # Big tiles to amortize per-step overhead & MXU weight pushes, but:
    #  * at least 2 grid steps so both v7x TensorCores run on short clips,
    #  * 8-row aligned (f32 sublane), capped by the VMEM budget.
    tile_m = max(8, min(MAX_TILE_M, _round_up(pl.cdiv(M, 2), 8)))
    m_pad = _round_up(M, tile_m)
    if m_pad != M:
        frames = jnp.pad(frames, ((0, m_pad - M), (0, 0)))         # pad rows -> -100 dB, sliced off

    out = pl.pallas_call(
        logmel_kernel,
        out_shape=jax.ShapeDtypeStruct((m_pad, MEL_PAD), jnp.float32),
        grid_spec=pltpu.PrefetchScalarGridSpec(
            num_scalar_prefetch=0,
            grid=(m_pad // tile_m,),
            in_specs=[
                pl.BlockSpec((tile_m, WINDOW_SIZE), lambda i: (i, 0)),
                pl.BlockSpec((WINDOW_SIZE, 2 * F_KEEP), lambda i: (0, 0)),
                pl.BlockSpec((WINDOW_SIZE, 2 * F_KEEP), lambda i: (0, 0)),
                pl.BlockSpec((F_KEEP, MEL_PAD), lambda i: (0, 0)),
            ],
            out_specs=pl.BlockSpec((tile_m, MEL_PAD), lambda i: (i, 0)),
        ),
        compiler_params=pltpu.CompilerParams(
            dimension_semantics=("parallel",),
            vmem_limit_bytes=VMEM_LIMIT_BYTES,
        ),
    )(frames, w_hi, w_lo, melW)

    out = out[:M, :MEL_BINS].reshape(B, T, MEL_BINS)
    return out[:, None, :, :]                                      # (B, 1, T, MEL_BINS)


def log_mel(x):
    """x: (B, L) float32 waveform -> (B, 1, T, MEL_BINS) float32 log-mel."""
    w_hi, w_lo, melW = _get_weights()
    return _log_mel_jit(x, w_hi, w_lo, melW)


# ---------------- pure numpy reference (full 513-bin DFT, float64) ----------------
def _reference(x):
    x = np.asarray(x, np.float64)
    pad = WINDOW_SIZE // 2
    xp = np.pad(x, ((0, 0), (pad, pad)), mode="reflect")
    T = x.shape[1] // HOP_SIZE + 1
    idx = np.arange(T)[:, None] * HOP_SIZE + np.arange(WINDOW_SIZE)[None, :]
    frames = xp[:, idx]
    win = _hann_window(WINDOW_SIZE)
    n = np.arange(WINDOW_SIZE)[:, None].astype(np.float64)
    k = np.arange(N_FREQ)[None, :].astype(np.float64)
    ang = 2.0 * np.pi * n * k / WINDOW_SIZE
    wr = np.cos(ang) * win[:, None]
    wi = -np.sin(ang) * win[:, None]
    melW = _mel_filterbank(SAMPLE_RATE, WINDOW_SIZE, MEL_BINS, FMIN, FMAX)
    re = frames @ wr
    im = frames @ wi
    power = re * re + im * im
    mel = power @ melW.T
    out = 10.0 * np.log10(np.maximum(mel, AMIN)) - 10.0 * np.log10(max(AMIN, REF))
    return out[:, None, :, :]


if __name__ == "__main__":
    key = jax.random.PRNGKey(0)
    B, L = 2, 3200                          # 2 waveforms of 3200 samples -> T = 11 frames
    x = jax.random.normal(key, (B, L), dtype=jnp.float32)

    out = jax.block_until_ready(log_mel(x))
    ref = _reference(np.asarray(x))

    assert out.shape == (B, 1, L // HOP_SIZE + 1, MEL_BINS)
    max_err = float(np.max(np.abs(np.asarray(out, dtype=np.float64) - ref)))
    # split-bf16 STFT (~f32 accuracy) + bf16 mel matmul keeps the dB error well under 0.1 dB.
    assert np.allclose(np.asarray(out), ref, rtol=1e-3, atol=1e-1), \
        f"mismatch vs reference (max abs err {max_err:.4g} dB)"
    print("KERNEL_OK")
</pallas_src>

<mosaic_0001>
module attributes {stable_mosaic.version = 11 : i64} {
  func.func @logmel_kernel(%arg0: i32, %arg1: memref<16x1024xf32, #tpu.memory_space<vmem>>, %arg2: memref<1024x768xbf16, #tpu.memory_space<vmem>>, %arg3: memref<1024x768xbf16, #tpu.memory_space<vmem>>, %arg4: memref<384x128xbf16, #tpu.memory_space<vmem>>, %arg5: memref<16x128xf32, #tpu.memory_space<vmem>>) attributes {dimension_semantics = [#tpu.dimension_semantics<parallel>], iteration_bounds = array<i64: 2>, scalar_prefetch = 0 : i64, scratch_operands = 0 : i64, tpu.core_type = #tpu.core_type<tc>, window_params = [{transform_indices = @transform_0, window_bounds = array<i64: 16, 1024>}, {pipeline_mode = #tpu.pipeline_mode<synchronous>, transform_indices = @transform_1, window_bounds = array<i64: 1024, 768>}, {pipeline_mode = #tpu.pipeline_mode<synchronous>, transform_indices = @transform_2, window_bounds = array<i64: 1024, 768>}, {pipeline_mode = #tpu.pipeline_mode<synchronous>, transform_indices = @transform_3, window_bounds = array<i64: 384, 128>}, {transform_indices = @transform_4, window_bounds = array<i64: 16, 128>}]} {
    %c0 = arith.constant 0 : index
    %c0_0 = arith.constant 0 : index
    %0 = vector.load %arg1[%c0, %c0_0] : memref<16x1024xf32, #tpu.memory_space<vmem>>, vector<16x1024xf32>
    %1 = arith.truncf %0 : vector<16x1024xf32> to vector<16x1024xbf16>
    %2 = arith.extf %1 : vector<16x1024xbf16> to vector<16x1024xf32>
    %3 = arith.subf %0, %2 : vector<16x1024xf32>
    %4 = arith.truncf %3 : vector<16x1024xf32> to vector<16x1024xbf16>
    %c0_1 = arith.constant 0 : index
    %c0_2 = arith.constant 0 : index
    %5 = vector.load %arg2[%c0_1, %c0_2] : memref<1024x768xbf16, #tpu.memory_space<vmem>>, vector<1024x768xbf16>
    %cst = arith.constant dense<0.000000e+00> : vector<16x768xf32>
    %6 = tpu.matmul %1, %5, %cst {dimension_numbers = #tpu.dot_dimension_numbers<[1], [0], [0], [1], [0, 0, 1, 1], [], []>} : vector<16x1024xbf16>, vector<1024x768xbf16>, vector<16x768xf32> -> vector<16x768xf32>
    %c0_3 = arith.constant 0 : index
    %c0_4 = arith.constant 0 : index
    %7 = vector.load %arg2[%c0_3, %c0_4] : memref<1024x768xbf16, #tpu.memory_space<vmem>>, vector<1024x768xbf16>
    %cst_5 = arith.constant dense<0.000000e+00> : vector<16x768xf32>
    %8 = tpu.matmul %4, %7, %cst_5 {dimension_numbers = #tpu.dot_dimension_numbers<[1], [0], [0], [1], [0, 0, 1, 1], [], []>} : vector<16x1024xbf16>, vector<1024x768xbf16>, vector<16x768xf32> -> vector<16x768xf32>
    %9 = arith.addf %6, %8 : vector<16x768xf32>
    %c0_6 = arith.constant 0 : index
    %c0_7 = arith.constant 0 : index
    %10 = vector.load %arg3[%c0_6, %c0_7] : memref<1024x768xbf16, #tpu.memory_space<vmem>>, vector<1024x768xbf16>
    %cst_8 = arith.constant dense<0.000000e+00> : vector<16x768xf32>
    %11 = tpu.matmul %1, %10, %cst_8 {dimension_numbers = #tpu.dot_dimension_numbers<[1], [0], [0], [1], [0, 0, 1, 1], [], []>} : vector<16x1024xbf16>, vector<1024x768xbf16>, vector<16x768xf32> -> vector<16x768xf32>
    %12 = arith.addf %9, %11 : vector<16x768xf32>
    %13 = vector.extract_strided_slice %12 {offsets = [0, 0], sizes = [16, 384], strides = [1, 1]} : vector<16x768xf32> to vector<16x384xf32>
    %14 = vector.extract_strided_slice %12 {offsets = [0, 384], sizes = [16, 384], strides = [1, 1]} : vector<16x768xf32> to vector<16x384xf32>
    %15 = arith.mulf %13, %13 : vector<16x384xf32>
    %16 = arith.mulf %14, %14 : vector<16x384xf32>
    %17 = arith.addf %15, %16 : vector<16x384xf32>
    %18 = arith.truncf %17 : vector<16x384xf32> to vector<16x384xbf16>
    %c0_9 = arith.constant 0 : index
    %c0_10 = arith.constant 0 : index
    %19 = vector.load %arg4[%c0_9, %c0_10] : memref<384x128xbf16, #tpu.memory_space<vmem>>, vector<384x128xbf16>
    %cst_11 = arith.constant dense<0.000000e+00> : vector<16x128xf32>
    %20 = tpu.matmul %18, %19, %cst_11 {dimension_numbers = #tpu.dot_dimension_numbers<[1], [0], [0], [1], [0, 0, 1, 1], [], []>} : vector<16x384xbf16>, vector<384x128xbf16>, vector<16x128xf32> -> vector<16x128xf32>
    %cst_12 = arith.constant 1.000000e-10 : f32
    %21 = vector.broadcast %cst_12 : f32 to vector<16x128xf32>
    %22 = arith.maximumf %20, %21 : vector<16x128xf32>
    %23 = math.log %22 : vector<16x128xf32>
    %cst_13 = arith.constant 0.434294492 : f32
    %24 = vector.broadcast %cst_13 : f32 to vector<16x128xf32>
    %25 = arith.mulf %23, %24 : vector<16x128xf32>
    %cst_14 = arith.constant 1.000000e+01 : f32
    %26 = vector.broadcast %cst_14 : f32 to vector<16x128xf32>
    %27 = arith.mulf %26, %25 : vector<16x128xf32>
    %cst_15 = arith.constant 0.000000e+00 : f32
    %28 = vector.broadcast %cst_15 : f32 to vector<16x128xf32>
    %29 = arith.subf %27, %28 : vector<16x128xf32>
    %c0_16 = arith.constant 0 : index
    %c0_17 = arith.constant 0 : index
    %30 = vector.load %arg5[%c0_16, %c0_17] : memref<16x128xf32, #tpu.memory_space<vmem>>, vector<16x128xf32>
    tpu.vector_store %arg5[%c0_16, %c0_17], %29 {strides = array<i32>} : memref<16x128xf32, #tpu.memory_space<vmem>>, vector<16x128xf32>,
    return
  }
  func.func @transform_0(%arg0: i32) -> (i32, i32) {
    %c0_i32 = arith.constant 0 : i32
    %c0_i32_0 = arith.constant 0 : i32
    return %arg0, %c0_i32 : i32, i32
  }
  func.func @transform_1(%arg0: i32) -> (i32, i32) {
    %c0_i32 = arith.constant 0 : i32
    %c0_i32_0 = arith.constant 0 : i32
    %c0_i32_1 = arith.constant 0 : i32
    return %c0_i32, %c0_i32_0 : i32, i32
  }
  func.func @transform_2(%arg0: i32) -> (i32, i32) {
    %c0_i32 = arith.constant 0 : i32
    %c0_i32_0 = arith.constant 0 : i32
    %c0_i32_1 = arith.constant 0 : i32
    return %c0_i32, %c0_i32_0 : i32, i32
  }
  func.func @transform_3(%arg0: i32) -> (i32, i32) {
    %c0_i32 = arith.constant 0 : i32
    %c0_i32_0 = arith.constant 0 : i32
    %c0_i32_1 = arith.constant 0 : i32
    return %c0_i32, %c0_i32_0 : i32, i32
  }
  func.func @transform_4(%arg0: i32) -> (i32, i32) {
    %c0_i32 = arith.constant 0 : i32
    %c0_i32_0 = arith.constant 0 : i32
    return %arg0, %c0_i32 : i32, i32
  }
}

</mosaic_0001>

<bundles_post_ra>
// kernel: _log_mel_jit.1
= control target key start
LH: loop header
LB: loop body
LE: loop exit
PB: predicated region body
PF: predicated region fallthrough
CT: control target
= control target key end

     0   :  { %s9304_s15 = smov 0   ;;  %s13126_s0 = inlined_call_operand.vmem [shape: f32[32,1024], index: 0, kind: input, shape index: {}]   ;;  %s13127_s1 = inlined_call_operand.vmem [shape: bf16[1024,768], index: 1, kind: input, shape index: {}]   ;;  %s13128_s2 = inlined_call_operand.vmem [shape: bf16[1024,768], index: 2, kind: input, shape index: {}]   ;;  %s13129_s3 = inlined_call_operand.vmem [shape: bf16[384,128], index: 3, kind: input, shape index: {}]   ;;  %s13130_s4 = inlined_call_operand.vmem [shape: f32[32,128], index: 4, kind: output, shape index: {}]  }
   0x1 LB: > { %s6800_s16 = sadd.s32 4294967295, %s9275_s15   ;;  %p6804_p0 = scmp.ge.s32.totalorder %s9275_s15, 1  ;;  %s9275_s15 = sphi %s9304_s15, %s14_s15  }
   0x2   : > { %p164_p1 = scmp.lt.s32.totalorder %s9275_s15, 3 }
   0x4   : > { %p165_p2 = pnand %p6804_p0, %p164_p1 }
   0x6   : > { %168 = sbr.rel (%p165_p2) target bundleno = 1721 (0x6b9), region = 36 }
   0xd   : > { %v7798_v0 = vld [vmem:[%s13127_s1 + $0x4] ss:$24 sps:$4 sm:$0xff]   ;;  %v7800_v1 = vld [vmem:[%s13127_s1 + $0x314] ss:$24 sps:$4 sm:$0xff]   ;;  %v7802_v2 = vld [vmem:[%s13127_s1] ss:$24 sps:$4 sm:$0xff]  }
   0xe   : > { %2573 = vmatprep.subr.bf16.mxu1 %v7798_v0  ;;  %v7803_v3 = vld [vmem:[%s13127_s1 + $0x310] ss:$24 sps:$4 sm:$0xff]   ;;  %2960 = vmatprep.subr.bf16.mxu0 %v7800_v1  ;;  %v7804_v4 = vld [vmem:[%s13127_s1 + $0x34] ss:$24 sps:$4 sm:$0xff]   ;;  %v7806_v5 = vld [vmem:[%s13127_s1 + $0x344] ss:$24 sps:$4 sm:$0xff]  }
   0xf   : > { %2574 = vmatpush1.bf16.msra.mxu1 %v7802_v2  ;;  %2961 = vmatpush1.bf16.msra.mxu0 %v7803_v3  ;;  %v7808_v6 = vld [vmem:[%s13127_s1 + $0x30] ss:$24 sps:$4 sm:$0xff]   ;;  %v7809_v7 = vld [vmem:[%s13127_s1 + $0x340] ss:$24 sps:$4 sm:$0xff]   ;;  %v7810_v8 = vld [vmem:[%s13127_s1 + $0x64] ss:$24 sps:$4 sm:$0xff]  }
  0x10   : > { %2575 = vmatprep.subr.bf16.mxu1 %v7804_v4  ;;  %2962 = vmatprep.subr.bf16.mxu0 %v7806_v5  ;;  %v7812_v9 = vld [vmem:[%s13127_s1 + $0x374] ss:$24 sps:$4 sm:$0xff]   ;;  %v7814_v10 = vld [vmem:[%s13127_s1 + $0x60] ss:$24 sps:$4 sm:$0xff]   ;;  %v7815_v11 = vld [vmem:[%s13127_s1 + $0x370] ss:$24 sps:$4 sm:$0xff]  }
  0x11   : > { %v7816_v12 = vld [vmem:[%s13127_s1 + $0x94] ss:$24 sps:$4 sm:$0xff]   ;;  %v7818_v13 = vld [vmem:[%s13127_s1 + $0x3a4] ss:$24 sps:$4 sm:$0xff]   ;;  %v7820_v14 = vld [vmem:[%s13127_s1 + $0x90] ss:$24 sps:$4 sm:$0xff]  }
  0x12   : > { %v7821_v15 = vld [vmem:[%s13127_s1 + $0x3a0] ss:$24 sps:$4 sm:$0xff]   ;;  %v7822_v16 = vld [vmem:[%s13127_s1 + $0xc4] ss:$24 sps:$4 sm:$0xff]   ;;  %v7824_v17 = vld [vmem:[%s13127_s1 + $0x3d4] ss:$24 sps:$4 sm:$0xff]  }
  0x13   : > { %2576 = vmatpush1.bf16.msra.mxu1 %v7808_v6  ;;  %2963 = vmatpush1.bf16.msra.mxu0 %v7809_v7  ;;  %v7826_v18 = vld [vmem:[%s13127_s1 + $0xc0] ss:$24 sps:$4 sm:$0xff]   ;;  %v7827_v19 = vld [vmem:[%s13127_s1 + $0x3d0] ss:$24 sps:$4 sm:$0xff]   ;;  %v7828_v20 = vld [vmem:[%s13127_s1 + $0xf4] ss:$24 sps:$4 sm:$0xff]  }
  0x14   : > { %2577 = vmatprep.subr.bf16.mxu1 %v7810_v8  ;;  %2964 = vmatprep.subr.bf16.mxu0 %v7812_v9  ;;  %v7830_v21 = vld [vmem:[%s13127_s1 + $0x404] ss:$24 sps:$4 sm:$0xff]   ;;  %v7832_v22 = vld [vmem:[%s13127_s1 + $0xf0] ss:$24 sps:$4 sm:$0xff]   ;;  %v7833_v23 = vld [vmem:[%s13127_s1 + $0x400] ss:$24 sps:$4 sm:$0xff]  }
  0x15   : > { %v7834_v24 = vld [vmem:[%s13127_s1 + $0x124] ss:$24 sps:$4 sm:$0xff]   ;;  %v7836_v25 = vld [vmem:[%s13127_s1 + $0x434] ss:$24 sps:$4 sm:$0xff]   ;;  %v7838_v26 = vld [vmem:[%s13127_s1 + $0x120] ss:$24 sps:$4 sm:$0xff]  }
  0x16   : > { %v7839_v27 = vld [vmem:[%s13127_s1 + $0x430] ss:$24 sps:$4 sm:$0xff]   ;;  %v7840_v28 = vld [vmem:[%s13127_s1 + $0x154] ss:$24 sps:$4 sm:$0xff]   ;;  %v7842_v29 = vld [vmem:[%s13127_s1 + $0x464] ss:$24 sps:$4 sm:$0xff]  }
  0x17   : > { %2578 = vmatpush1.bf16.msra.mxu1 %v7814_v10  ;;  %2965 = vmatpush1.bf16.msra.mxu0 %v7815_v11  ;;  %s6805_s29 = sshll.u32 %s6800_s16, 1  ;;  %v7844_v30 = vld [vmem:[%s13127_s1 + $0x150] ss:$24 sps:$4 sm:$0xff]   ;;  %v7845_v31 = vld [vmem:[%s13127_s1 + $0x460] ss:$24 sps:$4 sm:$0xff]   ;;  %vm9278_vm0 = vmmov 0  }
  0x18   : > { %2579 = vmatprep.subr.bf16.mxu1 %v7816_v12  ;;  %2966 = vmatprep.subr.bf16.mxu0 %v7818_v13  ;;  %v7846_v32 = vld [vmem:[%s13127_s1 + $0x184] ss:$24 sps:$4 sm:$0xff]   ;;  %p192_p3 = scmp.lt.s32.totalorder %s6805_s29, 3  ;;  %v7848_v33 = vld [vmem:[%s13127_s1 + $0x494] ss:$24 sps:$4 sm:$0xff]  }
  0x19   : > { %v7850_v34 = vld [vmem:[%s13127_s1 + $0x180] ss:$24 sps:$4 sm:$0xff]   ;;  %v7851_v35 = vld [vmem:[%s13127_s1 + $0x490] ss:$24 sps:$4 sm:$0xff]   ;;  %v7852_v36 = vld [vmem:[%s13127_s1 + $0x1b4] ss:$24 sps:$4 sm:$0xff]  }
  0x1a   : > { %s13266_s29 = smov (!%p192_p3, %s6805_s29), 3  ;;  %v7854_v37 = vld [vmem:[%s13127_s1 + $0x4c4] ss:$24 sps:$4 sm:$0xff]   ;;  %v7856_v38 = vld [vmem:[%s13127_s1 + $0x1b0] ss:$24 sps:$4 sm:$0xff]  }
  0x1b   : > { %2580 = vmatpush1.bf16.msra.mxu1 %v7820_v14  ;;  %2967 = vmatpush1.bf16.msra.mxu0 %v7821_v15  ;;  %v7857_v39 = vld [vmem:[%s13127_s1 + $0x4c0] ss:$24 sps:$4 sm:$0xff]   ;;  %v7858_v40 = vld [vmem:[%s13127_s1 + $0x1e4] ss:$24 sps:$4 sm:$0xff]   ;;  %s7604_s27 = sshll.u32 %s13266_s29, 6  ;;  %s6809_s13 = sshll.u32 %s13266_s29, 3 }
  0x1c   : > { %2581 = vmatprep.subr.bf16.mxu1 %v7822_v16  ;;  %2968 = vmatprep.subr.bf16.mxu0 %v7824_v17  ;;  %v7860_v41 = vld [vmem:[%s13127_s1 + $0x4f4] ss:$24 sps:$4 sm:$0xff]   ;;  %v7862_v42 = vld [vmem:[%s13127_s1 + $0x1e0] ss:$24 sps:$4 sm:$0xff]   ;;  %v7863_v43 = vld [vmem:[%s13127_s1 + $0x4f0] ss:$24 sps:$4 sm:$0xff]   ;;  %s9452_s11 = scalar_lea.vmem %s13126_s0, %s7604_s27  ;;  %s202_s18 = scalar_lea.vmem %s13130_s4, %s6809_s13 }
  0x1d   : > { %v7864_v44 = vld [vmem:[%s13127_s1 + $0x214] ss:$24 sps:$4 sm:$0xff]   ;;  %v7866_v45 = vld [vmem:[%s13127_s1 + $0x524] ss:$24 sps:$4 sm:$0xff]   ;;  %v7868_v46 = vld [vmem:[%s13127_s1 + $0x210] ss:$24 sps:$4 sm:$0xff]  }
  0x1e   : > { %v7869_v47 = vld [vmem:[%s13127_s1 + $0x520] ss:$24 sps:$4 sm:$0xff]   ;;  %v206_v48 = vld [vmem:[%s9452_s11 + $0x8] sm:$0xff]  ;;  %v7870_v50 = vld [vmem:[%s13127_s1 + $0x244] ss:$24 sps:$4 sm:$0xff]  }
  0x1f   : > { %2582 = vmatpush1.bf16.msra.mxu1 %v7826_v18  ;;  %2969 = vmatpush1.bf16.msra.mxu0 %v7827_v19  ;;  %v214_v49 = vld [vmem:[%s9452_s11 + $0x48] sm:$0xff]  ;;  %v208_v53 = vld [vmem:[%s9452_s11 + $0x18] sm:$0xff]  ;;  %v205_v61 = vld [vmem:[%s9452_s11] sm:$0xff] }
  0x20   : > { %2583 = vmatprep.subr.bf16.mxu1 %v7828_v20  ;;  %2970 = vmatprep.subr.bf16.mxu0 %v7830_v21  ;;  %v7872_v51 = vld [vmem:[%s13127_s1 + $0x554] ss:$24 sps:$4 sm:$0xff]   ;;  %v9474_v52 = vpack.c.bf16 %v214_v49, %v206_v48  ;;  %v216_v54 = vld [vmem:[%s9452_s11 + $0x58] sm:$0xff]  ;;  %v7875_v56 = vld [vmem:[%s13127_s1 + $0x550] ss:$24 sps:$4 sm:$0xff]  }
  0x21   : > { %v7874_v55 = vld [vmem:[%s13127_s1 + $0x240] ss:$24 sps:$4 sm:$0xff]   ;;  %v9486_v59 = vpack.c.bf16 %v216_v54, %v208_v53  ;;  %v7876_v60 = vld [vmem:[%s13127_s1 + $0x274] ss:$24 sps:$4 sm:$0xff]   ;;  %v7878_v5 = vld [vmem:[%s13127_s1 + $0x584] ss:$24 sps:$4 sm:$0xff]  }
  0x22   : > { %v230_v57 = vunpack.c.l.bf16 %v9474_v52  ;;  %v238_v58 = vunpack.c.h.bf16 %v9474_v52  ;;  %v213_v62 = vld [vmem:[%s9452_s11 + $0x40] sm:$0xff]  ;;  %v207_v63 = vld [vmem:[%s9452_s11 + $0x10] sm:$0xff] }
  0x23   : > { %2584 = vmatpush1.bf16.msra.mxu1 %v7832_v22  ;;  %2971 = vmatpush1.bf16.msra.mxu0 %v7833_v23  ;;  %v232_v2 = vunpack.c.l.bf16 %v9486_v59  ;;  %v240_v3 = vunpack.c.h.bf16 %v9486_v59  ;;  %v215_v4 = vld [vmem:[%s9452_s11 + $0x50] sm:$0xff]  ;;  %v7881_v10 = vld [vmem:[%s13127_s1 + $0x580] ss:$24 sps:$4 sm:$0xff]   ;;  %v9508_v11 = vpack.c.bf16 %v213_v62, %v205_v61  ;;  %v7882_v13 = vld [vmem:[%s13127_s1 + $0x2a4] ss:$24 sps:$4 sm:$0xff]  }
  0x24   : > { %2585 = vmatprep.subr.bf16.mxu1 %v7834_v24  ;;  %2972 = vmatprep.subr.bf16.mxu0 %v7836_v25  ;;  %v246_v0 = vsub.f32 %v206_v48, %v230_v57  ;;  %v254_v1 = vsub.f32 %v214_v49, %v238_v58  ;;  %v7880_v9 = vld [vmem:[%s13127_s1 + $0x270] ss:$24 sps:$4 sm:$0xff]   ;;  %v9510_v12 = vpack.c.bf16 %v215_v4, %v207_v63  ;;  %v7884_v15 = vld [vmem:[%s13127_s1 + $0x5b4] ss:$24 sps:$4 sm:$0xff]   ;;  %v7886_v16 = vld [vmem:[%s13127_s1 + $0x2a0] ss:$24 sps:$4 sm:$0xff]  }
  0x25   : > { %v248_v7 = vsub.f32 %v208_v53, %v232_v2  ;;  %v256_v8 = vsub.f32 %v216_v54, %v240_v3  ;;  %v7887_v17 = vld [vmem:[%s13127_s1 + $0x5b0] ss:$24 sps:$4 sm:$0xff]   ;;  %v229_v18 = vunpack.c.l.bf16 %v9508_v11  ;;  %v237_v19 = vunpack.c.h.bf16 %v9508_v11  ;;  %v7888_v22 = vld [vmem:[%s13127_s1 + $0x2d4] ss:$24 sps:$4 sm:$0xff]   ;;  %v7890_v23 = vld [vmem:[%s13127_s1 + $0x5e4] ss:$24 sps:$4 sm:$0xff]  }
  0x26   : > { %v9500_v6 = vpack.c.bf16 %v254_v1, %v246_v0  ;;  %v231_v20 = vunpack.c.l.bf16 %v9510_v12  ;;  %v239_v21 = vunpack.c.h.bf16 %v9510_v12  ;;  %v7892_v24 = vld [vmem:[%s13127_s1 + $0x2d0] ss:$24 sps:$4 sm:$0xff]   ;;  %v7893_v25 = vld [vmem:[%s13127_s1 + $0x5e0] ss:$24 sps:$4 sm:$0xff]   ;;  %v7920_v48 = vld [vmem:[%s13127_s1 + $0x3c4] ss:$24 sps:$4 sm:$0xff]  }
  0x27   : > { %2586 = vmatpush1.bf16.msra.mxu1 %v7838_v26  ;;  %2973 = vmatpush1.bf16.msra.mxu0 %v7839_v27  ;;  %v9515_v14 = vpack.c.bf16 %v256_v8, %v248_v7  ;;  %v245_v26 = vsub.f32 %v205_v61, %v229_v18  ;;  %v253_v27 = vsub.f32 %v213_v62, %v237_v19  ;;  %v7923_v49 = vld [vmem:[%s13127_s1 + $0x6d4] ss:$24 sps:$4 sm:$0xff]   ;;  %v7929_v54 = vld [vmem:[%s13127_s1 + $0x704] ss:$24 sps:$4 sm:$0xff]   ;;  %v7933_v61 = vld [vmem:[%s13127_s1 + $0x730] ss:$24 sps:$4 sm:$0xff]  }
  0x28   : > { %2587 = vmatprep.subr.bf16.mxu1 %v7840_v28  ;;  %2974 = vmatprep.subr.bf16.mxu0 %v7842_v29  ;;  %v247_v28 = vsub.f32 %v207_v63, %v231_v20  ;;  %v255_v29 = vsub.f32 %v215_v4, %v239_v21  ;;  %v7926_v53 = vld [vmem:[%s13127_s1 + $0x3f4] ss:$24 sps:$4 sm:$0xff]   ;;  %v7932_v57 = vld [vmem:[%s13127_s1 + $0x424] ss:$24 sps:$4 sm:$0xff]   ;;  %v7936_v3 = vld [vmem:[%s13127_s1 + $0x450] ss:$24 sps:$4 sm:$0xff]  }
  0x29   : > { %2605 = vmatprep.mubr.bf16.mxu1 %v9500_v6  ;;  %2992 = vmatprep.mubr.bf16.mxu0 %v9515_v14  ;;  %v7935_v58 = vld [vmem:[%s13127_s1 + $0x734] ss:$24 sps:$4 sm:$0xff]   ;;  %v7941_v63 = vld [vmem:[%s13127_s1 + $0x764] ss:$24 sps:$4 sm:$0xff]   ;;  %v7939_v4 = vld [vmem:[%s13127_s1 + $0x760] ss:$24 sps:$4 sm:$0xff]  }
  0x2a   : > { %v7938_v62 = vld [vmem:[%s13127_s1 + $0x454] ss:$24 sps:$4 sm:$0xff]   ;;  %v7953_v19 = vld [vmem:[%s13127_s1 + $0x7c4] ss:$24 sps:$4 sm:$0xff]   ;;  %v7948_v20 = vld [vmem:[%s13127_s1 + $0x4b0] ss:$24 sps:$4 sm:$0xff]  }
  0x2b   : > { %2588 = vmatpush1.bf16.msra.mxu1 %v7844_v30  ;;  %2975 = vmatpush1.bf16.msra.mxu0 %v7845_v31  ;;  %v7896_v30 = vld [vmem:[%s13127_s1 + $0x304] ss:$24 sps:$4 sm:$0xff]   ;;  %v7899_v31 = vld [vmem:[%s13127_s1 + $0x614] ss:$24 sps:$4 sm:$0xff]   ;;  %v7951_v21 = vld [vmem:[%s13127_s1 + $0x7c0] ss:$24 sps:$4 sm:$0xff]  }
  0x2c   : > { %2589 = vmatprep.subr.bf16.mxu1 %v7846_v32  ;;  %2976 = vmatprep.subr.bf16.mxu0 %v7848_v33  ;;  %v7894_v32 = vld [vmem:[%s13127_s1 + $0x300] ss:$24 sps:$4 sm:$0xff]   ;;  %v7897_v33 = vld [vmem:[%s13127_s1 + $0x610] ss:$24 sps:$4 sm:$0xff]  }
  0x2d   : > { %v210_v0 = vld [vmem:[%s9452_s11 + $0x28] sm:$0xff] }
  0x2e   : > { %v218_v1 = vld [vmem:[%s9452_s11 + $0x68] sm:$0xff] }
  0x2f   : > { %2590 = vmatpush1.bf16.msra.mxu1 %v7850_v34  ;;  %2977 = vmatpush1.bf16.msra.mxu0 %v7851_v35  ;;  %v9556_v34 = vpack.c.bf16 %v253_v27, %v245_v26  ;;  %v9558_v35 = vpack.c.bf16 %v255_v29, %v247_v28  ;;  %v9643_v2 = vpack.c.bf16 %v218_v1, %v210_v0  ;;  %v7962_v26 = vld [vmem:[%s13127_s1 + $0x514] ss:$24 sps:$4 sm:$0xff]   ;;  %v7965_v27 = vld [vmem:[%s13127_s1 + $0x824] ss:$24 sps:$4 sm:$0xff]   ;;  %v7960_v28 = vld [vmem:[%s13127_s1 + $0x510] ss:$24 sps:$4 sm:$0xff]  }
  0x30   : > { %2591 = vmatprep.subr.bf16.mxu1 %v7852_v36  ;;  %2978 = vmatprep.subr.bf16.mxu0 %v7854_v37  ;;  %v7902_v36 = vld [vmem:[%s13127_s1 + $0x334] ss:$24 sps:$4 sm:$0xff]   ;;  %v7905_v37 = vld [vmem:[%s13127_s1 + $0x644] ss:$24 sps:$4 sm:$0xff]   ;;  %v7963_v29 = vld [vmem:[%s13127_s1 + $0x820] ss:$24 sps:$4 sm:$0xff]  }
  0x31   : > { %v234_v7 = vunpack.c.l.bf16 %v9643_v2  ;;  %v242_v8 = vunpack.c.h.bf16 %v9643_v2 }
  0x33   : > { %2592 = vmatpush1.bf16.msra.mxu1 %v7856_v38  ;;  %2979 = vmatpush1.bf16.msra.mxu0 %v7857_v39  ;;  %v7900_v38 = vld [vmem:[%s13127_s1 + $0x330] ss:$24 sps:$4 sm:$0xff]   ;;  %v7903_v39 = vld [vmem:[%s13127_s1 + $0x640] ss:$24 sps:$4 sm:$0xff]  }
  0x34   : > { %2593 = vmatprep.subr.bf16.mxu1 %v7858_v40  ;;  %2980 = vmatprep.subr.bf16.mxu0 %v7860_v41  ;;  %v7908_v40 = vld [vmem:[%s13127_s1 + $0x364] ss:$24 sps:$4 sm:$0xff]   ;;  %v7911_v41 = vld [vmem:[%s13127_s1 + $0x674] ss:$24 sps:$4 sm:$0xff]  }
  0x37   : > { %2594 = vmatpush1.bf16.msra.mxu1 %v7862_v42  ;;  %2981 = vmatpush1.bf16.msra.mxu0 %v7863_v43  ;;  %v7906_v42 = vld [vmem:[%s13127_s1 + $0x360] ss:$24 sps:$4 sm:$0xff]   ;;  %v7909_v43 = vld [vmem:[%s13127_s1 + $0x670] ss:$24 sps:$4 sm:$0xff]  }
  0x38   : > { %2595 = vmatprep.subr.bf16.mxu1 %v7864_v44  ;;  %2982 = vmatprep.subr.bf16.mxu0 %v7866_v45  ;;  %v7914_v44 = vld [vmem:[%s13127_s1 + $0x394] ss:$24 sps:$4 sm:$0xff]   ;;  %v7917_v45 = vld [vmem:[%s13127_s1 + $0x6a4] ss:$24 sps:$4 sm:$0xff]  }
  0x3b   : > { %2596 = vmatpush1.bf16.msra.mxu1 %v7868_v46  ;;  %2983 = vmatpush1.bf16.msra.mxu0 %v7869_v47  ;;  %v7912_v46 = vld [vmem:[%s13127_s1 + $0x390] ss:$24 sps:$4 sm:$0xff]   ;;  %v7915_v47 = vld [vmem:[%s13127_s1 + $0x6a0] ss:$24 sps:$4 sm:$0xff]  }
  0x3c   : > { %2597 = vmatprep.subr.bf16.mxu1 %v7870_v50  ;;  %2984 = vmatprep.subr.bf16.mxu0 %v7872_v51  ;;  %v7918_v50 = vld [vmem:[%s13127_s1 + $0x3c0] ss:$24 sps:$4 sm:$0xff]   ;;  %v7921_v51 = vld [vmem:[%s13127_s1 + $0x6d0] ss:$24 sps:$4 sm:$0xff]  }
  0x3f   : > { %2598 = vmatpush1.bf16.msra.mxu1 %v7874_v55  ;;  %2985 = vmatpush1.bf16.msra.mxu0 %v7875_v56  ;;  %v7924_v55 = vld [vmem:[%s13127_s1 + $0x3f0] ss:$24 sps:$4 sm:$0xff]   ;;  %v7927_v56 = vld [vmem:[%s13127_s1 + $0x700] ss:$24 sps:$4 sm:$0xff]  }
  0x40   : > { %2599 = vmatprep.subr.bf16.mxu1 %v7876_v60  ;;  %2986 = vmatprep.subr.bf16.mxu0 %v7878_v5  ;;  %v7930_v60 = vld [vmem:[%s13127_s1 + $0x420] ss:$24 sps:$4 sm:$0xff]   ;;  %v7944_v5 = vld [vmem:[%s13127_s1 + $0x484] ss:$24 sps:$4 sm:$0xff]  }
  0x43   : > { %2600 = vmatpush1.bf16.msra.mxu1 %v7880_v9  ;;  %2987 = vmatpush1.bf16.msra.mxu0 %v7881_v10  ;;  %v7947_v9 = vld [vmem:[%s13127_s1 + $0x794] ss:$24 sps:$4 sm:$0xff]   ;;  %v250_v10 = vsub.f32 %v210_v0, %v234_v7  ;;  %v7996_v0 = vld [vmem:[%s13127_s1 + $0x630] ss:$24 sps:$4 sm:$0xff]   ;;  %v220_v7 = vld [vmem:[%s9452_s11 + $0x78] sm:$0xff] }
  0x44   : > { %2601 = vmatprep.subr.bf16.mxu1 %v7882_v13  ;;  %2988 = vmatprep.subr.bf16.mxu0 %v7884_v15  ;;  %v258_v13 = vsub.f32 %v218_v1, %v242_v8  ;;  %v7942_v15 = vld [vmem:[%s13127_s1 + $0x480] ss:$24 sps:$4 sm:$0xff]  }
  0x45   : > { %v7999_v1 = vld [vmem:[%s13127_s1 + $0x940] ss:$24 sps:$4 sm:$0xff]  }
  0x46   : > { %v9668_v18 = vpack.c.bf16 %v258_v13, %v250_v10  ;;  %v8005_v10 = vld [vmem:[%s13127_s1 + $0x970] ss:$24 sps:$4 sm:$0xff]   ;;  %v8010_v13 = vld [vmem:[%s13127_s1 + $0x694] ss:$24 sps:$4 sm:$0xff]  }
  0x47   : > { %2602 = vmatpush1.bf16.msra.mxu1 %v7886_v16  ;;  %2989 = vmatpush1.bf16.msra.mxu0 %v7887_v17  ;;  %v7945_v16 = vld [vmem:[%s13127_s1 + $0x790] ss:$24 sps:$4 sm:$0xff]   ;;  %v7950_v17 = vld [vmem:[%s13127_s1 + $0x4b4] ss:$24 sps:$4 sm:$0xff]  }
  0x48   : > { %2603 = vmatprep.subr.bf16.mxu1 %v7888_v22  ;;  %2990 = vmatprep.subr.bf16.mxu0 %v7890_v23  ;;  %v7956_v22 = vld [vmem:[%s13127_s1 + $0x4e4] ss:$24 sps:$4 sm:$0xff]   ;;  %v7959_v23 = vld [vmem:[%s13127_s1 + $0x7f4] ss:$24 sps:$4 sm:$0xff]  }
  0x4b   : > { %2604 = vmatpush1.bf16.msra.mxu1 %v7892_v24  ;;  %2991 = vmatpush1.bf16.msra.mxu0 %v7893_v25  ;;  %v7954_v24 = vld [vmem:[%s13127_s1 + $0x4e0] ss:$24 sps:$4 sm:$0xff]   ;;  %v7957_v25 = vld [vmem:[%s13127_s1 + $0x7f0] ss:$24 sps:$4 sm:$0xff]  }
  0x4c   : > { %2616 = vmatprep.subr.bf16.mxu1 %v7896_v30  ;;  %3003 = vmatprep.subr.bf16.mxu0 %v7899_v31  ;;  %v7968_v30 = vld [vmem:[%s13127_s1 + $0x544] ss:$24 sps:$4 sm:$0xff]   ;;  %v7971_v31 = vld [vmem:[%s13127_s1 + $0x854] ss:$24 sps:$4 sm:$0xff]  }
  0x4e   : > { %2606 = vmatmul.mubr.bf16.vlgmr.msra.gmra.mrb[0].mxu1 %v9556_v34  ;;  %2993 = vmatmul.mubr.bf16.vlgmr.msra.gmra.mrb[0].mxu0 %v9558_v35 }
  0x4f   : > { %2617 = vmatpush1.bf16.msra.mxu1 %v7894_v32  ;;  %3004 = vmatpush1.bf16.msra.mxu0 %v7897_v33  ;;  %v7966_v32 = vld [vmem:[%s13127_s1 + $0x540] ss:$24 sps:$4 sm:$0xff]   ;;  %v7969_v33 = vld [vmem:[%s13127_s1 + $0x850] ss:$24 sps:$4 sm:$0xff]  }
  0x50   : > { %2618 = vmatprep.subr.bf16.mxu1 %v7902_v36  ;;  %3005 = vmatprep.subr.bf16.mxu0 %v7905_v37  ;;  %v7974_v36 = vld [vmem:[%s13127_s1 + $0x574] ss:$24 sps:$4 sm:$0xff]   ;;  %v209_v37 = vld [vmem:[%s9452_s11 + $0x20] sm:$0xff] }
  0x51   : > { %2648 = vmatprep.mubr.bf16.mxu1 %v9515_v14  ;;  %3035 = vmatprep.mubr.bf16.mxu0 %v9668_v18 }
  0x53   : > { %2619 = vmatpush1.bf16.msra.mxu1 %v7900_v38  ;;  %3006 = vmatpush1.bf16.msra.mxu0 %v7903_v39  ;;  %v217_v38 = vld [vmem:[%s9452_s11 + $0x60] sm:$0xff] }
  0x54   : > { %2620 = vmatprep.subr.bf16.mxu1 %v7908_v40  ;;  %3007 = vmatprep.subr.bf16.mxu0 %v7911_v41  ;;  %v7977_v39 = vld [vmem:[%s13127_s1 + $0x884] ss:$24 sps:$4 sm:$0xff]   ;;  %v7972_v40 = vld [vmem:[%s13127_s1 + $0x570] ss:$24 sps:$4 sm:$0xff]   ;;  %v7975_v41 = vld [vmem:[%s13127_s1 + $0x880] ss:$24 sps:$4 sm:$0xff]  }
  0x57   : > { %2621 = vmatpush1.bf16.msra.mxu1 %v7906_v42  ;;  %3008 = vmatpush1.bf16.msra.mxu0 %v7909_v43  ;;  %v9730_v42 = vpack.c.bf16 %v217_v38, %v209_v37  ;;  %v7980_v43 = vld [vmem:[%s13127_s1 + $0x5a4] ss:$24 sps:$4 sm:$0xff]  }
  0x58   : > { %2622 = vmatprep.subr.bf16.mxu1 %v7914_v44  ;;  %3009 = vmatprep.subr.bf16.mxu0 %v7917_v45  ;;  %v7983_v44 = vld [vmem:[%s13127_s1 + $0x8b4] ss:$24 sps:$4 sm:$0xff]   ;;  %v7978_v45 = vld [vmem:[%s13127_s1 + $0x5a0] ss:$24 sps:$4 sm:$0xff]  }
  0x5b   : > { %2623 = vmatpush1.bf16.msra.mxu1 %v7912_v46  ;;  %3010 = vmatpush1.bf16.msra.mxu0 %v7915_v47  ;;  %v7981_v46 = vld [vmem:[%s13127_s1 + $0x8b0] ss:$24 sps:$4 sm:$0xff]   ;;  %v233_v47 = vunpack.c.l.bf16 %v9730_v42 }
  0x5c   : > { %2624 = vmatprep.subr.bf16.mxu1 %v7920_v48  ;;  %3011 = vmatprep.subr.bf16.mxu0 %v7923_v49  ;;  %v241_v48 = vunpack.c.h.bf16 %v9730_v42  ;;  %v7986_v49 = vld [vmem:[%s13127_s1 + $0x5d4] ss:$24 sps:$4 sm:$0xff]  }
  0x5f   : > { %2625 = vmatpush1.bf16.msra.mxu1 %v7918_v50  ;;  %3012 = vmatpush1.bf16.msra.mxu0 %v7921_v51  ;;  %v7989_v50 = vld [vmem:[%s13127_s1 + $0x8e4] ss:$24 sps:$4 sm:$0xff]   ;;  %v7984_v51 = vld [vmem:[%s13127_s1 + $0x5d0] ss:$24 sps:$4 sm:$0xff]  }
  0x60   : > { %2626 = vmatprep.subr.bf16.mxu1 %v7926_v53  ;;  %3013 = vmatprep.subr.bf16.mxu0 %v7929_v54  ;;  %v7987_v53 = vld [vmem:[%s13127_s1 + $0x8e0] ss:$24 sps:$4 sm:$0xff]   ;;  %v249_v54 = vsub.f32 %v209_v37, %v233_v47  ;;  %v8029_v37 = vld [vmem:[%s13127_s1 + $0xa30] ss:$24 sps:$4 sm:$0xff]   ;;  %v8046_v47 = vld [vmem:[%s13127_s1 + $0x7b4] ss:$24 sps:$4 sm:$0xff]  }
  0x63   : > { %2627 = vmatpush1.bf16.msra.mxu1 %v7924_v55  ;;  %3014 = vmatpush1.bf16.msra.mxu0 %v7927_v56  ;;  %v257_v55 = vsub.f32 %v217_v38, %v241_v48  ;;  %v7992_v56 = vld [vmem:[%s13127_s1 + $0x604] ss:$24 sps:$4 sm:$0xff]   ;;  %v8034_v38 = vld [vmem:[%s13127_s1 + $0x754] ss:$24 sps:$4 sm:$0xff]  }
  0x64   : > { %2628 = vmatprep.subr.bf16.mxu1 %v7932_v57  ;;  %3015 = vmatprep.subr.bf16.mxu0 %v7935_v58  ;;  %v7995_v57 = vld [vmem:[%s13127_s1 + $0x914] ss:$24 sps:$4 sm:$0xff]   ;;  %v7990_v58 = vld [vmem:[%s13127_s1 + $0x600] ss:$24 sps:$4 sm:$0xff]   ;;  %v8049_v48 = vld [vmem:[%s13127_s1 + $0xac4] ss:$24 sps:$4 sm:$0xff]  }
  0x67   : > { %2629 = vmatpush1.bf16.msra.mxu1 %v7930_v60  ;;  %3016 = vmatpush1.bf16.msra.mxu0 %v7933_v61  ;;  %v7993_v60 = vld [vmem:[%s13127_s1 + $0x910] ss:$24 sps:$4 sm:$0xff]   ;;  %v9770_v61 = vpack.c.bf16 %v257_v55, %v249_v54  ;;  %v8050_v54 = vld [vmem:[%s13127_s1 + $0x7e0] ss:$24 sps:$4 sm:$0xff]  }
  0x68   : > { %2630 = vmatprep.subr.bf16.mxu1 %v7938_v62  ;;  %3017 = vmatprep.subr.bf16.mxu0 %v7941_v63  ;;  %v7998_v62 = vld [vmem:[%s13127_s1 + $0x634] ss:$24 sps:$4 sm:$0xff]   ;;  %v8001_v63 = vld [vmem:[%s13127_s1 + $0x944] ss:$24 sps:$4 sm:$0xff]   ;;  %v8053_v55 = vld [vmem:[%s13127_s1 + $0xaf0] ss:$24 sps:$4 sm:$0xff]  }
  0x6b   : > { %2631 = vmatpush1.bf16.msra.mxu1 %v7936_v3  ;;  %3018 = vmatpush1.bf16.msra.mxu0 %v7939_v4  ;;  %v8004_v3 = vld [vmem:[%s13127_s1 + $0x664] ss:$24 sps:$4 sm:$0xff]   ;;  %v8007_v4 = vld [vmem:[%s13127_s1 + $0x974] ss:$24 sps:$4 sm:$0xff]  }
  0x6c   : > { %2632 = vmatprep.subr.bf16.mxu1 %v7944_v5  ;;  %3019 = vmatprep.subr.bf16.mxu0 %v7947_v9  ;;  %v212_v5 = vld [vmem:[%s9452_s11 + $0x38] sm:$0xff] }
  0x6d   : > { %v9795_v8 = vpack.c.bf16 %v220_v7, %v212_v5  ;;  %v8002_v9 = vld [vmem:[%s13127_s1 + $0x660] ss:$24 sps:$4 sm:$0xff]  }
  0x6f   : > { %2633 = vmatpush1.bf16.msra.mxu1 %v7942_v15  ;;  %3020 = vmatpush1.bf16.msra.mxu0 %v7945_v16  ;;  %v236_v15 = vunpack.c.l.bf16 %v9795_v8  ;;  %v244_v16 = vunpack.c.h.bf16 %v9795_v8 }
  0x70   : > { %2634 = vmatprep.subr.bf16.mxu1 %v7950_v17  ;;  %3021 = vmatprep.subr.bf16.mxu0 %v7953_v19  ;;  %v8013_v17 = vld [vmem:[%s13127_s1 + $0x9a4] ss:$24 sps:$4 sm:$0xff]  }
  0x71   : > { %v252_v19 = vsub.f32 %v212_v5, %v236_v15  ;;  %v211_v5 = vld [vmem:[%s9452_s11 + $0x30] sm:$0xff]  ;;  %v8076_v15 = vld [vmem:[%s13127_s1 + $0x8a4] ss:$24 sps:$4 sm:$0xff]  }
  0x73   : > { %2635 = vmatpush1.bf16.msra.mxu1 %v7948_v20  ;;  %3022 = vmatpush1.bf16.msra.mxu0 %v7951_v21  ;;  %v260_v20 = vsub.f32 %v220_v7, %v244_v16  ;;  %v8008_v21 = vld [vmem:[%s13127_s1 + $0x690] ss:$24 sps:$4 sm:$0xff]   ;;  %v8079_v16 = vld [vmem:[%s13127_s1 + $0xbb4] ss:$24 sps:$4 sm:$0xff]  }
  0x74   : > { %2636 = vmatprep.subr.bf16.mxu1 %v7956_v22  ;;  %3023 = vmatprep.subr.bf16.mxu0 %v7959_v23  ;;  %v8011_v22 = vld [vmem:[%s13127_s1 + $0x9a0] ss:$24 sps:$4 sm:$0xff]   ;;  %v8016_v23 = vld [vmem:[%s13127_s1 + $0x6c4] ss:$24 sps:$4 sm:$0xff]   ;;  %v219_v7 = vld [vmem:[%s9452_s11 + $0x70] sm:$0xff] }
  0x77   : > { %2637 = vmatpush1.bf16.msra.mxu1 %v7954_v24  ;;  %3024 = vmatpush1.bf16.msra.mxu0 %v7957_v25  ;;  %v9820_v24 = vpack.c.bf16 %v260_v20, %v252_v19  ;;  %v8019_v25 = vld [vmem:[%s13127_s1 + $0x9d4] ss:$24 sps:$4 sm:$0xff]   ;;  %v8077_v19 = vld [vmem:[%s13127_s1 + $0xbb0] ss:$24 sps:$4 sm:$0xff]  }
  0x78   : > { %2638 = vmatprep.subr.bf16.mxu1 %v7962_v26  ;;  %3025 = vmatprep.subr.bf16.mxu0 %v7965_v27  ;;  %v8014_v26 = vld [vmem:[%s13127_s1 + $0x6c0] ss:$24 sps:$4 sm:$0xff]   ;;  %v8017_v27 = vld [vmem:[%s13127_s1 + $0x9d0] ss:$24 sps:$4 sm:$0xff]  }
  0x7b   : > { %2639 = vmatpush1.bf16.msra.mxu1 %v7960_v28  ;;  %3026 = vmatpush1.bf16.msra.mxu0 %v7963_v29  ;;  %v8022_v28 = vld [vmem:[%s13127_s1 + $0x6f4] ss:$24 sps:$4 sm:$0xff]   ;;  %v8025_v29 = vld [vmem:[%s13127_s1 + $0xa04] ss:$24 sps:$4 sm:$0xff]  }
  0x7c   : > { %2640 = vmatprep.subr.bf16.mxu1 %v7968_v30  ;;  %3027 = vmatprep.subr.bf16.mxu0 %v7971_v31  ;;  %v8020_v30 = vld [vmem:[%s13127_s1 + $0x6f0] ss:$24 sps:$4 sm:$0xff]   ;;  %v8023_v31 = vld [vmem:[%s13127_s1 + $0xa00] ss:$24 sps:$4 sm:$0xff]  }
  0x7f   : > { %2641 = vmatpush1.bf16.msra.mxu1 %v7966_v32  ;;  %3028 = vmatpush1.bf16.msra.mxu0 %v7969_v33  ;;  %v8028_v32 = vld [vmem:[%s13127_s1 + $0x724] ss:$24 sps:$4 sm:$0xff]   ;;  %v8031_v33 = vld [vmem:[%s13127_s1 + $0xa34] ss:$24 sps:$4 sm:$0xff]  }
  0x80   : > { %2642 = vmatprep.subr.bf16.mxu1 %v7974_v36  ;;  %3029 = vmatprep.subr.bf16.mxu0 %v7977_v39  ;;  %v8026_v36 = vld [vmem:[%s13127_s1 + $0x720] ss:$24 sps:$4 sm:$0xff]   ;;  %v8037_v39 = vld [vmem:[%s13127_s1 + $0xa64] ss:$24 sps:$4 sm:$0xff]  }
  0x83   : > { %2643 = vmatpush1.bf16.msra.mxu1 %v7972_v40  ;;  %3030 = vmatpush1.bf16.msra.mxu0 %v7975_v41  ;;  %v8032_v40 = vld [vmem:[%s13127_s1 + $0x750] ss:$24 sps:$4 sm:$0xff]   ;;  %v8035_v41 = vld [vmem:[%s13127_s1 + $0xa60] ss:$24 sps:$4 sm:$0xff]  }
  0x84   : > { %2644 = vmatprep.subr.bf16.mxu1 %v7980_v43  ;;  %3031 = vmatprep.subr.bf16.mxu0 %v7983_v44  ;;  %v8040_v43 = vld [vmem:[%s13127_s1 + $0x784] ss:$24 sps:$4 sm:$0xff]   ;;  %v8043_v44 = vld [vmem:[%s13127_s1 + $0xa94] ss:$24 sps:$4 sm:$0xff]  }
  0x87   : > { %2645 = vmatpush1.bf16.msra.mxu1 %v7978_v45  ;;  %3032 = vmatpush1.bf16.msra.mxu0 %v7981_v46  ;;  %v8038_v45 = vld [vmem:[%s13127_s1 + $0x780] ss:$24 sps:$4 sm:$0xff]   ;;  %v8041_v46 = vld [vmem:[%s13127_s1 + $0xa90] ss:$24 sps:$4 sm:$0xff]  }
  0x88   : > { %2646 = vmatprep.subr.bf16.mxu1 %v7986_v49  ;;  %3033 = vmatprep.subr.bf16.mxu0 %v7989_v50  ;;  %v8044_v49 = vld [vmem:[%s13127_s1 + $0x7b0] ss:$24 sps:$4 sm:$0xff]   ;;  %v8047_v50 = vld [vmem:[%s13127_s1 + $0xac0] ss:$24 sps:$4 sm:$0xff]  }
  0x8b   : > { %2647 = vmatpush1.bf16.msra.mxu1 %v7984_v51  ;;  %3034 = vmatpush1.bf16.msra.mxu0 %v7987_v53  ;;  %v8052_v51 = vld [vmem:[%s13127_s1 + $0x7e4] ss:$24 sps:$4 sm:$0xff]   ;;  %v8055_v53 = vld [vmem:[%s13127_s1 + $0xaf4] ss:$24 sps:$4 sm:$0xff]  }
  0x8c   : > { %2659 = vmatprep.subr.bf16.mxu1 %v7992_v56  ;;  %3046 = vmatprep.subr.bf16.mxu0 %v7995_v57  ;;  %v8058_v56 = vld [vmem:[%s13127_s1 + $0x814] ss:$24 sps:$4 sm:$0xff]   ;;  %v8061_v57 = vld [vmem:[%s13127_s1 + $0xb24] ss:$24 sps:$4 sm:$0xff]  }
  0x8e   : > { %2649 = vmatmul.mubr.bf16.vlgmr.msra.gmra.mrb[0].mxu1 %v9558_v35  ;;  %3036 = vmatmul.mubr.bf16.vlgmr.msra.gmra.mrb[0].mxu0 %v9770_v61 }
  0x8f   : > { %2660 = vmatpush1.bf16.msra.mxu1 %v7990_v58  ;;  %3047 = vmatpush1.bf16.msra.mxu0 %v7993_v60  ;;  %v8056_v58 = vld [vmem:[%s13127_s1 + $0x810] ss:$24 sps:$4 sm:$0xff]   ;;  %v8059_v60 = vld [vmem:[%s13127_s1 + $0xb20] ss:$24 sps:$4 sm:$0xff]  }
  0x90   : > { %2661 = vmatprep.subr.bf16.mxu1 %v7998_v62  ;;  %3048 = vmatprep.subr.bf16.mxu0 %v8001_v63  ;;  %v8064_v62 = vld [vmem:[%s13127_s1 + $0x844] ss:$24 sps:$4 sm:$0xff]   ;;  %v8067_v63 = vld [vmem:[%s13127_s1 + $0xb54] ss:$24 sps:$4 sm:$0xff]  }
  0x91   : > { %2691 = vmatprep.mubr.bf16.mxu1 %v9668_v18  ;;  %3078 = vmatprep.mubr.bf16.mxu0 %v9820_v24 }
  0x93   : > { %2662 = vmatpush1.bf16.msra.mxu1 %v7996_v0  ;;  %3049 = vmatpush1.bf16.msra.mxu0 %v7999_v1  ;;  %v8062_v0 = vld [vmem:[%s13127_s1 + $0x840] ss:$24 sps:$4 sm:$0xff]   ;;  %v8065_v1 = vld [vmem:[%s13127_s1 + $0xb50] ss:$24 sps:$4 sm:$0xff]  }
  0x94   : > { %2663 = vmatprep.subr.bf16.mxu1 %v8004_v3  ;;  %3050 = vmatprep.subr.bf16.mxu0 %v8007_v4  ;;  %v8070_v3 = vld [vmem:[%s13127_s1 + $0x874] ss:$24 sps:$4 sm:$0xff]   ;;  %v8073_v4 = vld [vmem:[%s13127_s1 + $0xb84] ss:$24 sps:$4 sm:$0xff]  }
  0x97   : > { %2664 = vmatpush1.bf16.msra.mxu1 %v8002_v9  ;;  %3051 = vmatpush1.bf16.msra.mxu0 %v8005_v10  ;;  %v8068_v9 = vld [vmem:[%s13127_s1 + $0x870] ss:$24 sps:$4 sm:$0xff]   ;;  %v8071_v10 = vld [vmem:[%s13127_s1 + $0xb80] ss:$24 sps:$4 sm:$0xff]  }
  0x98   : > { %2665 = vmatprep.subr.bf16.mxu1 %v8010_v13  ;;  %3052 = vmatprep.subr.bf16.mxu0 %v8013_v17  ;;  %v9942_v13 = vpack.c.bf16 %v219_v7, %v211_v5  ;;  %v8074_v17 = vld [vmem:[%s13127_s1 + $0x8a0] ss:$24 sps:$4 sm:$0xff]  }
  0x9a   : > { %v235_v20 = vunpack.c.l.bf16 %v9942_v13 }
  0x9b   : > { %2666 = vmatpush1.bf16.msra.mxu1 %v8008_v21  ;;  %3053 = vmatpush1.bf16.msra.mxu0 %v8011_v22  ;;  %v243_v21 = vunpack.c.h.bf16 %v9942_v13  ;;  %v8082_v22 = vld [vmem:[%s13127_s1 + $0x8d4] ss:$24 sps:$4 sm:$0xff]  }
  0x9c   : > { %2667 = vmatprep.subr.bf16.mxu1 %v8016_v23  ;;  %3054 = vmatprep.subr.bf16.mxu0 %v8019_v25  ;;  %v8085_v23 = vld [vmem:[%s13127_s1 + $0xbe4] ss:$24 sps:$4 sm:$0xff]   ;;  %v8080_v25 = vld [vmem:[%s13127_s1 + $0x8d0] ss:$24 sps:$4 sm:$0xff]  }
  0x9f   : > { %2668 = vmatpush1.bf16.msra.mxu1 %v8014_v26  ;;  %3055 = vmatpush1.bf16.msra.mxu0 %v8017_v27  ;;  %v251_v26 = vsub.f32 %v211_v5, %v235_v20  ;;  %v259_v27 = vsub.f32 %v219_v7, %v243_v21  ;;  %v8993_v5 = vld [vmem:[%s13127_s1 + $0x150] ss:$24 sps:$4 sm:$0xff]   ;;  %v8110_v7 = vld [vmem:[%s13127_s1 + $0xa80] ss:$24 sps:$4 sm:$0xff]  }
  0xa0   : > { %2669 = vmatprep.subr.bf16.mxu1 %v8022_v28  ;;  %3056 = vmatprep.subr.bf16.mxu0 %v8025_v29  ;;  %v8083_v28 = vld [vmem:[%s13127_s1 + $0xbe0] ss:$24 sps:$4 sm:$0xff]   ;;  %v8088_v29 = vld [vmem:[%s13127_s1 + $0x904] ss:$24 sps:$4 sm:$0xff]   ;;  %v8997_v20 = vld [vmem:[%s13127_s1 + $0x1b0] ss:$24 sps:$4 sm:$0xff]  }
  0xa1   : > { %v8116_v21 = vld [vmem:[%s13127_s1 + $0xae0] ss:$24 sps:$4 sm:$0xff]  }
  0xa3   : > { %2670 = vmatpush1.bf16.msra.mxu1 %v8020_v30  ;;  %3057 = vmatpush1.bf16.msra.mxu0 %v8023_v31  ;;  %v9973_v30 = vpack.c.bf16 %v259_v27, %v251_v26  ;;  %v8086_v31 = vld [vmem:[%s13127_s1 + $0x900] ss:$24 sps:$4 sm:$0xff]   ;;  %v8119_v26 = vld [vmem:[%s13127_s1 + $0xb10] ss:$24 sps:$4 sm:$0xff]   ;;  %v8124_v27 = vld [vmem:[%s13127_s1 + $0xb44] ss:$24 sps:$4 sm:$0xff]  }
  0xa4   : > { %2671 = vmatprep.subr.bf16.mxu1 %v8028_v32  ;;  %3058 = vmatprep.subr.bf16.mxu0 %v8031_v33  ;;  %v8091_v32 = vld [vmem:[%s13127_s1 + $0x934] ss:$24 sps:$4 sm:$0xff]   ;;  %v8978_v33 = vld [vmem:[%s13127_s1 + $0x4] ss:$24 sps:$4 sm:$0xff]  }
  0xa7   : > { %2672 = vmatpush1.bf16.msra.mxu1 %v8026_v36  ;;  %3059 = vmatpush1.bf16.msra.mxu0 %v8029_v37  ;;  %v8979_v36 = vld [vmem:[%s13127_s1] ss:$24 sps:$4 sm:$0xff]   ;;  %v8089_v37 = vld [vmem:[%s13127_s1 + $0x930] ss:$24 sps:$4 sm:$0xff]  }
  0xa8   : > { %2673 = vmatprep.subr.bf16.mxu1 %v8034_v38  ;;  %3060 = vmatprep.subr.bf16.mxu0 %v8037_v39  ;;  %v8094_v38 = vld [vmem:[%s13127_s1 + $0x964] ss:$24 sps:$4 sm:$0xff]   ;;  %v8980_v39 = vld [vmem:[%s13127_s1 + $0x34] ss:$24 sps:$4 sm:$0xff]  }
  0xab   : > { %2674 = vmatpush1.bf16.msra.mxu1 %v8032_v40  ;;  %3061 = vmatpush1.bf16.msra.mxu0 %v8035_v41  ;;  %v8981_v40 = vld [vmem:[%s13127_s1 + $0x30] ss:$24 sps:$4 sm:$0xff]   ;;  %v8092_v41 = vld [vmem:[%s13127_s1 + $0x960] ss:$24 sps:$4 sm:$0xff]  }
  0xac   : > { %2675 = vmatprep.subr.bf16.mxu1 %v8040_v43  ;;  %3062 = vmatprep.subr.bf16.mxu0 %v8043_v44  ;;  %v8097_v43 = vld [vmem:[%s13127_s1 + $0x994] ss:$24 sps:$4 sm:$0xff]   ;;  %v8982_v44 = vld [vmem:[%s13127_s1 + $0x64] ss:$24 sps:$4 sm:$0xff]  }
  0xaf   : > { %2676 = vmatpush1.bf16.msra.mxu1 %v8038_v45  ;;  %3063 = vmatpush1.bf16.msra.mxu0 %v8041_v46  ;;  %v8983_v45 = vld [vmem:[%s13127_s1 + $0x60] ss:$24 sps:$4 sm:$0xff]   ;;  %v8095_v46 = vld [vmem:[%s13127_s1 + $0x990] ss:$24 sps:$4 sm:$0xff]  }
  0xb0   : > { %2677 = vmatprep.subr.bf16.mxu1 %v8046_v47  ;;  %3064 = vmatprep.subr.bf16.mxu0 %v8049_v48  ;;  %v8100_v47 = vld [vmem:[%s13127_s1 + $0x9c4] ss:$24 sps:$4 sm:$0xff]   ;;  %v8984_v48 = vld [vmem:[%s13127_s1 + $0x94] ss:$24 sps:$4 sm:$0xff]  }
  0xb3   : > { %2678 = vmatpush1.bf16.msra.mxu1 %v8044_v49  ;;  %3065 = vmatpush1.bf16.msra.mxu0 %v8047_v50  ;;  %v8985_v49 = vld [vmem:[%s13127_s1 + $0x90] ss:$24 sps:$4 sm:$0xff]   ;;  %v8098_v50 = vld [vmem:[%s13127_s1 + $0x9c0] ss:$24 sps:$4 sm:$0xff]  }
  0xb4   : > { %2679 = vmatprep.subr.bf16.mxu1 %v8052_v51  ;;  %3066 = vmatprep.subr.bf16.mxu0 %v8055_v53  ;;  %v8103_v51 = vld [vmem:[%s13127_s1 + $0x9f4] ss:$24 sps:$4 sm:$0xff]   ;;  %v8986_v53 = vld [vmem:[%s13127_s1 + $0xc4] ss:$24 sps:$4 sm:$0xff]  }
  0xb7   : > { %2680 = vmatpush1.bf16.msra.mxu1 %v8050_v54  ;;  %3067 = vmatpush1.bf16.msra.mxu0 %v8053_v55  ;;  %v8987_v54 = vld [vmem:[%s13127_s1 + $0xc0] ss:$24 sps:$4 sm:$0xff]   ;;  %v8101_v55 = vld [vmem:[%s13127_s1 + $0x9f0] ss:$24 sps:$4 sm:$0xff]  }
  0xb8   : > { %2681 = vmatprep.subr.bf16.mxu1 %v8058_v56  ;;  %3068 = vmatprep.subr.bf16.mxu0 %v8061_v57  ;;  %v8106_v56 = vld [vmem:[%s13127_s1 + $0xa24] ss:$24 sps:$4 sm:$0xff]   ;;  %v8988_v57 = vld [vmem:[%s13127_s1 + $0xf4] ss:$24 sps:$4 sm:$0xff]  }
  0xbb   : > { %2682 = vmatpush1.bf16.msra.mxu1 %v8056_v58  ;;  %3069 = vmatpush1.bf16.msra.mxu0 %v8059_v60  ;;  %v8989_v58 = vld [vmem:[%s13127_s1 + $0xf0] ss:$24 sps:$4 sm:$0xff]   ;;  %v8104_v60 = vld [vmem:[%s13127_s1 + $0xa20] ss:$24 sps:$4 sm:$0xff]  }
  0xbc   : > { %2683 = vmatprep.subr.bf16.mxu1 %v8064_v62  ;;  %3070 = vmatprep.subr.bf16.mxu0 %v8067_v63  ;;  %v8109_v62 = vld [vmem:[%s13127_s1 + $0xa54] ss:$24 sps:$4 sm:$0xff]   ;;  %v8990_v63 = vld [vmem:[%s13127_s1 + $0x124] ss:$24 sps:$4 sm:$0xff]  }
  0xbf   : > { %2684 = vmatpush1.bf16.msra.mxu1 %v8062_v0  ;;  %3071 = vmatpush1.bf16.msra.mxu0 %v8065_v1  ;;  %v8991_v0 = vld [vmem:[%s13127_s1 + $0x120] ss:$24 sps:$4 sm:$0xff]   ;;  %v8107_v1 = vld [vmem:[%s13127_s1 + $0xa50] ss:$24 sps:$4 sm:$0xff]  }
  0xc0   : > { %2685 = vmatprep.subr.bf16.mxu1 %v8070_v3  ;;  %3072 = vmatprep.subr.bf16.mxu0 %v8073_v4  ;;  %v8112_v3 = vld [vmem:[%s13127_s1 + $0xa84] ss:$24 sps:$4 sm:$0xff]   ;;  %v8992_v4 = vld [vmem:[%s13127_s1 + $0x154] ss:$24 sps:$4 sm:$0xff]  }
  0xc3   : > { %2686 = vmatpush1.bf16.msra.mxu1 %v8068_v9  ;;  %3073 = vmatpush1.bf16.msra.mxu0 %v8071_v10  ;;  %v8115_v9 = vld [vmem:[%s13127_s1 + $0xab4] ss:$24 sps:$4 sm:$0xff]   ;;  %v8994_v10 = vld [vmem:[%s13127_s1 + $0x184] ss:$24 sps:$4 sm:$0xff]  }
  0xc4   : > { %2687 = vmatprep.subr.bf16.mxu1 %v8076_v15  ;;  %3074 = vmatprep.subr.bf16.mxu0 %v8079_v16  ;;  %v8995_v15 = vld [vmem:[%s13127_s1 + $0x180] ss:$24 sps:$4 sm:$0xff]   ;;  %v8113_v16 = vld [vmem:[%s13127_s1 + $0xab0] ss:$24 sps:$4 sm:$0xff]  }
  0xc7   : > { %2688 = vmatpush1.bf16.msra.mxu1 %v8074_v17  ;;  %3075 = vmatpush1.bf16.msra.mxu0 %v8077_v19  ;;  %v8118_v17 = vld [vmem:[%s13127_s1 + $0xae4] ss:$24 sps:$4 sm:$0xff]   ;;  %v8996_v19 = vld [vmem:[%s13127_s1 + $0x1b4] ss:$24 sps:$4 sm:$0xff]  }
  0xc8   : > { %2689 = vmatprep.subr.bf16.mxu1 %v8082_v22  ;;  %3076 = vmatprep.subr.bf16.mxu0 %v8085_v23  ;;  %v8121_v22 = vld [vmem:[%s13127_s1 + $0xb14] ss:$24 sps:$4 sm:$0xff]   ;;  %v8998_v23 = vld [vmem:[%s13127_s1 + $0x1e4] ss:$24 sps:$4 sm:$0xff]  }
  0xcb   : > { %2690 = vmatpush1.bf16.msra.mxu1 %v8080_v25  ;;  %3077 = vmatpush1.bf16.msra.mxu0 %v8083_v28  ;;  %v8999_v25 = vld [vmem:[%s13127_s1 + $0x1e0] ss:$24 sps:$4 sm:$0xff]   ;;  %v9000_v28 = vld [vmem:[%s13127_s1 + $0x214] ss:$24 sps:$4 sm:$0xff]  }
  0xcc   : > { %2702 = vmatprep.subr.bf16.mxu1 %v8088_v29  ;;  %3089 = vmatprep.subr.bf16.mxu0 %v8978_v33  ;;  %v9001_v29 = vld [vmem:[%s13127_s1 + $0x210] ss:$24 sps:$4 sm:$0xff]   ;;  %v9002_v33 = vld [vmem:[%s13127_s1 + $0x244] ss:$24 sps:$4 sm:$0xff]  }
  0xce   : > { %2692 = vmatmul.mubr.bf16.vlgmr.msra.gmra.mrb[0].mxu1 %v9770_v61  ;;  %3079 = vmatmul.mubr.bf16.vlgmr.msra.gmra.mrb[0].mxu0 %v9973_v30 }
  0xcf   : > { %2703 = vmatpush1.bf16.msra.mxu1 %v8086_v31  ;;  %3090 = vmatpush1.bf16.msra.mxu0 %v8979_v36  ;;  %v8122_v31 = vld [vmem:[%s13127_s1 + $0xb40] ss:$24 sps:$4 sm:$0xff]  }
  0xd0   : > { %2704 = vmatprep.subr.bf16.mxu1 %v8091_v32  ;;  %3091 = vmatprep.subr.bf16.mxu0 %v8980_v39  ;;  %v8127_v32 = vld [vmem:[%s13127_s1 + $0xb74] ss:$24 sps:$4 sm:$0xff]   ;;  %v9003_v36 = vld [vmem:[%s13127_s1 + $0x240] ss:$24 sps:$4 sm:$0xff]  }
  0xd1   : > { %2734 = vmatprep.mubr.bf16.mxu1 %v9820_v24  ;;  %3121 = vmatprep.mubr.bf16.mxu0 %v9474_v52  ;;  %v9004_v39 = vld [vmem:[%s13127_s1 + $0x274] ss:$24 sps:$4 sm:$0xff]  }
  0xd3   : > { %2705 = vmatpush1.bf16.msra.mxu1 %v8089_v37  ;;  %3092 = vmatpush1.bf16.msra.mxu0 %v8981_v40  ;;  %v8125_v37 = vld [vmem:[%s13127_s1 + $0xb70] ss:$24 sps:$4 sm:$0xff]  }
  0xd4   : > { %2706 = vmatprep.subr.bf16.mxu1 %v8094_v38  ;;  %3093 = vmatprep.subr.bf16.mxu0 %v8982_v44  ;;  %v8130_v38 = vld [vmem:[%s13127_s1 + $0xba4] ss:$24 sps:$4 sm:$0xff]   ;;  %v9005_v40 = vld [vmem:[%s13127_s1 + $0x270] ss:$24 sps:$4 sm:$0xff]  }
  0xd5   : > { %v9006_v44 = vld [vmem:[%s13127_s1 + $0x2a4] ss:$24 sps:$4 sm:$0xff]  }
  0xd7   : > { %2707 = vmatpush1.bf16.msra.mxu1 %v8092_v41  ;;  %3094 = vmatpush1.bf16.msra.mxu0 %v8983_v45  ;;  %v8128_v41 = vld [vmem:[%s13127_s1 + $0xba0] ss:$24 sps:$4 sm:$0xff]  }
  0xd8   : > { %2708 = vmatprep.subr.bf16.mxu1 %v8097_v43  ;;  %3095 = vmatprep.subr.bf16.mxu0 %v8984_v48  ;;  %v8133_v43 = vld [vmem:[%s13127_s1 + $0xbd4] ss:$24 sps:$4 sm:$0xff]   ;;  %v9007_v45 = vld [vmem:[%s13127_s1 + $0x2a0] ss:$24 sps:$4 sm:$0xff]  }
  0xd9   : > { %v9008_v48 = vld [vmem:[%s13127_s1 + $0x2d4] ss:$24 sps:$4 sm:$0xff]  }
  0xdb   : > { %2709 = vmatpush1.bf16.msra.mxu1 %v8095_v46  ;;  %3096 = vmatpush1.bf16.msra.mxu0 %v8985_v49  ;;  %v8131_v46 = vld [vmem:[%s13127_s1 + $0xbd0] ss:$24 sps:$4 sm:$0xff]  }
  0xdc   : > { %2710 = vmatprep.subr.bf16.mxu1 %v8100_v47  ;;  %3097 = vmatprep.subr.bf16.mxu0 %v8986_v53  ;;  %v8136_v47 = vld [vmem:[%s13127_s1 + $0xc] ss:$24 sps:$4 sm:$0xff]   ;;  %v9009_v49 = vld [vmem:[%s13127_s1 + $0x2d0] ss:$24 sps:$4 sm:$0xff]  }
  0xdd   : > { %v9010_v53 = vld [vmem:[%s13127_s1 + $0x304] ss:$24 sps:$4 sm:$0xff]  }
  0xdf   : > { %2711 = vmatpush1.bf16.msra.mxu1 %v8098_v50  ;;  %3098 = vmatpush1.bf16.msra.mxu0 %v8987_v54  ;;  %v8134_v50 = vld [vmem:[%s13127_s1 + $0x8] ss:$24 sps:$4 sm:$0xff]  }
  0xe0   : > { %2712 = vmatprep.subr.bf16.mxu1 %v8103_v51  ;;  %3099 = vmatprep.subr.bf16.mxu0 %v8988_v57  ;;  %v8139_v51 = vld [vmem:[%s13127_s1 + $0x3c] ss:$24 sps:$4 sm:$0xff]   ;;  %v9011_v54 = vld [vmem:[%s13127_s1 + $0x300] ss:$24 sps:$4 sm:$0xff]  }
  0xe1   : > { %v9012_v57 = vld [vmem:[%s13127_s1 + $0x334] ss:$24 sps:$4 sm:$0xff]  }
  0xe3   : > { %2713 = vmatpush1.bf16.msra.mxu1 %v8101_v55  ;;  %3100 = vmatpush1.bf16.msra.mxu0 %v8989_v58  ;;  %v8137_v55 = vld [vmem:[%s13127_s1 + $0x38] ss:$24 sps:$4 sm:$0xff]  }
  0xe4   : > { %2714 = vmatprep.subr.bf16.mxu1 %v8106_v56  ;;  %3101 = vmatprep.subr.bf16.mxu0 %v8990_v63  ;;  %v8142_v56 = vld [vmem:[%s13127_s1 + $0x6c] ss:$24 sps:$4 sm:$0xff]   ;;  %v9013_v58 = vld [vmem:[%s13127_s1 + $0x330] ss:$24 sps:$4 sm:$0xff]  }
  0xe5   : > { %v9014_v63 = vld [vmem:[%s13127_s1 + $0x364] ss:$24 sps:$4 sm:$0xff]  }
  0xe7   : > { %2715 = vmatpush1.bf16.msra.mxu1 %v8104_v60  ;;  %3102 = vmatpush1.bf16.msra.mxu0 %v8991_v0  ;;  %v8140_v60 = vld [vmem:[%s13127_s1 + $0x68] ss:$24 sps:$4 sm:$0xff]  }
  0xe8   : > { %2716 = vmatprep.subr.bf16.mxu1 %v8109_v62  ;;  %3103 = vmatprep.subr.bf16.mxu0 %v8992_v4  ;;  %v8145_v62 = vld [vmem:[%s13127_s1 + $0x9c] ss:$24 sps:$4 sm:$0xff]   ;;  %v9015_v0 = vld [vmem:[%s13127_s1 + $0x360] ss:$24 sps:$4 sm:$0xff]  }
  0xe9   : > { %v9016_v4 = vld [vmem:[%s13127_s1 + $0x394] ss:$24 sps:$4 sm:$0xff]  }
  0xeb   : > { %2717 = vmatpush1.bf16.msra.mxu1 %v8107_v1  ;;  %3104 = vmatpush1.bf16.msra.mxu0 %v8993_v5  ;;  %v8143_v1 = vld [vmem:[%s13127_s1 + $0x98] ss:$24 sps:$4 sm:$0xff]  }
  0xec   : > { %2718 = vmatprep.subr.bf16.mxu1 %v8112_v3  ;;  %3105 = vmatprep.subr.bf16.mxu0 %v8994_v10  ;;  %v8148_v3 = vld [vmem:[%s13127_s1 + $0xcc] ss:$24 sps:$4 sm:$0xff]   ;;  %v9017_v5 = vld [vmem:[%s13127_s1 + $0x390] ss:$24 sps:$4 sm:$0xff]  }
  0xed   : > { %v9018_v10 = vld [vmem:[%s13127_s1 + $0x3c4] ss:$24 sps:$4 sm:$0xff]  }
  0xef   : > { %2719 = vmatpush1.bf16.msra.mxu1 %v8110_v7  ;;  %3106 = vmatpush1.bf16.msra.mxu0 %v8995_v15  ;;  %v8146_v7 = vld [vmem:[%s13127_s1 + $0xc8] ss:$24 sps:$4 sm:$0xff]  }
  0xf0   : > { %2720 = vmatprep.subr.bf16.mxu1 %v8115_v9  ;;  %3107 = vmatprep.subr.bf16.mxu0 %v8996_v19  ;;  %v8151_v9 = vld [vmem:[%s13127_s1 + $0xfc] ss:$24 sps:$4 sm:$0xff]   ;;  %v9019_v15 = vld [vmem:[%s13127_s1 + $0x3c0] ss:$24 sps:$4 sm:$0xff]  }
  0xf1   : > { %v9020_v19 = vld [vmem:[%s13127_s1 + $0x3f4] ss:$24 sps:$4 sm:$0xff]  }
  0xf3   : > { %2721 = vmatpush1.bf16.msra.mxu1 %v8113_v16  ;;  %3108 = vmatpush1.bf16.msra.mxu0 %v8997_v20  ;;  %v8149_v16 = vld [vmem:[%s13127_s1 + $0xf8] ss:$24 sps:$4 sm:$0xff]  }
  0xf4   : > { %2722 = vmatprep.subr.bf16.mxu1 %v8118_v17  ;;  %3109 = vmatprep.subr.bf16.mxu0 %v8998_v23  ;;  %v8154_v17 = vld [vmem:[%s13127_s1 + $0x12c] ss:$24 sps:$4 sm:$0xff]   ;;  %v9021_v20 = vld [vmem:[%s13127_s1 + $0x3f0] ss:$24 sps:$4 sm:$0xff]  }
  0xf5   : > { %v9022_v23 = vld [vmem:[%s13127_s1 + $0x424] ss:$24 sps:$4 sm:$0xff]  }
  0xf7   : > { %2723 = vmatpush1.bf16.msra.mxu1 %v8116_v21  ;;  %3110 = vmatpush1.bf16.msra.mxu0 %v8999_v25  ;;  %v8152_v21 = vld [vmem:[%s13127_s1 + $0x128] ss:$24 sps:$4 sm:$0xff]  }
  0xf8   : > { %2724 = vmatprep.subr.bf16.mxu1 %v8121_v22  ;;  %3111 = vmatprep.subr.bf16.mxu0 %v9000_v28  ;;  %v8157_v22 = vld [vmem:[%s13127_s1 + $0x15c] ss:$24 sps:$4 sm:$0xff]   ;;  %v9023_v25 = vld [vmem:[%s13127_s1 + $0x420] ss:$24 sps:$4 sm:$0xff]  }
  0xf9   : > { %v9024_v28 = vld [vmem:[%s13127_s1 + $0x454] ss:$24 sps:$4 sm:$0xff]  }
  0xfb   : > { %2725 = vmatpush1.bf16.msra.mxu1 %v8119_v26  ;;  %3112 = vmatpush1.bf16.msra.mxu0 %v9001_v29  ;;  %v8155_v26 = vld [vmem:[%s13127_s1 + $0x158] ss:$24 sps:$4 sm:$0xff]  }
  0xfc   : > { %2726 = vmatprep.subr.bf16.mxu1 %v8124_v27  ;;  %3113 = vmatprep.subr.bf16.mxu0 %v9002_v33  ;;  %v8160_v27 = vld [vmem:[%s13127_s1 + $0x18c] ss:$24 sps:$4 sm:$0xff]   ;;  %v9025_v29 = vld [vmem:[%s13127_s1 + $0x450] ss:$24 sps:$4 sm:$0xff]  }
  0xfd   : > { %v9026_v33 = vld [vmem:[%s13127_s1 + $0x484] ss:$24 sps:$4 sm:$0xff]  }
  0xff   : > { %2727 = vmatpush1.bf16.msra.mxu1 %v8122_v31  ;;  %3114 = vmatpush1.bf16.msra.mxu0 %v9003_v36  ;;  %v8158_v31 = vld [vmem:[%s13127_s1 + $0x188] ss:$24 sps:$4 sm:$0xff]  }
 0x100   : > { %2728 = vmatprep.subr.bf16.mxu1 %v8127_v32  ;;  %3115 = vmatprep.subr.bf16.mxu0 %v9004_v39  ;;  %v8163_v32 = vld [vmem:[%s13127_s1 + $0x1bc] ss:$24 sps:$4 sm:$0xff]   ;;  %v9027_v36 = vld [vmem:[%s13127_s1 + $0x480] ss:$24 sps:$4 sm:$0xff]  }
 0x101   : > { %v9028_v39 = vld [vmem:[%s13127_s1 + $0x4b4] ss:$24 sps:$4 sm:$0xff]  }
 0x103   : > { %2729 = vmatpush1.bf16.msra.mxu1 %v8125_v37  ;;  %3116 = vmatpush1.bf16.msra.mxu0 %v9005_v40  ;;  %v8161_v37 = vld [vmem:[%s13127_s1 + $0x1b8] ss:$24 sps:$4 sm:$0xff]  }
 0x104   : > { %2730 = vmatprep.subr.bf16.mxu1 %v8130_v38  ;;  %3117 = vmatprep.subr.bf16.mxu0 %v9006_v44  ;;  %v8166_v38 = vld [vmem:[%s13127_s1 + $0x1ec] ss:$24 sps:$4 sm:$0xff]   ;;  %v9029_v40 = vld [vmem:[%s13127_s1 + $0x4b0] ss:$24 sps:$4 sm:$0xff]  }
 0x105   : > { %v9030_v44 = vld [vmem:[%s13127_s1 + $0x4e4] ss:$24 sps:$4 sm:$0xff]  }
 0x107   : > { %2731 = vmatpush1.bf16.msra.mxu1 %v8128_v41  ;;  %3118 = vmatpush1.bf16.msra.mxu0 %v9007_v45  ;;  %v8164_v41 = vld [vmem:[%s13127_s1 + $0x1e8] ss:$24 sps:$4 sm:$0xff]  }
 0x108   : > { %2732 = vmatprep.subr.bf16.mxu1 %v8133_v43  ;;  %3119 = vmatprep.subr.bf16.mxu0 %v9008_v48  ;;  %v8169_v43 = vld [vmem:[%s13127_s1 + $0x21c] ss:$24 sps:$4 sm:$0xff]   ;;  %v9031_v45 = vld [vmem:[%s13127_s1 + $0x4e0] ss:$24 sps:$4 sm:$0xff]  }
 0x109   : > { %v9032_v48 = vld [vmem:[%s13127_s1 + $0x514] ss:$24 sps:$4 sm:$0xff]  }
 0x10b   : > { %2733 = vmatpush1.bf16.msra.mxu1 %v8131_v46  ;;  %3120 = vmatpush1.bf16.msra.mxu0 %v9009_v49  ;;  %v8167_v46 = vld [vmem:[%s13127_s1 + $0x218] ss:$24 sps:$4 sm:$0xff]  }
 0x10c   : > { %2745 = vmatprep.subr.bf16.mxu1 %v8136_v47  ;;  %3132 = vmatprep.subr.bf16.mxu0 %v9010_v53  ;;  %v8172_v47 = vld [vmem:[%s13127_s1 + $0x24c] ss:$24 sps:$4 sm:$0xff]   ;;  %v9033_v49 = vld [vmem:[%s13127_s1 + $0x510] ss:$24 sps:$4 sm:$0xff]  }
 0x10d   : > { %v9034_v53 = vld [vmem:[%s13127_s1 + $0x544] ss:$24 sps:$4 sm:$0xff]  }
 0x10e   : > { %2735 = vmatmul.mubr.bf16.vlgmr.msra.gmra.mrb[0].mxu1 %v9973_v30  ;;  %3122 = vmatmul.mubr.bf16.vlgmr.msra.gmra.mrb[4].mxu0 %v9508_v11 }
 0x10f   : > { %2746 = vmatpush1.bf16.msra.mxu1 %v8134_v50  ;;  %3133 = vmatpush1.bf16.msra.mxu0 %v9011_v54  ;;  %v8170_v50 = vld [vmem:[%s13127_s1 + $0x248] ss:$24 sps:$4 sm:$0xff]  }
 0x110   : > { %2747 = vmatprep.subr.bf16.mxu1 %v8139_v51  ;;  %3134 = vmatprep.subr.bf16.mxu0 %v9012_v57  ;;  %v8175_v51 = vld [vmem:[%s13127_s1 + $0x27c] ss:$24 sps:$4 sm:$0xff]   ;;  %v9035_v54 = vld [vmem:[%s13127_s1 + $0x540] ss:$24 sps:$4 sm:$0xff]  }
 0x111   : > { %2777 = vmatprep.mubr.bf16.mxu1 %v9500_v6  ;;  %3164 = vmatprep.mubr.bf16.mxu0 %v9486_v59  ;;  %v9036_v57 = vld [vmem:[%s13127_s1 + $0x574] ss:$24 sps:$4 sm:$0xff]  }
 0x113   : > { %2748 = vmatpush1.bf16.msra.mxu1 %v8137_v55  ;;  %3135 = vmatpush1.bf16.msra.mxu0 %v9013_v58  ;;  %v8173_v55 = vld [vmem:[%s13127_s1 + $0x278] ss:$24 sps:$4 sm:$0xff]  }
 0x114   : > { %2749 = vmatprep.subr.bf16.mxu1 %v8142_v56  ;;  %3136 = vmatprep.subr.bf16.mxu0 %v9014_v63  ;;  %v8178_v56 = vld [vmem:[%s13127_s1 + $0x2ac] ss:$24 sps:$4 sm:$0xff]   ;;  %v9037_v58 = vld [vmem:[%s13127_s1 + $0x570] ss:$24 sps:$4 sm:$0xff]  }
 0x115   : > { %v9038_v63 = vld [vmem:[%s13127_s1 + $0x5a4] ss:$24 sps:$4 sm:$0xff]  }
 0x117   : > { %2750 = vmatpush1.bf16.msra.mxu1 %v8140_v60  ;;  %3137 = vmatpush1.bf16.msra.mxu0 %v9015_v0  ;;  %v8176_v60 = vld [vmem:[%s13127_s1 + $0x2a8] ss:$24 sps:$4 sm:$0xff]  }
 0x118   : > { %2751 = vmatprep.subr.bf16.mxu1 %v8145_v62  ;;  %3138 = vmatprep.subr.bf16.mxu0 %v9016_v4  ;;  %v8181_v62 = vld [vmem:[%s13127_s1 + $0x2dc] ss:$24 sps:$4 sm:$0xff]   ;;  %v9039_v0 = vld [vmem:[%s13127_s1 + $0x5a0] ss:$24 sps:$4 sm:$0xff]  }
 0x119   : > { %v9040_v4 = vld [vmem:[%s13127_s1 + $0x5d4] ss:$24 sps:$4 sm:$0xff]  }
 0x11b   : > { %2752 = vmatpush1.bf16.msra.mxu1 %v8143_v1  ;;  %3139 = vmatpush1.bf16.msra.mxu0 %v9017_v5  ;;  %v8179_v1 = vld [vmem:[%s13127_s1 + $0x2d8] ss:$24 sps:$4 sm:$0xff]  }
 0x11c   : > { %2753 = vmatprep.subr.bf16.mxu1 %v8148_v3  ;;  %3140 = vmatprep.subr.bf16.mxu0 %v9018_v10  ;;  %v8184_v3 = vld [vmem:[%s13127_s1 + $0x30c] ss:$24 sps:$4 sm:$0xff]   ;;  %v9041_v5 = vld [vmem:[%s13127_s1 + $0x5d0] ss:$24 sps:$4 sm:$0xff]   ;;  %v8187_v10 = vld [vmem:[%s13127_s1 + $0x33c] ss:$24 sps:$4 sm:$0xff]  }
 0x11f   : > { %2754 = vmatpush1.bf16.msra.mxu1 %v8146_v7  ;;  %3141 = vmatpush1.bf16.msra.mxu0 %v9019_v15  ;;  %v8182_v7 = vld [vmem:[%s13127_s1 + $0x308] ss:$24 sps:$4 sm:$0xff]  }
 0x120   : > { %2755 = vmatprep.subr.bf16.mxu1 %v8151_v9  ;;  %3142 = vmatprep.subr.bf16.mxu0 %v9020_v19  ;;  %v9042_v9 = vld [vmem:[%s13127_s1 + $0x604] ss:$24 sps:$4 sm:$0xff]   ;;  %v9043_v15 = vld [vmem:[%s13127_s1 + $0x600] ss:$24 sps:$4 sm:$0xff]  }
 0x121   : > { %v8190_v19 = vld [vmem:[%s13127_s1 + $0x36c] ss:$24 sps:$4 sm:$0xff]  }
 0x123   : > { %2756 = vmatpush1.bf16.msra.mxu1 %v8149_v16  ;;  %3143 = vmatpush1.bf16.msra.mxu0 %v9021_v20  ;;  %v8185_v16 = vld [vmem:[%s13127_s1 + $0x338] ss:$24 sps:$4 sm:$0xff]  }
 0x124   : > { %2757 = vmatprep.subr.bf16.mxu1 %v8154_v17  ;;  %3144 = vmatprep.subr.bf16.mxu0 %v9022_v23  ;;  %v9044_v17 = vld [vmem:[%s13127_s1 + $0x634] ss:$24 sps:$4 sm:$0xff]   ;;  %v9045_v20 = vld [vmem:[%s13127_s1 + $0x630] ss:$24 sps:$4 sm:$0xff]   ;;  %v9047_v23 = vld [vmem:[%s13127_s1 + $0x660] ss:$24 sps:$4 sm:$0xff]  }
 0x127   : > { %2758 = vmatpush1.bf16.msra.mxu1 %v8152_v21  ;;  %3145 = vmatpush1.bf16.msra.mxu0 %v9023_v25  ;;  %v8188_v21 = vld [vmem:[%s13127_s1 + $0x368] ss:$24 sps:$4 sm:$0xff]   ;;  %v8191_v25 = vld [vmem:[%s13127_s1 + $0x398] ss:$24 sps:$4 sm:$0xff]  }
 0x128   : > { %2759 = vmatprep.subr.bf16.mxu1 %v8157_v22  ;;  %3146 = vmatprep.subr.bf16.mxu0 %v9024_v28  ;;  %v9046_v22 = vld [vmem:[%s13127_s1 + $0x664] ss:$24 sps:$4 sm:$0xff]   ;;  %v9049_v28 = vld [vmem:[%s13127_s1 + $0x690] ss:$24 sps:$4 sm:$0xff]  }
 0x12b   : > { %2760 = vmatpush1.bf16.msra.mxu1 %v8155_v26  ;;  %3147 = vmatpush1.bf16.msra.mxu0 %v9025_v29  ;;  %v9048_v26 = vld [vmem:[%s13127_s1 + $0x694] ss:$24 sps:$4 sm:$0xff]   ;;  %v8194_v29 = vld [vmem:[%s13127_s1 + $0x3c8] ss:$24 sps:$4 sm:$0xff]  }
 0x12c   : > { %2761 = vmatprep.subr.bf16.mxu1 %v8160_v27  ;;  %3148 = vmatprep.subr.bf16.mxu0 %v9026_v33  ;;  %v8196_v27 = vld [vmem:[%s13127_s1 + $0x3cc] ss:$24 sps:$4 sm:$0xff]   ;;  %v8197_v33 = vld [vmem:[%s13127_s1 + $0x3f8] ss:$24 sps:$4 sm:$0xff]  }
 0x12f   : > { %2762 = vmatpush1.bf16.msra.mxu1 %v8158_v31  ;;  %3149 = vmatpush1.bf16.msra.mxu0 %v9027_v36  ;;  %v9050_v31 = vld [vmem:[%s13127_s1 + $0x6c4] ss:$24 sps:$4 sm:$0xff]   ;;  %v9051_v36 = vld [vmem:[%s13127_s1 + $0x6c0] ss:$24 sps:$4 sm:$0xff]  }
 0x130   : > { %2763 = vmatprep.subr.bf16.mxu1 %v8163_v32  ;;  %3150 = vmatprep.subr.bf16.mxu0 %v9028_v39  ;;  %v8199_v32 = vld [vmem:[%s13127_s1 + $0x3fc] ss:$24 sps:$4 sm:$0xff]   ;;  %v8200_v39 = vld [vmem:[%s13127_s1 + $0x428] ss:$24 sps:$4 sm:$0xff]  }
 0x133   : > { %2764 = vmatpush1.bf16.msra.mxu1 %v8161_v37  ;;  %3151 = vmatpush1.bf16.msra.mxu0 %v9029_v40  ;;  %v9052_v37 = vld [vmem:[%s13127_s1 + $0x6f4] ss:$24 sps:$4 sm:$0xff]   ;;  %v9053_v40 = vld [vmem:[%s13127_s1 + $0x6f0] ss:$24 sps:$4 sm:$0xff]  }
 0x134   : > { %2765 = vmatprep.subr.bf16.mxu1 %v8166_v38  ;;  %3152 = vmatprep.subr.bf16.mxu0 %v9030_v44  ;;  %v8202_v38 = vld [vmem:[%s13127_s1 + $0x42c] ss:$24 sps:$4 sm:$0xff]   ;;  %v9055_v44 = vld [vmem:[%s13127_s1 + $0x720] ss:$24 sps:$4 sm:$0xff]  }
 0x137   : > { %2766 = vmatpush1.bf16.msra.mxu1 %v8164_v41  ;;  %3153 = vmatpush1.bf16.msra.mxu0 %v9031_v45  ;;  %v9054_v41 = vld [vmem:[%s13127_s1 + $0x724] ss:$24 sps:$4 sm:$0xff]   ;;  %v8203_v45 = vld [vmem:[%s13127_s1 + $0x458] ss:$24 sps:$4 sm:$0xff]  }
 0x138   : > { %2767 = vmatprep.subr.bf16.mxu1 %v8169_v43  ;;  %3154 = vmatprep.subr.bf16.mxu0 %v9032_v48  ;;  %v8205_v43 = vld [vmem:[%s13127_s1 + $0x45c] ss:$24 sps:$4 sm:$0xff]   ;;  %v9057_v48 = vld [vmem:[%s13127_s1 + $0x750] ss:$24 sps:$4 sm:$0xff]  }
 0x13b   : > { %2768 = vmatpush1.bf16.msra.mxu1 %v8167_v46  ;;  %3155 = vmatpush1.bf16.msra.mxu0 %v9033_v49  ;;  %v9056_v46 = vld [vmem:[%s13127_s1 + $0x754] ss:$24 sps:$4 sm:$0xff]   ;;  %v8206_v49 = vld [vmem:[%s13127_s1 + $0x488] ss:$24 sps:$4 sm:$0xff]  }
 0x13c   : > { %2769 = vmatprep.subr.bf16.mxu1 %v8172_v47  ;;  %3156 = vmatprep.subr.bf16.mxu0 %v9034_v53  ;;  %v8208_v47 = vld [vmem:[%s13127_s1 + $0x48c] ss:$24 sps:$4 sm:$0xff]   ;;  %v9059_v53 = vld [vmem:[%s13127_s1 + $0x780] ss:$24 sps:$4 sm:$0xff]  }
 0x13f   : > { %2770 = vmatpush1.bf16.msra.mxu1 %v8170_v50  ;;  %3157 = vmatpush1.bf16.msra.mxu0 %v9035_v54  ;;  %v9058_v50 = vld [vmem:[%s13127_s1 + $0x784] ss:$24 sps:$4 sm:$0xff]   ;;  %v8209_v54 = vld [vmem:[%s13127_s1 + $0x4b8] ss:$24 sps:$4 sm:$0xff]  }
 0x140   : > { %2771 = vmatprep.subr.bf16.mxu1 %v8175_v51  ;;  %3158 = vmatprep.subr.bf16.mxu0 %v9036_v57  ;;  %v8211_v51 = vld [vmem:[%s13127_s1 + $0x4bc] ss:$24 sps:$4 sm:$0xff]   ;;  %v9061_v57 = vld [vmem:[%s13127_s1 + $0x7b0] ss:$24 sps:$4 sm:$0xff]  }
 0x143   : > { %2772 = vmatpush1.bf16.msra.mxu1 %v8173_v55  ;;  %3159 = vmatpush1.bf16.msra.mxu0 %v9037_v58  ;;  %v9060_v55 = vld [vmem:[%s13127_s1 + $0x7b4] ss:$24 sps:$4 sm:$0xff]   ;;  %v8212_v58 = vld [vmem:[%s13127_s1 + $0x4e8] ss:$24 sps:$4 sm:$0xff]  }
 0x144   : > { %2773 = vmatprep.subr.bf16.mxu1 %v8178_v56  ;;  %3160 = vmatprep.subr.bf16.mxu0 %v9038_v63  ;;  %v8214_v56 = vld [vmem:[%s13127_s1 + $0x4ec] ss:$24 sps:$4 sm:$0xff]   ;;  %v9063_v63 = vld [vmem:[%s13127_s1 + $0x7e0] ss:$24 sps:$4 sm:$0xff]  }
 0x147   : > { %2774 = vmatpush1.bf16.msra.mxu1 %v8176_v60  ;;  %3161 = vmatpush1.bf16.msra.mxu0 %v9039_v0  ;;  %v9062_v60 = vld [vmem:[%s13127_s1 + $0x7e4] ss:$24 sps:$4 sm:$0xff]   ;;  %v8215_v0 = vld [vmem:[%s13127_s1 + $0x518] ss:$24 sps:$4 sm:$0xff]  }
 0x148   : > { %2775 = vmatprep.subr.bf16.mxu1 %v8181_v62  ;;  %3162 = vmatprep.subr.bf16.mxu0 %v9040_v4  ;;  %v8217_v62 = vld [vmem:[%s13127_s1 + $0x51c] ss:$24 sps:$4 sm:$0xff]   ;;  %v9065_v4 = vld [vmem:[%s13127_s1 + $0x810] ss:$24 sps:$4 sm:$0xff]  }
 0x14b   : > { %2776 = vmatpush1.bf16.msra.mxu1 %v8179_v1  ;;  %3163 = vmatpush1.bf16.msra.mxu0 %v9041_v5  ;;  %v9064_v1 = vld [vmem:[%s13127_s1 + $0x814] ss:$24 sps:$4 sm:$0xff]   ;;  %v8218_v5 = vld [vmem:[%s13127_s1 + $0x548] ss:$24 sps:$4 sm:$0xff]  }
 0x14c   : > { %2788 = vmatprep.subr.bf16.mxu1 %v8184_v3  ;;  %3175 = vmatprep.subr.bf16.mxu0 %v9042_v9  ;;  %v8220_v3 = vld [vmem:[%s13127_s1 + $0x54c] ss:$24 sps:$4 sm:$0xff]   ;;  %v8223_v9 = vld [vmem:[%s13127_s1 + $0x57c] ss:$24 sps:$4 sm:$0xff]  }
 0x14e   : > { %2778 = vmatmul.mubr.bf16.vlgmr.msra.gmra.mrb[4].mxu1 %v9556_v34  ;;  %3165 = vmatmul.mubr.bf16.vlgmr.msra.gmra.mrb[4].mxu0 %v9510_v12 }
 0x14f   : > { %2789 = vmatpush1.bf16.msra.mxu1 %v8182_v7  ;;  %3176 = vmatpush1.bf16.msra.mxu0 %v9043_v15  ;;  %v9066_v7 = vld [vmem:[%s13127_s1 + $0x844] ss:$24 sps:$4 sm:$0xff]   ;;  %v8221_v15 = vld [vmem:[%s13127_s1 + $0x578] ss:$24 sps:$4 sm:$0xff]  }
 0x150   : > { %2790 = vmatprep.subr.bf16.mxu1 %v8187_v10  ;;  %3177 = vmatprep.subr.bf16.mxu0 %v9044_v17  ;;  %v9067_v10 = vld [vmem:[%s13127_s1 + $0x840] ss:$24 sps:$4 sm:$0xff]   ;;  %v8226_v17 = vld [vmem:[%s13127_s1 + $0x5ac] ss:$24 sps:$4 sm:$0xff]  }
 0x151   : > { %2820 = vmatprep.mubr.bf16.mxu1 %v9515_v14  ;;  %3207 = vmatprep.mubr.bf16.mxu0 %v9643_v2  ;;  %v8193_v14 = vld [vmem:[%s13127_s1 + $0x39c] ss:$24 sps:$4 sm:$0xff]  }
 0x153   : > { %2791 = vmatpush1.bf16.msra.mxu1 %v8185_v16  ;;  %3178 = vmatpush1.bf16.msra.mxu0 %v9045_v20  ;;  %v9068_v16 = vld [vmem:[%s13127_s1 + $0x874] ss:$24 sps:$4 sm:$0xff]   ;;  %v8224_v20 = vld [vmem:[%s13127_s1 + $0x5a8] ss:$24 sps:$4 sm:$0xff]  }
 0x154   : > { %2792 = vmatprep.subr.bf16.mxu1 %v8190_v19  ;;  %3179 = vmatprep.subr.bf16.mxu0 %v9046_v22  ;;  %v9069_v19 = vld [vmem:[%s13127_s1 + $0x870] ss:$24 sps:$4 sm:$0xff]   ;;  %v8229_v22 = vld [vmem:[%s13127_s1 + $0x5dc] ss:$24 sps:$4 sm:$0xff]  }
 0x157   : > { %2793 = vmatpush1.bf16.msra.mxu1 %v8188_v21  ;;  %3180 = vmatpush1.bf16.msra.mxu0 %v9047_v23  ;;  %v9070_v21 = vld [vmem:[%s13127_s1 + $0x8a4] ss:$24 sps:$4 sm:$0xff]   ;;  %v8227_v23 = vld [vmem:[%s13127_s1 + $0x5d8] ss:$24 sps:$4 sm:$0xff]  }
 0x158   : > { %2794 = vmatprep.subr.bf16.mxu1 %v8193_v14  ;;  %3181 = vmatprep.subr.bf16.mxu0 %v9048_v26  ;;  %v9071_v14 = vld [vmem:[%s13127_s1 + $0x8a0] ss:$24 sps:$4 sm:$0xff]   ;;  %v8232_v26 = vld [vmem:[%s13127_s1 + $0x60c] ss:$24 sps:$4 sm:$0xff]  }
 0x15b   : > { %2795 = vmatpush1.bf16.msra.mxu1 %v8191_v25  ;;  %3182 = vmatpush1.bf16.msra.mxu0 %v9049_v28  ;;  %v9072_v25 = vld [vmem:[%s13127_s1 + $0x8d4] ss:$24 sps:$4 sm:$0xff]  }
 0x15c   : > { %2796 = vmatprep.subr.bf16.mxu1 %v8196_v27  ;;  %3183 = vmatprep.subr.bf16.mxu0 %v9050_v31  ;;  %v8230_v27 = vld [vmem:[%s13127_s1 + $0x608] ss:$24 sps:$4 sm:$0xff]   ;;  %v8235_v28 = vld [vmem:[%s13127_s1 + $0x63c] ss:$24 sps:$4 sm:$0xff]  }
 0x15d   : > { %v9074_v31 = vld [vmem:[%s13127_s1 + $0x904] ss:$24 sps:$4 sm:$0xff]  }
 0x15f   : > { %2797 = vmatpush1.bf16.msra.mxu1 %v8194_v29  ;;  %3184 = vmatpush1.bf16.msra.mxu0 %v9051_v36  ;;  %v9073_v29 = vld [vmem:[%s13127_s1 + $0x8d0] ss:$24 sps:$4 sm:$0xff]   ;;  %v9075_v36 = vld [vmem:[%s13127_s1 + $0x900] ss:$24 sps:$4 sm:$0xff]  }
 0x160   : > { %2798 = vmatprep.subr.bf16.mxu1 %v8199_v32  ;;  %3185 = vmatprep.subr.bf16.mxu0 %v9052_v37  ;;  %v10575_v32 = vld [vmem:[%s13127_s1 + $0x638] ss:$24 sps:$4 sm:$0xff]   ;;  %v9076_v37 = vld [vmem:[%s13127_s1 + $0x934] ss:$24 sps:$4 sm:$0xff]  }
 0x163   : > { %2799 = vmatpush1.bf16.msra.mxu1 %v8197_v33  ;;  %3186 = vmatpush1.bf16.msra.mxu0 %v9053_v40  ;;  %v10582_v33 = vld [vmem:[%s13127_s1 + $0x66c] ss:$24 sps:$4 sm:$0xff]   ;;  %v10613_v40 = vld [vmem:[%s13127_s1 + $0x698] ss:$24 sps:$4 sm:$0xff]  }
 0x164   : > { %2800 = vmatprep.subr.bf16.mxu1 %v8202_v38  ;;  %3187 = vmatprep.subr.bf16.mxu0 %v9054_v41  ;;  %v10600_v38 = vld [vmem:[%s13127_s1 + $0x69c] ss:$24 sps:$4 sm:$0xff]   ;;  %v10618_v41 = vld [vmem:[%s13127_s1 + $0x6cc] ss:$24 sps:$4 sm:$0xff]  }
 0x167   : > { %2801 = vmatpush1.bf16.msra.mxu1 %v8200_v39  ;;  %3188 = vmatpush1.bf16.msra.mxu0 %v9055_v44  ;;  %v9077_v39 = vld [vmem:[%s13127_s1 + $0x930] ss:$24 sps:$4 sm:$0xff]   ;;  %v9080_v44 = vld [vmem:[%s13127_s1 + $0x994] ss:$24 sps:$4 sm:$0xff]  }
 0x168   : > { %2802 = vmatprep.subr.bf16.mxu1 %v8205_v43  ;;  %3189 = vmatprep.subr.bf16.mxu0 %v9056_v46  ;;  %v9079_v43 = vld [vmem:[%s13127_s1 + $0x960] ss:$24 sps:$4 sm:$0xff]   ;;  %v10636_v46 = vld [vmem:[%s13127_s1 + $0x6fc] ss:$24 sps:$4 sm:$0xff]  }
 0x16b   : > { %2803 = vmatpush1.bf16.msra.mxu1 %v8203_v45  ;;  %3190 = vmatpush1.bf16.msra.mxu0 %v9057_v48  ;;  %v10631_v45 = vld [vmem:[%s13127_s1 + $0x6c8] ss:$24 sps:$4 sm:$0xff]   ;;  %v9082_v48 = vld [vmem:[%s13127_s1 + $0x9c4] ss:$24 sps:$4 sm:$0xff]  }
 0x16c   : > { %2804 = vmatprep.subr.bf16.mxu1 %v8208_v47  ;;  %3191 = vmatprep.subr.bf16.mxu0 %v9058_v50  ;;  %v9081_v47 = vld [vmem:[%s13127_s1 + $0x990] ss:$24 sps:$4 sm:$0xff]   ;;  %v9083_v50 = vld [vmem:[%s13127_s1 + $0x9c0] ss:$24 sps:$4 sm:$0xff]  }
 0x16f   : > { %2805 = vmatpush1.bf16.msra.mxu1 %v8206_v49  ;;  %3192 = vmatpush1.bf16.msra.mxu0 %v9059_v53  ;;  %v10649_v49 = vld [vmem:[%s13127_s1 + $0x6f8] ss:$24 sps:$4 sm:$0xff]   ;;  %v10662_v53 = vld [vmem:[%s13127_s1 + $0x72c] ss:$24 sps:$4 sm:$0xff]  }
 0x170   : > { %2806 = vmatprep.subr.bf16.mxu1 %v8211_v51  ;;  %3193 = vmatprep.subr.bf16.mxu0 %v9060_v55  ;;  %v9084_v51 = vld [vmem:[%s13127_s1 + $0x9f4] ss:$24 sps:$4 sm:$0xff]   ;;  %v10671_v55 = vld [vmem:[%s13127_s1 + $0x728] ss:$24 sps:$4 sm:$0xff]  }
 0x173   : > { %2807 = vmatpush1.bf16.msra.mxu1 %v8209_v54  ;;  %3194 = vmatpush1.bf16.msra.mxu0 %v9061_v57  ;;  %v9085_v54 = vld [vmem:[%s13127_s1 + $0x9f0] ss:$24 sps:$4 sm:$0xff]   ;;  %v10680_v57 = vld [vmem:[%s13127_s1 + $0x75c] ss:$24 sps:$4 sm:$0xff]  }
 0x174   : > { %2808 = vmatprep.subr.bf16.mxu1 %v8214_v56  ;;  %3195 = vmatprep.subr.bf16.mxu0 %v9062_v60  ;;  %v9086_v56 = vld [vmem:[%s13127_s1 + $0xa24] ss:$24 sps:$4 sm:$0xff]   ;;  %v10689_v60 = vld [vmem:[%s13127_s1 + $0x758] ss:$24 sps:$4 sm:$0xff]  }
 0x177   : > { %2809 = vmatpush1.bf16.msra.mxu1 %v8212_v58  ;;  %3196 = vmatpush1.bf16.msra.mxu0 %v9063_v63  ;;  %v9087_v58 = vld [vmem:[%s13127_s1 + $0xa20] ss:$24 sps:$4 sm:$0xff]   ;;  %v10698_v63 = vld [vmem:[%s13127_s1 + $0x78c] ss:$24 sps:$4 sm:$0xff]  }
 0x178   : > { %2810 = vmatprep.subr.bf16.mxu1 %v8217_v62  ;;  %3197 = vmatprep.subr.bf16.mxu0 %v9064_v1  ;;  %v9088_v62 = vld [vmem:[%s13127_s1 + $0xa54] ss:$24 sps:$4 sm:$0xff]   ;;  %v10707_v1 = vld [vmem:[%s13127_s1 + $0x788] ss:$24 sps:$4 sm:$0xff]  }
 0x17b   : > { %2811 = vmatpush1.bf16.msra.mxu1 %v8215_v0  ;;  %3198 = vmatpush1.bf16.msra.mxu0 %v9065_v4  ;;  %v9089_v0 = vld [vmem:[%s13127_s1 + $0xa50] ss:$24 sps:$4 sm:$0xff]   ;;  %v10716_v4 = vld [vmem:[%s13127_s1 + $0x7bc] ss:$24 sps:$4 sm:$0xff]  }
 0x17c   : > { %2812 = vmatprep.subr.bf16.mxu1 %v8220_v3  ;;  %3199 = vmatprep.subr.bf16.mxu0 %v9066_v7  ;;  %v9090_v3 = vld [vmem:[%s13127_s1 + $0xa84] ss:$24 sps:$4 sm:$0xff]   ;;  %v10725_v7 = vld [vmem:[%s13127_s1 + $0x7b8] ss:$24 sps:$4 sm:$0xff]  }
 0x17f   : > { %2813 = vmatpush1.bf16.msra.mxu1 %v8218_v5  ;;  %3200 = vmatpush1.bf16.msra.mxu0 %v9067_v10  ;;  %v9091_v5 = vld [vmem:[%s13127_s1 + $0xa80] ss:$24 sps:$4 sm:$0xff]   ;;  %v10734_v10 = vld [vmem:[%s13127_s1 + $0x7ec] ss:$24 sps:$4 sm:$0xff]  }
 0x180   : > { %2814 = vmatprep.subr.bf16.mxu1 %v8223_v9  ;;  %3201 = vmatprep.subr.bf16.mxu0 %v9068_v16  ;;  %v9092_v9 = vld [vmem:[%s13127_s1 + $0xab4] ss:$24 sps:$4 sm:$0xff]   ;;  %v10743_v16 = vld [vmem:[%s13127_s1 + $0x7e8] ss:$24 sps:$4 sm:$0xff]  }
 0x181   : > { %13173 = vst [vmem:[#allocation2_spill] sm:$0xff] %v10743_v16 }
 0x183   : > { %2815 = vmatpush1.bf16.msra.mxu1 %v8221_v15  ;;  %3202 = vmatpush1.bf16.msra.mxu0 %v9069_v19  ;;  %v9093_v15 = vld [vmem:[%s13127_s1 + $0xab0] ss:$24 sps:$4 sm:$0xff]   ;;  %v10752_v19 = vld [vmem:[%s13127_s1 + $0x81c] ss:$24 sps:$4 sm:$0xff]  }
 0x184   : > { %2816 = vmatprep.subr.bf16.mxu1 %v8226_v17  ;;  %3203 = vmatprep.subr.bf16.mxu0 %v9070_v21  ;;  %v9094_v17 = vld [vmem:[%s13127_s1 + $0xae4] ss:$24 sps:$4 sm:$0xff]   ;;  %13174 = vst [vmem:[#allocation3_spill] sm:$0xff] %v10752_v19  ;;  %v10761_v21 = vld [vmem:[%s13127_s1 + $0x818] ss:$24 sps:$4 sm:$0xff]  }
 0x185   : > { %13175 = vst [vmem:[#allocation4_spill] sm:$0xff] %v10761_v21 }
 0x187   : > { %2817 = vmatpush1.bf16.msra.mxu1 %v8224_v20  ;;  %3204 = vmatpush1.bf16.msra.mxu0 %v9071_v14  ;;  %v9095_v20 = vld [vmem:[%s13127_s1 + $0xae0] ss:$24 sps:$4 sm:$0xff]   ;;  %v10770_v14 = vld [vmem:[%s13127_s1 + $0x84c] ss:$24 sps:$4 sm:$0xff]  }
 0x188   : > { %2818 = vmatprep.subr.bf16.mxu1 %v8229_v22  ;;  %3205 = vmatprep.subr.bf16.mxu0 %v9072_v25  ;;  %v9096_v22 = vld [vmem:[%s13127_s1 + $0xb14] ss:$24 sps:$4 sm:$0xff]   ;;  %13176 = vst [vmem:[#allocation5_spill] sm:$0xff] %v10770_v14  ;;  %v10779_v25 = vld [vmem:[%s13127_s1 + $0x848] ss:$24 sps:$4 sm:$0xff]  }
 0x189   : > { %13177 = vst [vmem:[#allocation6_spill] sm:$0xff] %v10779_v25 }
 0x18b   : > { %2819 = vmatpush1.bf16.msra.mxu1 %v8227_v23  ;;  %3206 = vmatpush1.bf16.msra.mxu0 %v9073_v29  ;;  %v9097_v23 = vld [vmem:[%s13127_s1 + $0xb10] ss:$24 sps:$4 sm:$0xff]  }
 0x18c   : > { %2831 = vmatprep.subr.bf16.mxu1 %v8232_v26  ;;  %3218 = vmatprep.subr.bf16.mxu0 %v9074_v31  ;;  %v9098_v26 = vld [vmem:[%s13127_s1 + $0xb44] ss:$24 sps:$4 sm:$0xff]   ;;  %v10797_v29 = vld [vmem:[%s13127_s1 + $0x878] ss:$24 sps:$4 sm:$0xff]   ;;  %v9100_v31 = vld [vmem:[%s13127_s1 + $0xb74] ss:$24 sps:$4 sm:$0xff]  }
 0x18d   : > { %13179 = vst [vmem:[#allocation8_spill] sm:$0xff] %v10797_v29 }
 0x18e   : > { %2821 = vmatmul.mubr.bf16.vlgmr.msra.gmra.mrb[4].mxu1 %v9558_v35  ;;  %3208 = vmatmul.mubr.bf16.vlgmr.msra.gmra.mrb[4].mxu0 %v9730_v42  ;;  %v10593_v35 = vld [vmem:[%s13127_s1 + $0x668] ss:$24 sps:$4 sm:$0xff]  }
 0x18f   : > { %2832 = vmatpush1.bf16.msra.mxu1 %v8230_v27  ;;  %3219 = vmatpush1.bf16.msra.mxu0 %v9075_v36  ;;  %v10788_v27 = vld [vmem:[%s13127_s1 + $0x87c] ss:$24 sps:$4 sm:$0xff]   ;;  %v10806_v36 = vld [vmem:[%s13127_s1 + $0x8ac] ss:$24 sps:$4 sm:$0xff]  }
 0x190   : > { %2833 = vmatprep.subr.bf16.mxu1 %v8235_v28  ;;  %3220 = vmatprep.subr.bf16.mxu0 %v9076_v37  ;;  %13178 = vst [vmem:[#allocation7_spill] sm:$0xff] %v10788_v27  ;;  %v9099_v28 = vld [vmem:[%s13127_s1 + $0xb40] ss:$24 sps:$4 sm:$0xff]   ;;  %13180 = vst [vmem:[#allocation9_spill] sm:$0xff] %v10806_v36  ;;  %v9101_v37 = vld [vmem:[%s13127_s1 + $0xb70] ss:$24 sps:$4 sm:$0xff]  }
 0x191   : > { %2863 = vmatprep.mubr.bf16.mxu1 %v9668_v18  ;;  %3250 = vmatprep.mubr.bf16.mxu0 %v9795_v8  ;;  %v9078_v18 = vld [vmem:[%s13127_s1 + $0x964] ss:$24 sps:$4 sm:$0xff]  }
 0x193   : > { %2834 = vmatpush1.bf16.msra.mxu1 %v10575_v32  ;;  %3221 = vmatpush1.bf16.msra.mxu0 %v9077_v39  ;;  %v10815_v39 = vld [vmem:[%s13127_s1 + $0x8a8] ss:$24 sps:$4 sm:$0xff]  }
 0x194   : > { %2835 = vmatprep.subr.bf16.mxu1 %v10582_v33  ;;  %3222 = vmatprep.subr.bf16.mxu0 %v9078_v18  ;;  %13181 = vst [vmem:[#allocation10_spill] sm:$0xff] %v10815_v39  ;;  %v9102_v18 = vld [vmem:[%s13127_s1 + $0xba4] ss:$24 sps:$4 sm:$0xff]  }
 0x197   : > { %2836 = vmatpush1.bf16.msra.mxu1 %v10593_v35  ;;  %3223 = vmatpush1.bf16.msra.mxu0 %v9079_v43  ;;  %v10824_v43 = vld [vmem:[%s13127_s1 + $0x8dc] ss:$24 sps:$4 sm:$0xff]  }
 0x198   : > { %2837 = vmatprep.subr.bf16.mxu1 %v10600_v38  ;;  %3224 = vmatprep.subr.bf16.mxu0 %v9080_v44  ;;  %13182 = vst [vmem:[#allocation11_spill] sm:$0xff] %v10824_v43  ;;  %v9103_v44 = vld [vmem:[%s13127_s1 + $0xba0] ss:$24 sps:$4 sm:$0xff]  }
 0x19b   : > { %2838 = vmatpush1.bf16.msra.mxu1 %v10613_v40  ;;  %3225 = vmatpush1.bf16.msra.mxu0 %v9081_v47  ;;  %v10833_v47 = vld [vmem:[%s13127_s1 + $0x8d8] ss:$24 sps:$4 sm:$0xff]  }
 0x19c   : > { %2839 = vmatprep.subr.bf16.mxu1 %v10618_v41  ;;  %3226 = vmatprep.subr.bf16.mxu0 %v9082_v48  ;;  %13183 = vst [vmem:[#allocation12_spill] sm:$0xff] %v10833_v47  ;;  %v9104_v48 = vld [vmem:[%s13127_s1 + $0xbd4] ss:$24 sps:$4 sm:$0xff]  }
 0x19f   : > { %2840 = vmatpush1.bf16.msra.mxu1 %v10631_v45  ;;  %3227 = vmatpush1.bf16.msra.mxu0 %v9083_v50  ;;  %v10842_v50 = vld [vmem:[%s13127_s1 + $0x90c] ss:$24 sps:$4 sm:$0xff]  }
 0x1a0   : > { %2841 = vmatprep.subr.bf16.mxu1 %v10636_v46  ;;  %3228 = vmatprep.subr.bf16.mxu0 %v9084_v51  ;;  %13184 = vst [vmem:[#allocation13_spill] sm:$0xff] %v10842_v50  ;;  %v10847_v51 = vld [vmem:[%s13127_s1 + $0x14] ss:$24 sps:$4 sm:$0xff]  }
 0x1a3   : > { %2842 = vmatpush1.bf16.msra.mxu1 %v10649_v49  ;;  %3229 = vmatpush1.bf16.msra.mxu0 %v9085_v54  ;;  %v9105_v54 = vld [vmem:[%s13127_s1 + $0xbd0] ss:$24 sps:$4 sm:$0xff]  }
 0x1a4   : > { %2843 = vmatprep.subr.bf16.mxu1 %v10662_v53  ;;  %3230 = vmatprep.subr.bf16.mxu0 %v9086_v56  ;;  %v10856_v56 = vld [vmem:[%s13127_s1 + $0x908] ss:$24 sps:$4 sm:$0xff]  }
 0x1a5   : > { %13185 = vst [vmem:[#allocation14_spill] sm:$0xff] %v10856_v56 }
 0x1a7   : > { %2844 = vmatpush1.bf16.msra.mxu1 %v10671_v55  ;;  %3231 = vmatpush1.bf16.msra.mxu0 %v9087_v58  ;;  %v10861_v58 = vld [vmem:[%s13127_s1 + $0x10] ss:$24 sps:$4 sm:$0xff]  }
 0x1a8   : > { %2845 = vmatprep.subr.bf16.mxu1 %v10680_v57  ;;  %3232 = vmatprep.subr.bf16.mxu0 %v9088_v62  ;;  %v10868_v62 = vld [vmem:[%s13127_s1 + $0x93c] ss:$24 sps:$4 sm:$0xff]  }
 0x1a9   : > { %13186 = vst [vmem:[#allocation15_spill] sm:$0xff] %v10868_v62 }
 0x1ab   : > { %2846 = vmatpush1.bf16.msra.mxu1 %v10689_v60  ;;  %3233 = vmatpush1.bf16.msra.mxu0 %v9089_v0  ;;  %v10873_v0 = vld [vmem:[%s13127_s1 + $0x44] ss:$24 sps:$4 sm:$0xff]  }
 0x1ac   : > { %2847 = vmatprep.subr.bf16.mxu1 %v10698_v63  ;;  %3234 = vmatprep.subr.bf16.mxu0 %v9090_v3  ;;  %v10882_v3 = vld [vmem:[%s13127_s1 + $0x938] ss:$24 sps:$4 sm:$0xff]  }
 0x1ad   : > { %13187 = vst [vmem:[#allocation16_spill] sm:$0xff] %v10882_v3 }
 0x1af   : > { %2848 = vmatpush1.bf16.msra.mxu1 %v10707_v1  ;;  %3235 = vmatpush1.bf16.msra.mxu0 %v9091_v5  ;;  %v10887_v5 = vld [vmem:[%s13127_s1 + $0x40] ss:$24 sps:$4 sm:$0xff]  }
 0x1b0   : > { %2849 = vmatprep.subr.bf16.mxu1 %v10716_v4  ;;  %3236 = vmatprep.subr.bf16.mxu0 %v9092_v9  ;;  %v10899_v9 = vld [vmem:[%s13127_s1 + $0x74] ss:$24 sps:$4 sm:$0xff]  }
 0x1b3   : > { %2850 = vmatpush1.bf16.msra.mxu1 %v10725_v7  ;;  %3237 = vmatpush1.bf16.msra.mxu0 %v9093_v15  ;;  %v10908_v15 = vld [vmem:[%s13127_s1 + $0x968] ss:$24 sps:$4 sm:$0xff]  }
 0x1b4   : > { %2851 = vmatprep.subr.bf16.mxu1 %v10734_v10  ;;  %3238 = vmatprep.subr.bf16.mxu0 %v9094_v17  ;;  %13189 = vst [vmem:[#allocation18_spill] sm:$0xff] %v10908_v15  ;;  %v10913_v17 = vld [vmem:[%s13127_s1 + $0x70] ss:$24 sps:$4 sm:$0xff]  }
 0x1b7   : > { %2852 = vmatpush1.bf16.msra.mxu1 %v10743_v16  ;;  %3239 = vmatpush1.bf16.msra.mxu0 %v9095_v20  ;;  %v10925_v20 = vld [vmem:[%s13127_s1 + $0xa4] ss:$24 sps:$4 sm:$0xff]   ;;  %v11233_v16 = vld [vmem:[%s13127_s1 + $0x2e0] ss:$24 sps:$4 sm:$0xff]  }
 0x1b8   : > { %2853 = vmatprep.subr.bf16.mxu1 %v10752_v19  ;;  %3240 = vmatprep.subr.bf16.mxu0 %v9096_v22  ;;  %v10932_v22 = vld [vmem:[%s13127_s1 + $0x998] ss:$24 sps:$4 sm:$0xff]   ;;  %v11221_v19 = vld [vmem:[%s13127_s1 + $0x2e4] ss:$24 sps:$4 sm:$0xff]  }
 0x1b9   : > { %13191 = vst [vmem:[#allocation20_spill] sm:$0xff] %v10932_v22 }
 0x1bb   : > { %2854 = vmatpush1.bf16.msra.mxu1 %v10761_v21  ;;  %3241 = vmatpush1.bf16.msra.mxu0 %v9097_v23  ;;  %v10937_v23 = vld [vmem:[%s13127_s1 + $0xa0] ss:$24 sps:$4 sm:$0xff]   ;;  %v11209_v21 = vld [vmem:[%s13127_s1 + $0x2b0] ss:$24 sps:$4 sm:$0xff]  }
 0x1bc   : > { %2855 = vmatprep.subr.bf16.mxu1 %v10770_v14  ;;  %3242 = vmatprep.subr.bf16.mxu0 %v9098_v26  ;;  %v10944_v26 = vld [vmem:[%s13127_s1 + $0x9cc] ss:$24 sps:$4 sm:$0xff]  }
 0x1bd   : > { %13192 = vst [vmem:[#allocation21_spill] sm:$0xff] %v10944_v26  ;;  %v11197_v14 = vld [vmem:[%s13127_s1 + $0x2b4] ss:$24 sps:$4 sm:$0xff]  }
 0x1bf   : > { %2856 = vmatpush1.bf16.msra.mxu1 %v10779_v25  ;;  %3243 = vmatpush1.bf16.msra.mxu0 %v9099_v28  ;;  %v10949_v28 = vld [vmem:[%s13127_s1 + $0xd4] ss:$24 sps:$4 sm:$0xff]   ;;  %v11185_v25 = vld [vmem:[%s13127_s1 + $0x280] ss:$24 sps:$4 sm:$0xff]  }
 0x1c0   : > { %2857 = vmatprep.subr.bf16.mxu1 %v10788_v27  ;;  %3244 = vmatprep.subr.bf16.mxu0 %v9100_v31  ;;  %v10956_v31 = vld [vmem:[%s13127_s1 + $0x9c8] ss:$24 sps:$4 sm:$0xff]   ;;  %v11173_v27 = vld [vmem:[%s13127_s1 + $0x284] ss:$24 sps:$4 sm:$0xff]  }
 0x1c1   : > { %13193 = vst [vmem:[#allocation22_spill] sm:$0xff] %v10956_v31 }
 0x1c3   : > { %2858 = vmatpush1.bf16.msra.mxu1 %v10797_v29  ;;  %3245 = vmatpush1.bf16.msra.mxu0 %v9101_v37  ;;  %v10961_v37 = vld [vmem:[%s13127_s1 + $0xd0] ss:$24 sps:$4 sm:$0xff]  }
 0x1c4   : > { %2859 = vmatprep.subr.bf16.mxu1 %v10806_v36  ;;  %3246 = vmatprep.subr.bf16.mxu0 %v9102_v18  ;;  %v10968_v18 = vld [vmem:[%s13127_s1 + $0x9fc] ss:$24 sps:$4 sm:$0xff]   ;;  %v11161_v29 = vld [vmem:[%s13127_s1 + $0x250] ss:$24 sps:$4 sm:$0xff]  }
 0x1c5   : > { %13194 = vst [vmem:[#allocation23_spill] sm:$0xff] %v10968_v18  ;;  %v11149_v36 = vld [vmem:[%s13127_s1 + $0x254] ss:$24 sps:$4 sm:$0xff]  }
 0x1c7   : > { %2860 = vmatpush1.bf16.msra.mxu1 %v10815_v39  ;;  %3247 = vmatpush1.bf16.msra.mxu0 %v9103_v44  ;;  %v10973_v44 = vld [vmem:[%s13127_s1 + $0x104] ss:$24 sps:$4 sm:$0xff]   ;;  %v11137_v39 = vld [vmem:[%s13127_s1 + $0x220] ss:$24 sps:$4 sm:$0xff]  }
 0x1c8   : > { %2861 = vmatprep.subr.bf16.mxu1 %v10824_v43  ;;  %3248 = vmatprep.subr.bf16.mxu0 %v9104_v48  ;;  %v10980_v48 = vld [vmem:[%s13127_s1 + $0x9f8] ss:$24 sps:$4 sm:$0xff]   ;;  %v11125_v43 = vld [vmem:[%s13127_s1 + $0x224] ss:$24 sps:$4 sm:$0xff]  }
 0x1c9   : > { %13195 = vst [vmem:[#allocation24_spill] sm:$0xff] %v10980_v48 }
 0x1cb   : > { %2862 = vmatpush1.bf16.msra.mxu1 %v10833_v47  ;;  %3249 = vmatpush1.bf16.msra.mxu0 %v9105_v54  ;;  %v10985_v54 = vld [vmem:[%s13127_s1 + $0x100] ss:$24 sps:$4 sm:$0xff]   ;;  %v11113_v47 = vld [vmem:[%s13127_s1 + $0x1f0] ss:$24 sps:$4 sm:$0xff]  }
 0x1cc   : > { %2874 = vmatprep.subr.bf16.mxu1 %v10842_v50  ;;  %3433 = vmatprep.subr.bf16.mxu0 %v10847_v51  ;;  %v11101_v50 = vld [vmem:[%s13127_s1 + $0x1f4] ss:$24 sps:$4 sm:$0xff]  }
 0x1ce   : > { %2864 = vmatmul.mubr.bf16.vlgmr.msra.gmra.mrb[4].mxu1 %v9770_v61  ;;  %3251 = vmatmul.mubr.bf16.vlgmr.msra.gmra.mrb[4].mxu0 %v9942_v13  ;;  %v10894_v61 = vld [vmem:[%s13127_s1 + $0x96c] ss:$24 sps:$4 sm:$0xff]  }
 0x1cf   : > { %2875 = vmatpush1.bf16.msra.mxu1 %v10856_v56  ;;  %3434 = vmatpush1.bf16.msra.mxu0 %v10861_v58  ;;  %13188 = vst [vmem:[#allocation17_spill] sm:$0xff] %v10894_v61  ;;  %v11089_v56 = vld [vmem:[%s13127_s1 + $0x1c0] ss:$24 sps:$4 sm:$0xff]  }
 0x1d0   : > { %2876 = vmatprep.subr.bf16.mxu1 %v10868_v62  ;;  %3435 = vmatprep.subr.bf16.mxu0 %v10873_v0  ;;  %v11077_v62 = vld [vmem:[%s13127_s1 + $0x1c4] ss:$24 sps:$4 sm:$0xff]  }
 0x1d1   : > { %2906 = vmatprep.mubr.bf16.mxu1 %v9820_v24  ;;  %3465 = vmatprep.mubr.bf16.mxu0 %v9474_v52  ;;  %v10920_v24 = vld [vmem:[%s13127_s1 + $0x99c] ss:$24 sps:$4 sm:$0xff]  }
 0x1d2   : > { %13190 = vst [vmem:[#allocation19_spill] sm:$0xff] %v10920_v24 }
 0x1d3   : > { %2877 = vmatpush1.bf16.msra.mxu1 %v10882_v3  ;;  %3436 = vmatpush1.bf16.msra.mxu0 %v10887_v5 }
 0x1d4   : > { %2878 = vmatprep.subr.bf16.mxu1 %v10894_v61  ;;  %3437 = vmatprep.subr.bf16.mxu0 %v10899_v9  ;;  %v11015_v61 = vld [vmem:[%s13127_s1 + $0x130] ss:$24 sps:$4 sm:$0xff]  }
 0x1d7   : > { %2879 = vmatpush1.bf16.msra.mxu1 %v10908_v15  ;;  %3438 = vmatpush1.bf16.msra.mxu0 %v10913_v17 }
 0x1d8   : > { %2880 = vmatprep.subr.bf16.mxu1 %v10920_v24  ;;  %3439 = vmatprep.subr.bf16.mxu0 %v10925_v20 }
 0x1db   : > { %2881 = vmatpush1.bf16.msra.mxu1 %v10932_v22  ;;  %3440 = vmatpush1.bf16.msra.mxu0 %v10937_v23 }
 0x1dc   : > { %2882 = vmatprep.subr.bf16.mxu1 %v10944_v26  ;;  %3441 = vmatprep.subr.bf16.mxu0 %v10949_v28  ;;  %v10997_v26 = vld [vmem:[%s13127_s1 + $0x134] ss:$24 sps:$4 sm:$0xff]  }
 0x1df   : > { %2883 = vmatpush1.bf16.msra.mxu1 %v10956_v31  ;;  %3442 = vmatpush1.bf16.msra.mxu0 %v10961_v37  ;;  %v10992_v31 = vld [vmem:[%s13127_s1 + $0xa2c] ss:$24 sps:$4 sm:$0xff]  }
 0x1e0   : > { %2884 = vmatprep.subr.bf16.mxu1 %v10968_v18  ;;  %3443 = vmatprep.subr.bf16.mxu0 %v10973_v44  ;;  %13196 = vst [vmem:[#allocation25_spill] sm:$0xff] %v10992_v31  ;;  %v11010_v18 = vld [vmem:[%s13127_s1 + $0xa28] ss:$24 sps:$4 sm:$0xff]  }
 0x1e1   : > { %v10999_v22 = vpop.f32.mrb[0].mxu1  ;;  %13200 = vst [vmem:[#allocation29_spill] sm:$0xff] %v11010_v18 }
 0x1e2   : > { %13197 = vst [vmem:[#allocation26_spill] sm:$0xff] %v10999_v22  ;;  %v11001_v24 = vpop.f32.mrb[1].mxu1  ;;  %v11041_v22 = vld [vmem:[%s13127_s1 + $0x160] ss:$24 sps:$4 sm:$0xff]  }
 0x1e3   : > { %13198 = vst [vmem:[#allocation27_spill] sm:$0xff] %v11001_v24  ;;  %v11003_v15 = vpop.f32.mrb[2].mxu1  ;;  %2885 = vmatpush1.bf16.msra.mxu1 %v10980_v48  ;;  %3444 = vmatpush1.bf16.msra.mxu0 %v10985_v54  ;;  %v11029_v24 = vld [vmem:[%s13127_s1 + $0x164] ss:$24 sps:$4 sm:$0xff]   ;;  %v11065_v48 = vld [vmem:[%s13127_s1 + $0x190] ss:$24 sps:$4 sm:$0xff]  }
 0x1e4   : > { %13199 = vst [vmem:[#allocation28_spill] sm:$0xff] %v11003_v15  ;;  %v11017_v3 = vpop.f32.mrb[3].mxu1  ;;  %2886 = vmatprep.subr.bf16.mxu1 %v10992_v31  ;;  %3445 = vmatprep.subr.bf16.mxu0 %v10997_v26  ;;  %v11024_v15 = vld [vmem:[%s13127_s1 + $0xa5c] ss:$24 sps:$4 sm:$0xff]  }
 0x1e5   : > { %13201 = vst [vmem:[#allocation30_spill] sm:$0xff] %v11017_v3  ;;  %13202 = vst [vmem:[#allocation31_spill] sm:$0xff] %v11024_v15  ;;  %v11036_v3 = vld [vmem:[%s13127_s1 + $0xa58] ss:$24 sps:$4 sm:$0xff]   ;;  %v11053_v31 = vld [vmem:[%s13127_s1 + $0x194] ss:$24 sps:$4 sm:$0xff]  }
 0x1e6   : > { %13203 = vst [vmem:[#allocation32_spill] sm:$0xff] %v11036_v3 }
 0x1e7   : > { %2887 = vmatpush1.bf16.msra.mxu1 %v11010_v18  ;;  %3446 = vmatpush1.bf16.msra.mxu0 %v11015_v61  ;;  %v11048_v18 = vld [vmem:[%s13127_s1 + $0xa8c] ss:$24 sps:$4 sm:$0xff]  }
 0x1e8   : > { %2888 = vmatprep.subr.bf16.mxu1 %v11024_v15  ;;  %3447 = vmatprep.subr.bf16.mxu0 %v11029_v24  ;;  %13204 = vst [vmem:[#allocation33_spill] sm:$0xff] %v11048_v18  ;;  %v11060_v15 = vld [vmem:[%s13127_s1 + $0xa88] ss:$24 sps:$4 sm:$0xff]  }
 0x1e9   : > { %13205 = vst [vmem:[#allocation34_spill] sm:$0xff] %v11060_v15 }
 0x1eb   : > { %2889 = vmatpush1.bf16.msra.mxu1 %v11036_v3  ;;  %3448 = vmatpush1.bf16.msra.mxu0 %v11041_v22  ;;  %v11072_v3 = vld [vmem:[%s13127_s1 + $0xabc] ss:$24 sps:$4 sm:$0xff]  }
 0x1ec   : > { %2890 = vmatprep.subr.bf16.mxu1 %v11048_v18  ;;  %3449 = vmatprep.subr.bf16.mxu0 %v11053_v31  ;;  %13206 = vst [vmem:[#allocation35_spill] sm:$0xff] %v11072_v3  ;;  %v11084_v18 = vld [vmem:[%s13127_s1 + $0xab8] ss:$24 sps:$4 sm:$0xff]  }
 0x1ed   : > { %13207 = vst [vmem:[#allocation36_spill] sm:$0xff] %v11084_v18 }
 0x1ef   : > { %2891 = vmatpush1.bf16.msra.mxu1 %v11060_v15  ;;  %3450 = vmatpush1.bf16.msra.mxu0 %v11065_v48  ;;  %v11096_v15 = vld [vmem:[%s13127_s1 + $0xaec] ss:$24 sps:$4 sm:$0xff]  }
 0x1f0   : > { %2892 = vmatprep.subr.bf16.mxu1 %v11072_v3  ;;  %3451 = vmatprep.subr.bf16.mxu0 %v11077_v62  ;;  %13208 = vst [vmem:[#allocation37_spill] sm:$0xff] %v11096_v15  ;;  %v11108_v3 = vld [vmem:[%s13127_s1 + $0xae8] ss:$24 sps:$4 sm:$0xff]  }
 0x1f1   : > { %13209 = vst [vmem:[#allocation38_spill] sm:$0xff] %v11108_v3 }
 0x1f3   : > { %2893 = vmatpush1.bf16.msra.mxu1 %v11084_v18  ;;  %3452 = vmatpush1.bf16.msra.mxu0 %v11089_v56  ;;  %v11120_v18 = vld [vmem:[%s13127_s1 + $0xb1c] ss:$24 sps:$4 sm:$0xff]  }
 0x1f4   : > { %2894 = vmatprep.subr.bf16.mxu1 %v11096_v15  ;;  %3453 = vmatprep.subr.bf16.mxu0 %v11101_v50  ;;  %13210 = vst [vmem:[#allocation39_spill] sm:$0xff] %v11120_v18  ;;  %v11132_v15 = vld [vmem:[%s13127_s1 + $0xb18] ss:$24 sps:$4 sm:$0xff]  }
 0x1f5   : > { %13211 = vst [vmem:[#allocation40_spill] sm:$0xff] %v11132_v15 }
 0x1f7   : > { %2895 = vmatpush1.bf16.msra.mxu1 %v11108_v3  ;;  %3454 = vmatpush1.bf16.msra.mxu0 %v11113_v47  ;;  %v11144_v3 = vld [vmem:[%s13127_s1 + $0xb4c] ss:$24 sps:$4 sm:$0xff]  }
 0x1f8   : > { %2896 = vmatprep.subr.bf16.mxu1 %v11120_v18  ;;  %3455 = vmatprep.subr.bf16.mxu0 %v11125_v43  ;;  %13212 = vst [vmem:[#allocation41_spill] sm:$0xff] %v11144_v3  ;;  %v11156_v18 = vld [vmem:[%s13127_s1 + $0xb48] ss:$24 sps:$4 sm:$0xff]  }
 0x1f9   : > { %13213 = vst [vmem:[#allocation42_spill] sm:$0xff] %v11156_v18 }
 0x1fb   : > { %2897 = vmatpush1.bf16.msra.mxu1 %v11132_v15  ;;  %3456 = vmatpush1.bf16.msra.mxu0 %v11137_v39  ;;  %v11168_v15 = vld [vmem:[%s13127_s1 + $0xb7c] ss:$24 sps:$4 sm:$0xff]  }
 0x1fc   : > { %2898 = vmatprep.subr.bf16.mxu1 %v11144_v3  ;;  %3457 = vmatprep.subr.bf16.mxu0 %v11149_v36  ;;  %13214 = vst [vmem:[#allocation43_spill] sm:$0xff] %v11168_v15  ;;  %v11180_v3 = vld [vmem:[%s13127_s1 + $0xb78] ss:$24 sps:$4 sm:$0xff]  }
 0x1fd   : > { %13215 = vst [vmem:[#allocation44_spill] sm:$0xff] %v11180_v3 }
 0x1ff   : > { %2899 = vmatpush1.bf16.msra.mxu1 %v11156_v18  ;;  %3458 = vmatpush1.bf16.msra.mxu0 %v11161_v29  ;;  %v11192_v18 = vld [vmem:[%s13127_s1 + $0xbac] ss:$24 sps:$4 sm:$0xff]  }
 0x200   : > { %2900 = vmatprep.subr.bf16.mxu1 %v11168_v15  ;;  %3459 = vmatprep.subr.bf16.mxu0 %v11173_v27  ;;  %13216 = vst [vmem:[#allocation45_spill] sm:$0xff] %v11192_v18  ;;  %v11204_v15 = vld [vmem:[%s13127_s1 + $0xba8] ss:$24 sps:$4 sm:$0xff]  }
 0x201   : > { %13217 = vst [vmem:[#allocation46_spill] sm:$0xff] %v11204_v15 }
 0x203   : > { %2901 = vmatpush1.bf16.msra.mxu1 %v11180_v3  ;;  %3460 = vmatpush1.bf16.msra.mxu0 %v11185_v25  ;;  %v11216_v3 = vld [vmem:[%s13127_s1 + $0xbdc] ss:$24 sps:$4 sm:$0xff]  }
 0x204   : > { %2902 = vmatprep.subr.bf16.mxu1 %v11192_v18  ;;  %3461 = vmatprep.subr.bf16.mxu0 %v11197_v14  ;;  %13218 = vst [vmem:[#allocation47_spill] sm:$0xff] %v11216_v3  ;;  %v11228_v18 = vld [vmem:[%s13127_s1 + $0xbd8] ss:$24 sps:$4 sm:$0xff]  }
 0x207   : > { %2903 = vmatpush1.bf16.msra.mxu1 %v11204_v15  ;;  %3462 = vmatpush1.bf16.msra.mxu0 %v11209_v21  ;;  %v9106_v15 = vld [vmem:[%s13127_s1 + $0x314] ss:$24 sps:$4 sm:$0xff]  }
 0x208   : > { %2904 = vmatprep.subr.bf16.mxu1 %v11216_v3  ;;  %3463 = vmatprep.subr.bf16.mxu0 %v11221_v19  ;;  %v9107_v3 = vld [vmem:[%s13127_s1 + $0x310] ss:$24 sps:$4 sm:$0xff]  }
 0x20b   : > { %2905 = vmatpush1.bf16.msra.mxu1 %v11228_v18  ;;  %3464 = vmatpush1.bf16.msra.mxu0 %v11233_v16 }
 0x20c   : > { %2917 = vmatprep.subr.bf16.mxu1 %v10847_v51  ;;  %3476 = vmatprep.subr.bf16.mxu0 %v9106_v15  ;;  %v9108_v51 = vld [vmem:[%s13127_s1 + $0x344] ss:$24 sps:$4 sm:$0xff]  }
 0x20d   : > { %v9116_v15 = vld [vmem:[%s13127_s1 + $0x404] ss:$24 sps:$4 sm:$0xff]  }
 0x20e   : > { %2907 = vmatmul.mubr.bf16.vlgmr.msra.gmra.mrb[4].mxu1 %v9973_v30  ;;  %3466 = vmatmul.mubr.bf16.vlgmr.msra.gmra.mrb[0].mxu0 %v9508_v11  ;;  %v9109_v30 = vld [vmem:[%s13127_s1 + $0x340] ss:$24 sps:$4 sm:$0xff]  }
 0x20f   : > { %2918 = vmatpush1.bf16.msra.mxu1 %v10861_v58  ;;  %3477 = vmatpush1.bf16.msra.mxu0 %v9107_v3  ;;  %v9110_v58 = vld [vmem:[%s13127_s1 + $0x374] ss:$24 sps:$4 sm:$0xff]   ;;  %v9113_v3 = vld [vmem:[%s13127_s1 + $0x3a0] ss:$24 sps:$4 sm:$0xff]  }
 0x210   : > { %2919 = vmatprep.subr.bf16.mxu1 %v10873_v0  ;;  %3478 = vmatprep.subr.bf16.mxu0 %v9108_v51  ;;  %v9112_v0 = vld [vmem:[%s13127_s1 + $0x3a4] ss:$24 sps:$4 sm:$0xff]   ;;  %v9145_v51 = vld [vmem:[%s13127_s1 + $0x640] ss:$24 sps:$4 sm:$0xff]  }
 0x211   : > { %2949 = vmatprep.mubr.bf16.mxu1 %v9500_v6  ;;  %3508 = vmatprep.mubr.bf16.mxu0 %v9486_v59  ;;  %v9111_v6 = vld [vmem:[%s13127_s1 + $0x370] ss:$24 sps:$4 sm:$0xff]  }
 0x213   : > { %2920 = vmatpush1.bf16.msra.mxu1 %v10887_v5  ;;  %3479 = vmatpush1.bf16.msra.mxu0 %v9109_v30  ;;  %v9114_v5 = vld [vmem:[%s13127_s1 + $0x3d4] ss:$24 sps:$4 sm:$0xff]  }
 0x214   : > { %2921 = vmatprep.subr.bf16.mxu1 %v10899_v9  ;;  %3480 = vmatprep.subr.bf16.mxu0 %v9110_v58  ;;  %v9115_v9 = vld [vmem:[%s13127_s1 + $0x3d0] ss:$24 sps:$4 sm:$0xff]   ;;  %v9146_v30 = vld [vmem:[%s13127_s1 + $0x6c] ss:$24 sps:$4 sm:$0xff]  }
 0x215   : > { %v9147_v58 = vld [vmem:[%s13127_s1 + $0x674] ss:$24 sps:$4 sm:$0xff]  }
 0x217   : > { %2922 = vmatpush1.bf16.msra.mxu1 %v10913_v17  ;;  %3481 = vmatpush1.bf16.msra.mxu0 %v9111_v6  ;;  %v9117_v17 = vld [vmem:[%s13127_s1 + $0x400] ss:$24 sps:$4 sm:$0xff]  }
 0x218   : > { %2923 = vmatprep.subr.bf16.mxu1 %v10925_v20  ;;  %3482 = vmatprep.subr.bf16.mxu0 %v9112_v0  ;;  %v9118_v20 = vld [vmem:[%s13127_s1 + $0x434] ss:$24 sps:$4 sm:$0xff]   ;;  %v9148_v6 = vld [vmem:[%s13127_s1 + $0x68] ss:$24 sps:$4 sm:$0xff]  }
 0x219   : > { %v9149_v0 = vld [vmem:[%s13127_s1 + $0x670] ss:$24 sps:$4 sm:$0xff]  }
 0x21b   : > { %2924 = vmatpush1.bf16.msra.mxu1 %v10937_v23  ;;  %3483 = vmatpush1.bf16.msra.mxu0 %v9113_v3  ;;  %v9119_v23 = vld [vmem:[%s13127_s1 + $0x430] ss:$24 sps:$4 sm:$0xff]   ;;  %v9150_v3 = vld [vmem:[%s13127_s1 + $0x9c] ss:$24 sps:$4 sm:$0xff]  }
 0x21c   : > { %2925 = vmatprep.subr.bf16.mxu1 %v10949_v28  ;;  %3484 = vmatprep.subr.bf16.mxu0 %v9114_v5  ;;  %v9120_v28 = vld [vmem:[%s13127_s1 + $0x464] ss:$24 sps:$4 sm:$0xff]  }
 0x21d   : > { %v9151_v5 = vld [vmem:[%s13127_s1 + $0x6a4] ss:$24 sps:$4 sm:$0xff]  }
 0x21f   : > { %2926 = vmatpush1.bf16.msra.mxu1 %v10961_v37  ;;  %3485 = vmatpush1.bf16.msra.mxu0 %v9115_v9  ;;  %v9126_v37 = vld [vmem:[%s13127_s1 + $0x4f4] ss:$24 sps:$4 sm:$0xff]   ;;  %v9152_v9 = vld [vmem:[%s13127_s1 + $0x98] ss:$24 sps:$4 sm:$0xff]  }
 0x220   : > { %2927 = vmatprep.subr.bf16.mxu1 %v10973_v44  ;;  %3486 = vmatprep.subr.bf16.mxu0 %v9116_v15  ;;  %v9141_v44 = vld [vmem:[%s13127_s1 + $0x610] ss:$24 sps:$4 sm:$0xff]   ;;  %v9153_v15 = vld [vmem:[%s13127_s1 + $0x6a0] ss:$24 sps:$4 sm:$0xff]  }
 0x223   : > { %2928 = vmatpush1.bf16.msra.mxu1 %v10985_v54  ;;  %3487 = vmatpush1.bf16.msra.mxu0 %v9117_v17  ;;  %v9144_v54 = vld [vmem:[%s13127_s1 + $0x38] ss:$24 sps:$4 sm:$0xff]   ;;  %v9154_v17 = vld [vmem:[%s13127_s1 + $0xcc] ss:$24 sps:$4 sm:$0xff]  }
 0x224   : > { %2929 = vmatprep.subr.bf16.mxu1 %v10997_v26  ;;  %3488 = vmatprep.subr.bf16.mxu0 %v9118_v20  ;;  %v9121_v26 = vld [vmem:[%s13127_s1 + $0x460] ss:$24 sps:$4 sm:$0xff]   ;;  %v9155_v20 = vld [vmem:[%s13127_s1 + $0x6d4] ss:$24 sps:$4 sm:$0xff]  }
 0x227   : > { %2930 = vmatpush1.bf16.msra.mxu1 %v11015_v61  ;;  %3489 = vmatpush1.bf16.msra.mxu0 %v9119_v23  ;;  %v9122_v61 = vld [vmem:[%s13127_s1 + $0x494] ss:$24 sps:$4 sm:$0xff]   ;;  %v9156_v23 = vld [vmem:[%s13127_s1 + $0xc8] ss:$24 sps:$4 sm:$0xff]  }
 0x228   : > { %2931 = vmatprep.subr.bf16.mxu1 %v11029_v24  ;;  %3490 = vmatprep.subr.bf16.mxu0 %v9120_v28  ;;  %v9123_v24 = vld [vmem:[%s13127_s1 + $0x490] ss:$24 sps:$4 sm:$0xff]  }
 0x229   : > { %v9157_v28 = vld [vmem:[%s13127_s1 + $0x6d0] ss:$24 sps:$4 sm:$0xff]  }
 0x22b   : > { %2932 = vmatpush1.bf16.msra.mxu1 %v11041_v22  ;;  %3491 = vmatpush1.bf16.msra.mxu0 %v9121_v26  ;;  %v9124_v22 = vld [vmem:[%s13127_s1 + $0x4c4] ss:$24 sps:$4 sm:$0xff]  }
 0x22c   : > { %2933 = vmatprep.subr.bf16.mxu1 %v11053_v31  ;;  %3492 = vmatprep.subr.bf16.mxu0 %v9122_v61  ;;  %v9125_v31 = vld [vmem:[%s13127_s1 + $0x4c0] ss:$24 sps:$4 sm:$0xff]   ;;  %v9158_v26 = vld [vmem:[%s13127_s1 + $0xfc] ss:$24 sps:$4 sm:$0xff]  }
 0x22d   : > { %v9159_v61 = vld [vmem:[%s13127_s1 + $0x704] ss:$24 sps:$4 sm:$0xff]  }
 0x22f   : > { %2934 = vmatpush1.bf16.msra.mxu1 %v11065_v48  ;;  %3493 = vmatpush1.bf16.msra.mxu0 %v9123_v24  ;;  %v9142_v48 = vld [vmem:[%s13127_s1 + $0x3c] ss:$24 sps:$4 sm:$0xff]   ;;  %v9160_v24 = vld [vmem:[%s13127_s1 + $0xf8] ss:$24 sps:$4 sm:$0xff]  }
 0x230   : > { %2935 = vmatprep.subr.bf16.mxu1 %v11077_v62  ;;  %3494 = vmatprep.subr.bf16.mxu0 %v9124_v22  ;;  %v9127_v62 = vld [vmem:[%s13127_s1 + $0x4f0] ss:$24 sps:$4 sm:$0xff]   ;;  %v9161_v22 = vld [vmem:[%s13127_s1 + $0x700] ss:$24 sps:$4 sm:$0xff]  }
 0x233   : > { %2936 = vmatpush1.bf16.msra.mxu1 %v11089_v56  ;;  %3495 = vmatpush1.bf16.msra.mxu0 %v9125_v31  ;;  %v9128_v56 = vld [vmem:[%s13127_s1 + $0x524] ss:$24 sps:$4 sm:$0xff]  }
 0x234   : > { %2937 = vmatprep.subr.bf16.mxu1 %v11101_v50  ;;  %3496 = vmatprep.subr.bf16.mxu0 %v9126_v37  ;;  %v9129_v50 = vld [vmem:[%s13127_s1 + $0x520] ss:$24 sps:$4 sm:$0xff]   ;;  %v9162_v31 = vld [vmem:[%s13127_s1 + $0x12c] ss:$24 sps:$4 sm:$0xff]  }
 0x235   : > { %v9163_v37 = vld [vmem:[%s13127_s1 + $0x734] ss:$24 sps:$4 sm:$0xff]  }
 0x237   : > { %2938 = vmatpush1.bf16.msra.mxu1 %v11113_v47  ;;  %3497 = vmatpush1.bf16.msra.mxu0 %v9127_v62  ;;  %v9130_v47 = vld [vmem:[%s13127_s1 + $0x554] ss:$24 sps:$4 sm:$0xff]   ;;  %v9164_v62 = vld [vmem:[%s13127_s1 + $0x128] ss:$24 sps:$4 sm:$0xff]  }
 0x238   : > { %2939 = vmatprep.subr.bf16.mxu1 %v11125_v43  ;;  %3498 = vmatprep.subr.bf16.mxu0 %v9128_v56  ;;  %v9131_v43 = vld [vmem:[%s13127_s1 + $0x550] ss:$24 sps:$4 sm:$0xff]  }
 0x239   : > { %v9165_v56 = vld [vmem:[%s13127_s1 + $0x730] ss:$24 sps:$4 sm:$0xff]  }
 0x23b   : > { %2940 = vmatpush1.bf16.msra.mxu1 %v11137_v39  ;;  %3499 = vmatpush1.bf16.msra.mxu0 %v9129_v50  ;;  %v9132_v39 = vld [vmem:[%s13127_s1 + $0x584] ss:$24 sps:$4 sm:$0xff]  }
 0x23c   : > { %2941 = vmatprep.subr.bf16.mxu1 %v11149_v36  ;;  %3500 = vmatprep.subr.bf16.mxu0 %v9130_v47  ;;  %v9133_v36 = vld [vmem:[%s13127_s1 + $0x580] ss:$24 sps:$4 sm:$0xff]   ;;  %v9166_v50 = vld [vmem:[%s13127_s1 + $0x15c] ss:$24 sps:$4 sm:$0xff]  }
 0x23d   : > { %v9167_v47 = vld [vmem:[%s13127_s1 + $0x764] ss:$24 sps:$4 sm:$0xff]  }
 0x23f   : > { %2942 = vmatpush1.bf16.msra.mxu1 %v11161_v29  ;;  %3501 = vmatpush1.bf16.msra.mxu0 %v9131_v43  ;;  %v9134_v29 = vld [vmem:[%s13127_s1 + $0x5b4] ss:$24 sps:$4 sm:$0xff]   ;;  %v9168_v43 = vld [vmem:[%s13127_s1 + $0x158] ss:$24 sps:$4 sm:$0xff]  }
 0x240   : > { %2943 = vmatprep.subr.bf16.mxu1 %v11173_v27  ;;  %3502 = vmatprep.subr.bf16.mxu0 %v9132_v39  ;;  %v9135_v27 = vld [vmem:[%s13127_s1 + $0x5b0] ss:$24 sps:$4 sm:$0xff]   ;;  %v9169_v39 = vld [vmem:[%s13127_s1 + $0x760] ss:$24 sps:$4 sm:$0xff]  }
 0x243   : > { %2944 = vmatpush1.bf16.msra.mxu1 %v11185_v25  ;;  %3503 = vmatpush1.bf16.msra.mxu0 %v9133_v36  ;;  %v9136_v25 = vld [vmem:[%s13127_s1 + $0x5e4] ss:$24 sps:$4 sm:$0xff]  }
 0x244   : > { %2945 = vmatprep.subr.bf16.mxu1 %v11197_v14  ;;  %3504 = vmatprep.subr.bf16.mxu0 %v9134_v29  ;;  %v9137_v14 = vld [vmem:[%s13127_s1 + $0x5e0] ss:$24 sps:$4 sm:$0xff]   ;;  %v9170_v36 = vld [vmem:[%s13127_s1 + $0x18c] ss:$24 sps:$4 sm:$0xff]  }
 0x245   : > { %v9171_v29 = vld [vmem:[%s13127_s1 + $0x794] ss:$24 sps:$4 sm:$0xff]  }
 0x247   : > { %2946 = vmatpush1.bf16.msra.mxu1 %v11209_v21  ;;  %3505 = vmatpush1.bf16.msra.mxu0 %v9135_v27  ;;  %v9138_v21 = vld [vmem:[%s13127_s1 + $0xc] ss:$24 sps:$4 sm:$0xff]   ;;  %v9172_v27 = vld [vmem:[%s13127_s1 + $0x188] ss:$24 sps:$4 sm:$0xff]  }
 0x248   : > { %2947 = vmatprep.subr.bf16.mxu1 %v11221_v19  ;;  %3506 = vmatprep.subr.bf16.mxu0 %v9136_v25  ;;  %v9139_v19 = vld [vmem:[%s13127_s1 + $0x614] ss:$24 sps:$4 sm:$0xff]   ;;  %v9173_v25 = vld [vmem:[%s13127_s1 + $0x790] ss:$24 sps:$4 sm:$0xff]  }
 0x24b   : > { %2948 = vmatpush1.bf16.msra.mxu1 %v11233_v16  ;;  %3507 = vmatpush1.bf16.msra.mxu0 %v9137_v14  ;;  %v9140_v16 = vld [vmem:[%s13127_s1 + $0x8] ss:$24 sps:$4 sm:$0xff]   ;;  %v9174_v14 = vld [vmem:[%s13127_s1 + $0x1bc] ss:$24 sps:$4 sm:$0xff]  }
 0x24c   : > { %3261 = vmatprep.subr.bf16.mxu1 %v9138_v21  ;;  %3519 = vmatprep.subr.bf16.mxu0 %v9139_v19  ;;  %v9175_v21 = vld [vmem:[%s13127_s1 + $0x7c4] ss:$24 sps:$4 sm:$0xff]   ;;  %v9176_v19 = vld [vmem:[%s13127_s1 + $0x1b8] ss:$24 sps:$4 sm:$0xff]  }
 0x24e   : > { %2950 = vmatmul.mubr.bf16.vlgmr.msra.gmra.mrb[8].mxu1 %v9556_v34  ;;  %3509 = vmatmul.mubr.bf16.vlgmr.msra.gmra.mrb[0].mxu0 %v9510_v12  ;;  %v9143_v34 = vld [vmem:[%s13127_s1 + $0x644] ss:$24 sps:$4 sm:$0xff]  }
 0x24f   : > { %3262 = vmatpush1.bf16.msra.mxu1 %v9140_v16  ;;  %3520 = vmatpush1.bf16.msra.mxu0 %v9141_v44  ;;  %v9177_v16 = vld [vmem:[%s13127_s1 + $0x7c0] ss:$24 sps:$4 sm:$0xff]   ;;  %v9178_v44 = vld [vmem:[%s13127_s1 + $0x1ec] ss:$24 sps:$4 sm:$0xff]  }
 0x250   : > { %3263 = vmatprep.subr.bf16.mxu1 %v9142_v48  ;;  %3521 = vmatprep.subr.bf16.mxu0 %v9143_v34  ;;  %v9179_v48 = vld [vmem:[%s13127_s1 + $0x7f4] ss:$24 sps:$4 sm:$0xff]   ;;  %v9180_v34 = vld [vmem:[%s13127_s1 + $0x1e8] ss:$24 sps:$4 sm:$0xff]  }
 0x251   : > { %3293 = vmatprep.mubr.bf16.mxu1 %v9474_v52  ;;  %3551 = vmatprep.mubr.bf16.mxu0 %v9643_v2 }
 0x253   : > { %3264 = vmatpush1.bf16.msra.mxu1 %v9144_v54  ;;  %3522 = vmatpush1.bf16.msra.mxu0 %v9145_v51  ;;  %v9181_v54 = vld [vmem:[%s13127_s1 + $0x7f0] ss:$24 sps:$4 sm:$0xff]   ;;  %v9182_v51 = vld [vmem:[%s13127_s1 + $0x21c] ss:$24 sps:$4 sm:$0xff]  }
 0x254   : > { %3265 = vmatprep.subr.bf16.mxu1 %v9146_v30  ;;  %3523 = vmatprep.subr.bf16.mxu0 %v9147_v58  ;;  %v9183_v30 = vld [vmem:[%s13127_s1 + $0x824] ss:$24 sps:$4 sm:$0xff]   ;;  %v9184_v58 = vld [vmem:[%s13127_s1 + $0x218] ss:$24 sps:$4 sm:$0xff]  }
 0x257   : > { %3266 = vmatpush1.bf16.msra.mxu1 %v9148_v6  ;;  %3524 = vmatpush1.bf16.msra.mxu0 %v9149_v0  ;;  %v9185_v6 = vld [vmem:[%s13127_s1 + $0x820] ss:$24 sps:$4 sm:$0xff]   ;;  %v9186_v0 = vld [vmem:[%s13127_s1 + $0x24c] ss:$24 sps:$4 sm:$0xff]  }
 0x258   : > { %3267 = vmatprep.subr.bf16.mxu1 %v9150_v3  ;;  %3525 = vmatprep.subr.bf16.mxu0 %v9151_v5  ;;  %v9187_v3 = vld [vmem:[%s13127_s1 + $0x854] ss:$24 sps:$4 sm:$0xff]   ;;  %v9188_v5 = vld [vmem:[%s13127_s1 + $0x248] ss:$24 sps:$4 sm:$0xff]  }
 0x25b   : > { %3268 = vmatpush1.bf16.msra.mxu1 %v9152_v9  ;;  %3526 = vmatpush1.bf16.msra.mxu0 %v9153_v15  ;;  %v9189_v9 = vld [vmem:[%s13127_s1 + $0x850] ss:$24 sps:$4 sm:$0xff]   ;;  %v9190_v15 = vld [vmem:[%s13127_s1 + $0x27c] ss:$24 sps:$4 sm:$0xff]  }
 0x25c   : > { %3269 = vmatprep.subr.bf16.mxu1 %v9154_v17  ;;  %3527 = vmatprep.subr.bf16.mxu0 %v9155_v20  ;;  %v9191_v17 = vld [vmem:[%s13127_s1 + $0x884] ss:$24 sps:$4 sm:$0xff]   ;;  %v9192_v20 = vld [vmem:[%s13127_s1 + $0x278] ss:$24 sps:$4 sm:$0xff]  }
 0x25f   : > { %3270 = vmatpush1.bf16.msra.mxu1 %v9156_v23  ;;  %3528 = vmatpush1.bf16.msra.mxu0 %v9157_v28  ;;  %v9193_v23 = vld [vmem:[%s13127_s1 + $0x880] ss:$24 sps:$4 sm:$0xff]   ;;  %v9194_v28 = vld [vmem:[%s13127_s1 + $0x2ac] ss:$24 sps:$4 sm:$0xff]  }
 0x260   : > { %3271 = vmatprep.subr.bf16.mxu1 %v9158_v26  ;;  %3529 = vmatprep.subr.bf16.mxu0 %v9159_v61  ;;  %v9195_v26 = vld [vmem:[%s13127_s1 + $0x8b4] ss:$24 sps:$4 sm:$0xff]   ;;  %v9196_v61 = vld [vmem:[%s13127_s1 + $0x2a8] ss:$24 sps:$4 sm:$0xff]  }
 0x263   : > { %3272 = vmatpush1.bf16.msra.mxu1 %v9160_v24  ;;  %3530 = vmatpush1.bf16.msra.mxu0 %v9161_v22  ;;  %v9197_v24 = vld [vmem:[%s13127_s1 + $0x8b0] ss:$24 sps:$4 sm:$0xff]   ;;  %v9198_v22 = vld [vmem:[%s13127_s1 + $0x2dc] ss:$24 sps:$4 sm:$0xff]  }
 0x264   : > { %3273 = vmatprep.subr.bf16.mxu1 %v9162_v31  ;;  %3531 = vmatprep.subr.bf16.mxu0 %v9163_v37  ;;  %v9199_v31 = vld [vmem:[%s13127_s1 + $0x8e4] ss:$24 sps:$4 sm:$0xff]   ;;  %v9200_v37 = vld [vmem:[%s13127_s1 + $0x2d8] ss:$24 sps:$4 sm:$0xff]  }
 0x267   : > { %3274 = vmatpush1.bf16.msra.mxu1 %v9164_v62  ;;  %3532 = vmatpush1.bf16.msra.mxu0 %v9165_v56  ;;  %v9201_v62 = vld [vmem:[%s13127_s1 + $0x8e0] ss:$24 sps:$4 sm:$0xff]   ;;  %v9202_v56 = vld [vmem:[%s13127_s1 + $0x30c] ss:$24 sps:$4 sm:$0xff]  }
 0x268   : > { %3275 = vmatprep.subr.bf16.mxu1 %v9166_v50  ;;  %3533 = vmatprep.subr.bf16.mxu0 %v9167_v47  ;;  %v9203_v50 = vld [vmem:[%s13127_s1 + $0x914] ss:$24 sps:$4 sm:$0xff]   ;;  %v9204_v47 = vld [vmem:[%s13127_s1 + $0x308] ss:$24 sps:$4 sm:$0xff]  }
 0x26b   : > { %3276 = vmatpush1.bf16.msra.mxu1 %v9168_v43  ;;  %3534 = vmatpush1.bf16.msra.mxu0 %v9169_v39  ;;  %v9205_v43 = vld [vmem:[%s13127_s1 + $0x910] ss:$24 sps:$4 sm:$0xff]   ;;  %v9206_v39 = vld [vmem:[%s13127_s1 + $0x33c] ss:$24 sps:$4 sm:$0xff]  }
 0x26c   : > { %3277 = vmatprep.subr.bf16.mxu1 %v9170_v36  ;;  %3535 = vmatprep.subr.bf16.mxu0 %v9171_v29  ;;  %v9207_v36 = vld [vmem:[%s13127_s1 + $0x944] ss:$24 sps:$4 sm:$0xff]   ;;  %v9208_v29 = vld [vmem:[%s13127_s1 + $0x338] ss:$24 sps:$4 sm:$0xff]  }
 0x26f   : > { %3278 = vmatpush1.bf16.msra.mxu1 %v9172_v27  ;;  %3536 = vmatpush1.bf16.msra.mxu0 %v9173_v25  ;;  %v9209_v27 = vld [vmem:[%s13127_s1 + $0x940] ss:$24 sps:$4 sm:$0xff]   ;;  %v9210_v25 = vld [vmem:[%s13127_s1 + $0x36c] ss:$24 sps:$4 sm:$0xff]  }
 0x270   : > { %3279 = vmatprep.subr.bf16.mxu1 %v9174_v14  ;;  %3537 = vmatprep.subr.bf16.mxu0 %v9175_v21  ;;  %v9211_v14 = vld [vmem:[%s13127_s1 + $0x974] ss:$24 sps:$4 sm:$0xff]   ;;  %v9212_v21 = vld [vmem:[%s13127_s1 + $0x368] ss:$24 sps:$4 sm:$0xff]  }
 0x273   : > { %3280 = vmatpush1.bf16.msra.mxu1 %v9176_v19  ;;  %3538 = vmatpush1.bf16.msra.mxu0 %v9177_v16  ;;  %v9213_v19 = vld [vmem:[%s13127_s1 + $0x970] ss:$24 sps:$4 sm:$0xff]   ;;  %v9214_v16 = vld [vmem:[%s13127_s1 + $0x39c] ss:$24 sps:$4 sm:$0xff]  }
 0x274   : > { %3281 = vmatprep.subr.bf16.mxu1 %v9178_v44  ;;  %3539 = vmatprep.subr.bf16.mxu0 %v9179_v48  ;;  %v9215_v44 = vld [vmem:[%s13127_s1 + $0x9a4] ss:$24 sps:$4 sm:$0xff]   ;;  %v9216_v48 = vld [vmem:[%s13127_s1 + $0x398] ss:$24 sps:$4 sm:$0xff]  }
 0x277   : > { %3282 = vmatpush1.bf16.msra.mxu1 %v9180_v34  ;;  %3540 = vmatpush1.bf16.msra.mxu0 %v9181_v54  ;;  %v9217_v34 = vld [vmem:[%s13127_s1 + $0x9a0] ss:$24 sps:$4 sm:$0xff]   ;;  %v9218_v54 = vld [vmem:[%s13127_s1 + $0x3cc] ss:$24 sps:$4 sm:$0xff]  }
 0x278   : > { %3283 = vmatprep.subr.bf16.mxu1 %v9182_v51  ;;  %3541 = vmatprep.subr.bf16.mxu0 %v9183_v30  ;;  %v9219_v51 = vld [vmem:[%s13127_s1 + $0x9d4] ss:$24 sps:$4 sm:$0xff]   ;;  %v9220_v30 = vld [vmem:[%s13127_s1 + $0x3c8] ss:$24 sps:$4 sm:$0xff]  }
 0x27b   : > { %3284 = vmatpush1.bf16.msra.mxu1 %v9184_v58  ;;  %3542 = vmatpush1.bf16.msra.mxu0 %v9185_v6  ;;  %v9221_v58 = vld [vmem:[%s13127_s1 + $0x9d0] ss:$24 sps:$4 sm:$0xff]   ;;  %v9222_v6 = vld [vmem:[%s13127_s1 + $0x3fc] ss:$24 sps:$4 sm:$0xff]  }
 0x27c   : > { %3285 = vmatprep.subr.bf16.mxu1 %v9186_v0  ;;  %3543 = vmatprep.subr.bf16.mxu0 %v9187_v3  ;;  %v9223_v0 = vld [vmem:[%s13127_s1 + $0xa04] ss:$24 sps:$4 sm:$0xff]   ;;  %v9224_v3 = vld [vmem:[%s13127_s1 + $0x3f8] ss:$24 sps:$4 sm:$0xff]  }
 0x27f   : > { %3286 = vmatpush1.bf16.msra.mxu1 %v9188_v5  ;;  %3544 = vmatpush1.bf16.msra.mxu0 %v9189_v9  ;;  %v9225_v5 = vld [vmem:[%s13127_s1 + $0xa00] ss:$24 sps:$4 sm:$0xff]   ;;  %v9226_v9 = vld [vmem:[%s13127_s1 + $0x42c] ss:$24 sps:$4 sm:$0xff]  }
 0x280   : > { %3287 = vmatprep.subr.bf16.mxu1 %v9190_v15  ;;  %3545 = vmatprep.subr.bf16.mxu0 %v9191_v17  ;;  %v9227_v15 = vld [vmem:[%s13127_s1 + $0xa34] ss:$24 sps:$4 sm:$0xff]   ;;  %v9228_v17 = vld [vmem:[%s13127_s1 + $0x428] ss:$24 sps:$4 sm:$0xff]  }
 0x283   : > { %3288 = vmatpush1.bf16.msra.mxu1 %v9192_v20  ;;  %3546 = vmatpush1.bf16.msra.mxu0 %v9193_v23  ;;  %v9229_v20 = vld [vmem:[%s13127_s1 + $0xa30] ss:$24 sps:$4 sm:$0xff]   ;;  %v9230_v23 = vld [vmem:[%s13127_s1 + $0x45c] ss:$24 sps:$4 sm:$0xff]  }
 0x284   : > { %3289 = vmatprep.subr.bf16.mxu1 %v9194_v28  ;;  %3547 = vmatprep.subr.bf16.mxu0 %v9195_v26  ;;  %v9231_v28 = vld [vmem:[%s13127_s1 + $0xa64] ss:$24 sps:$4 sm:$0xff]   ;;  %v9232_v26 = vld [vmem:[%s13127_s1 + $0x458] ss:$24 sps:$4 sm:$0xff]  }
 0x287   : > { %3290 = vmatpush1.bf16.msra.mxu1 %v9196_v61  ;;  %3548 = vmatpush1.bf16.msra.mxu0 %v9197_v24  ;;  %v9233_v61 = vld [vmem:[%s13127_s1 + $0xa60] ss:$24 sps:$4 sm:$0xff]   ;;  %v9234_v24 = vld [vmem:[%s13127_s1 + $0x48c] ss:$24 sps:$4 sm:$0xff]  }
 0x288   : > { %3291 = vmatprep.subr.bf16.mxu1 %v9198_v22  ;;  %3549 = vmatprep.subr.bf16.mxu0 %v9199_v31  ;;  %v9235_v22 = vld [vmem:[%s13127_s1 + $0xa94] ss:$24 sps:$4 sm:$0xff]   ;;  %v9236_v31 = vld [vmem:[%s13127_s1 + $0x488] ss:$24 sps:$4 sm:$0xff]  }
 0x28b   : > { %3292 = vmatpush1.bf16.msra.mxu1 %v9200_v37  ;;  %3550 = vmatpush1.bf16.msra.mxu0 %v9201_v62  ;;  %v9237_v37 = vld [vmem:[%s13127_s1 + $0xa90] ss:$24 sps:$4 sm:$0xff]   ;;  %v9238_v62 = vld [vmem:[%s13127_s1 + $0x4bc] ss:$24 sps:$4 sm:$0xff]  }
 0x28c   : > { %3304 = vmatprep.subr.bf16.mxu1 %v9202_v56  ;;  %3562 = vmatprep.subr.bf16.mxu0 %v9203_v50  ;;  %v9239_v56 = vld [vmem:[%s13127_s1 + $0xac4] ss:$24 sps:$4 sm:$0xff]   ;;  %v9240_v50 = vld [vmem:[%s13127_s1 + $0x4b8] ss:$24 sps:$4 sm:$0xff]  }
 0x28e   : > { %3294 = vmatmul.mubr.bf16.vlgmr.msra.gmra.mrb[4].mxu1 %v9508_v11  ;;  %3552 = vmatmul.mubr.bf16.vlgmr.msra.gmra.mrb[0].mxu0 %v9730_v42 }
 0x28f   : > { %3305 = vmatpush1.bf16.msra.mxu1 %v9204_v47  ;;  %3563 = vmatpush1.bf16.msra.mxu0 %v9205_v43  ;;  %v9241_v47 = vld [vmem:[%s13127_s1 + $0xac0] ss:$24 sps:$4 sm:$0xff]   ;;  %v9242_v43 = vld [vmem:[%s13127_s1 + $0x4ec] ss:$24 sps:$4 sm:$0xff]  }
 0x290   : > { %3306 = vmatprep.subr.bf16.mxu1 %v9206_v39  ;;  %3564 = vmatprep.subr.bf16.mxu0 %v9207_v36  ;;  %v9243_v39 = vld [vmem:[%s13127_s1 + $0xaf4] ss:$24 sps:$4 sm:$0xff]   ;;  %v9244_v36 = vld [vmem:[%s13127_s1 + $0x4e8] ss:$24 sps:$4 sm:$0xff]  }
 0x291   : > { %3336 = vmatprep.mubr.bf16.mxu1 %v9486_v59  ;;  %3594 = vmatprep.mubr.bf16.mxu0 %v9795_v8 }
 0x293   : > { %3307 = vmatpush1.bf16.msra.mxu1 %v9208_v29  ;;  %3565 = vmatpush1.bf16.msra.mxu0 %v9209_v27  ;;  %v9245_v29 = vld [vmem:[%s13127_s1 + $0xaf0] ss:$24 sps:$4 sm:$0xff]   ;;  %v9246_v27 = vld [vmem:[%s13127_s1 + $0x51c] ss:$24 sps:$4 sm:$0xff]  }
 0x294   : > { %3308 = vmatprep.subr.bf16.mxu1 %v9210_v25  ;;  %3566 = vmatprep.subr.bf16.mxu0 %v9211_v14  ;;  %v9247_v25 = vld [vmem:[%s13127_s1 + $0xb24] ss:$24 sps:$4 sm:$0xff]   ;;  %v9248_v14 = vld [vmem:[%s13127_s1 + $0x518] ss:$24 sps:$4 sm:$0xff]  }
 0x297   : > { %3309 = vmatpush1.bf16.msra.mxu1 %v9212_v21  ;;  %3567 = vmatpush1.bf16.msra.mxu0 %v9213_v19  ;;  %v9249_v21 = vld [vmem:[%s13127_s1 + $0xb20] ss:$24 sps:$4 sm:$0xff]   ;;  %v9250_v19 = vld [vmem:[%s13127_s1 + $0x54c] ss:$24 sps:$4 sm:$0xff]  }
 0x298   : > { %3310 = vmatprep.subr.bf16.mxu1 %v9214_v16  ;;  %3568 = vmatprep.subr.bf16.mxu0 %v9215_v44  ;;  %v9251_v16 = vld [vmem:[%s13127_s1 + $0xb54] ss:$24 sps:$4 sm:$0xff]   ;;  %v9252_v44 = vld [vmem:[%s13127_s1 + $0x548] ss:$24 sps:$4 sm:$0xff]  }
 0x29b   : > { %3311 = vmatpush1.bf16.msra.mxu1 %v9216_v48  ;;  %3569 = vmatpush1.bf16.msra.mxu0 %v9217_v34  ;;  %v9253_v48 = vld [vmem:[%s13127_s1 + $0xb50] ss:$24 sps:$4 sm:$0xff]   ;;  %v9254_v34 = vld [vmem:[%s13127_s1 + $0x57c] ss:$24 sps:$4 sm:$0xff]  }
 0x29c   : > { %3312 = vmatprep.subr.bf16.mxu1 %v9218_v54  ;;  %3570 = vmatprep.subr.bf16.mxu0 %v9219_v51  ;;  %v9255_v54 = vld [vmem:[%s13127_s1 + $0xb84] ss:$24 sps:$4 sm:$0xff]   ;;  %v9256_v51 = vld [vmem:[%s13127_s1 + $0x578] ss:$24 sps:$4 sm:$0xff]  }
 0x29f   : > { %3313 = vmatpush1.bf16.msra.mxu1 %v9220_v30  ;;  %3571 = vmatpush1.bf16.msra.mxu0 %v9221_v58  ;;  %v9257_v30 = vld [vmem:[%s13127_s1 + $0xb80] ss:$24 sps:$4 sm:$0xff]   ;;  %v9258_v58 = vld [vmem:[%s13127_s1 + $0x5ac] ss:$24 sps:$4 sm:$0xff]  }
 0x2a0   : > { %3314 = vmatprep.subr.bf16.mxu1 %v9222_v6  ;;  %3572 = vmatprep.subr.bf16.mxu0 %v9223_v0  ;;  %v9259_v6 = vld [vmem:[%s13127_s1 + $0xbb4] ss:$24 sps:$4 sm:$0xff]   ;;  %v9260_v0 = vld [vmem:[%s13127_s1 + $0x5a8] ss:$24 sps:$4 sm:$0xff]  }
 0x2a3   : > { %3315 = vmatpush1.bf16.msra.mxu1 %v9224_v3  ;;  %3573 = vmatpush1.bf16.msra.mxu0 %v9225_v5  ;;  %v9261_v3 = vld [vmem:[%s13127_s1 + $0xbb0] ss:$24 sps:$4 sm:$0xff]   ;;  %v9262_v5 = vld [vmem:[%s13127_s1 + $0x5dc] ss:$24 sps:$4 sm:$0xff]  }
 0x2a4   : > { %3316 = vmatprep.subr.bf16.mxu1 %v9226_v9  ;;  %3574 = vmatprep.subr.bf16.mxu0 %v9227_v15  ;;  %v9263_v9 = vld [vmem:[%s13127_s1 + $0xbe4] ss:$24 sps:$4 sm:$0xff]  }
 0x2a5   : > { %v8376_v15 = vld [vmem:[%s13128_s2 + $0x4] ss:$24 sps:$4 sm:$0xff]  }
 0x2a7   : > { %3317 = vmatpush1.bf16.msra.mxu1 %v9228_v17  ;;  %3575 = vmatpush1.bf16.msra.mxu0 %v9229_v20  ;;  %v9264_v17 = vld [vmem:[%s13127_s1 + $0x5d8] ss:$24 sps:$4 sm:$0xff]  }
 0x2a8   : > { %3318 = vmatprep.subr.bf16.mxu1 %v9230_v23  ;;  %3576 = vmatprep.subr.bf16.mxu0 %v9231_v28  ;;  %v9265_v20 = vld [vmem:[%s13127_s1 + $0xbe0] ss:$24 sps:$4 sm:$0xff]   ;;  %v9266_v28 = vld [vmem:[%s13127_s1 + $0x60c] ss:$24 sps:$4 sm:$0xff]  }
 0x2a9   : > { %v8374_v23 = vld [vmem:[%s13128_s2] ss:$24 sps:$4 sm:$0xff]  }
 0x2ab   : > { %3319 = vmatpush1.bf16.msra.mxu1 %v9232_v26  ;;  %3577 = vmatpush1.bf16.msra.mxu0 %v9233_v61  ;;  %v8379_v26 = vld [vmem:[%s13128_s2 + $0x34] ss:$24 sps:$4 sm:$0xff]   ;;  %v9267_v61 = vld [vmem:[%s13127_s1 + $0x608] ss:$24 sps:$4 sm:$0xff]  }
 0x2ac   : > { %3320 = vmatprep.subr.bf16.mxu1 %v9234_v24  ;;  %3578 = vmatprep.subr.bf16.mxu0 %v9235_v22  ;;  %v8377_v24 = vld [vmem:[%s13128_s2 + $0x30] ss:$24 sps:$4 sm:$0xff]   ;;  %v9268_v22 = vld [vmem:[%s13127_s1 + $0x63c] ss:$24 sps:$4 sm:$0xff]  }
 0x2af   : > { %3321 = vmatpush1.bf16.msra.mxu1 %v9236_v31  ;;  %3579 = vmatpush1.bf16.msra.mxu0 %v9237_v37  ;;  %v8382_v31 = vld [vmem:[%s13128_s2 + $0x64] ss:$24 sps:$4 sm:$0xff]   ;;  %v8380_v37 = vld [vmem:[%s13128_s2 + $0x60] ss:$24 sps:$4 sm:$0xff]  }
 0x2b0   : > { %3322 = vmatprep.subr.bf16.mxu1 %v9238_v62  ;;  %3580 = vmatprep.subr.bf16.mxu0 %v9239_v56  ;;  %v8385_v62 = vld [vmem:[%s13128_s2 + $0x94] ss:$24 sps:$4 sm:$0xff]   ;;  %v8383_v56 = vld [vmem:[%s13128_s2 + $0x90] ss:$24 sps:$4 sm:$0xff]  }
 0x2b3   : > { %3323 = vmatpush1.bf16.msra.mxu1 %v9240_v50  ;;  %3581 = vmatpush1.bf16.msra.mxu0 %v9241_v47  ;;  %v8407_v50 = vld [vmem:[%s13128_s2 + $0x210] ss:$24 sps:$4 sm:$0xff]   ;;  %v8412_v47 = vld [vmem:[%s13128_s2 + $0x244] ss:$24 sps:$4 sm:$0xff]  }
 0x2b4   : > { %3324 = vmatprep.subr.bf16.mxu1 %v9242_v43  ;;  %3582 = vmatprep.subr.bf16.mxu0 %v9243_v39  ;;  %v8410_v43 = vld [vmem:[%s13128_s2 + $0x240] ss:$24 sps:$4 sm:$0xff]  }
 0x2b5   : > { %v13222_v39 = vld [vmem:[#allocation5_spill] sm:$0xff] }
 0x2b7   : > { %3325 = vmatpush1.bf16.msra.mxu1 %v9244_v36  ;;  %3583 = vmatpush1.bf16.msra.mxu0 %v9245_v29  ;;  %v8415_v36 = vld [vmem:[%s13128_s2 + $0x274] ss:$24 sps:$4 sm:$0xff]   ;;  %v13223_v29 = vld [vmem:[#allocation6_spill] sm:$0xff] }
 0x2b8   : > { %3326 = vmatprep.subr.bf16.mxu1 %v9246_v27  ;;  %3584 = vmatprep.subr.bf16.mxu0 %v9247_v25  ;;  %v8413_v27 = vld [vmem:[%s13128_s2 + $0x270] ss:$24 sps:$4 sm:$0xff]  }
 0x2b9   : > { %v13224_v25 = vld [vmem:[#allocation7_spill] sm:$0xff] }
 0x2bb   : > { %3327 = vmatpush1.bf16.msra.mxu1 %v9248_v14  ;;  %3585 = vmatpush1.bf16.msra.mxu0 %v9249_v21  ;;  %v8418_v14 = vld [vmem:[%s13128_s2 + $0x2a4] ss:$24 sps:$4 sm:$0xff]   ;;  %v13225_v21 = vld [vmem:[#allocation8_spill] sm:$0xff] }
 0x2bc   : > { %3328 = vmatprep.subr.bf16.mxu1 %v9250_v19  ;;  %3586 = vmatprep.subr.bf16.mxu0 %v9251_v16  ;;  %v8416_v19 = vld [vmem:[%s13128_s2 + $0x2a0] ss:$24 sps:$4 sm:$0xff]  }
 0x2bd   : > { %v13226_v16 = vld [vmem:[#allocation9_spill] sm:$0xff] }
 0x2bf   : > { %3329 = vmatpush1.bf16.msra.mxu1 %v9252_v44  ;;  %3587 = vmatpush1.bf16.msra.mxu0 %v9253_v48  ;;  %v8421_v44 = vld [vmem:[%s13128_s2 + $0x2d4] ss:$24 sps:$4 sm:$0xff]   ;;  %v13227_v48 = vld [vmem:[#allocation10_spill] sm:$0xff] }
 0x2c0   : > { %3330 = vmatprep.subr.bf16.mxu1 %v9254_v34  ;;  %3588 = vmatprep.subr.bf16.mxu0 %v9255_v54  ;;  %v8419_v34 = vld [vmem:[%s13128_s2 + $0x2d0] ss:$24 sps:$4 sm:$0xff]  }
 0x2c1   : > { %v13228_v54 = vld [vmem:[#allocation11_spill] sm:$0xff] }
 0x2c3   : > { %3331 = vmatpush1.bf16.msra.mxu1 %v9256_v51  ;;  %3589 = vmatpush1.bf16.msra.mxu0 %v9257_v30  ;;  %v8424_v51 = vld [vmem:[%s13128_s2 + $0x304] ss:$24 sps:$4 sm:$0xff]   ;;  %v13229_v30 = vld [vmem:[#allocation12_spill] sm:$0xff] }
 0x2c4   : > { %3332 = vmatprep.subr.bf16.mxu1 %v9258_v58  ;;  %3590 = vmatprep.subr.bf16.mxu0 %v9259_v6  ;;  %v8422_v58 = vld [vmem:[%s13128_s2 + $0x300] ss:$24 sps:$4 sm:$0xff]  }
 0x2c5   : > { %v13230_v6 = vld [vmem:[#allocation13_spill] sm:$0xff] }
 0x2c7   : > { %3333 = vmatpush1.bf16.msra.mxu1 %v9260_v0  ;;  %3591 = vmatpush1.bf16.msra.mxu0 %v9261_v3  ;;  %v8427_v0 = vld [vmem:[%s13128_s2 + $0x334] ss:$24 sps:$4 sm:$0xff]   ;;  %v13231_v3 = vld [vmem:[#allocation14_spill] sm:$0xff] }
 0x2c8   : > { %3334 = vmatprep.subr.bf16.mxu1 %v9262_v5  ;;  %3592 = vmatprep.subr.bf16.mxu0 %v9263_v9  ;;  %v8425_v5 = vld [vmem:[%s13128_s2 + $0x330] ss:$24 sps:$4 sm:$0xff]  }
 0x2c9   : > { %v13232_v9 = vld [vmem:[#allocation15_spill] sm:$0xff] }
 0x2cb   : > { %3335 = vmatpush1.bf16.msra.mxu1 %v9264_v17  ;;  %3593 = vmatpush1.bf16.msra.mxu0 %v9265_v20  ;;  %v13233_v17 = vld [vmem:[#allocation16_spill] sm:$0xff]  ;;  %v8428_v20 = vld [vmem:[%s13128_s2 + $0x360] ss:$24 sps:$4 sm:$0xff]  }
 0x2cc   : > { %3347 = vmatprep.subr.bf16.mxu1 %v9266_v28  ;;  %5909 = vmatprep.subr.bf16.mxu0 %v8376_v15  ;;  %v8430_v15 = vld [vmem:[%s13128_s2 + $0x364] ss:$24 sps:$4 sm:$0xff]   ;;  %v8433_v28 = vld [vmem:[%s13128_s2 + $0x394] ss:$24 sps:$4 sm:$0xff]  }
 0x2ce   : > { %3337 = vmatmul.mubr.bf16.vlgmr.msra.gmra.mrb[4].mxu1 %v9510_v12  ;;  %3595 = vmatmul.mubr.bf16.vlgmr.msra.gmra.mrb[0].mxu0 %v9942_v13 }
 0x2cf   : > { %3348 = vmatpush1.bf16.msra.mxu1 %v9267_v61  ;;  %5910 = vmatpush1.bf16.msra.mxu0 %v8374_v23  ;;  %v13234_v23 = vld [vmem:[#allocation17_spill] sm:$0xff]  ;;  %v8431_v61 = vld [vmem:[%s13128_s2 + $0x390] ss:$24 sps:$4 sm:$0xff]  }
 0x2d0   : > { %3349 = vmatprep.subr.bf16.mxu1 %v9268_v22  ;;  %5911 = vmatprep.subr.bf16.mxu0 %v8379_v26  ;;  %v13235_v26 = vld [vmem:[#allocation18_spill] sm:$0xff] }
 0x2d1   : > { %3379 = vmatprep.mubr.bf16.mxu1 %v9643_v2  ;;  %5941 = vmatprep.mubr.bf16.mxu0 %v9474_v52  ;;  %v8436_v22 = vld [vmem:[%s13128_s2 + $0x3c4] ss:$24 sps:$4 sm:$0xff]  }
 0x2d3   : > { %3350 = vmatpush1.bf16.msra.mxu1 %v10575_v32  ;;  %5912 = vmatpush1.bf16.msra.mxu0 %v8377_v24  ;;  %v8388_v32 = vld [vmem:[%s13128_s2 + $0xc4] ss:$24 sps:$4 sm:$0xff]   ;;  %v13236_v24 = vld [vmem:[#allocation19_spill] sm:$0xff] }
 0x2d4   : > { %3351 = vmatprep.subr.bf16.mxu1 %v10582_v33  ;;  %5913 = vmatprep.subr.bf16.mxu0 %v8382_v31  ;;  %v8386_v33 = vld [vmem:[%s13128_s2 + $0xc0] ss:$24 sps:$4 sm:$0xff]   ;;  %v13237_v31 = vld [vmem:[#allocation20_spill] sm:$0xff] }
 0x2d7   : > { %3352 = vmatpush1.bf16.msra.mxu1 %v10593_v35  ;;  %5914 = vmatpush1.bf16.msra.mxu0 %v8380_v37  ;;  %v8391_v35 = vld [vmem:[%s13128_s2 + $0xf4] ss:$24 sps:$4 sm:$0xff]   ;;  %v8434_v37 = vld [vmem:[%s13128_s2 + $0x3c0] ss:$24 sps:$4 sm:$0xff]  }
 0x2d8   : > { %3353 = vmatprep.subr.bf16.mxu1 %v10600_v38  ;;  %5915 = vmatprep.subr.bf16.mxu0 %v8385_v62  ;;  %v8389_v38 = vld [vmem:[%s13128_s2 + $0xf0] ss:$24 sps:$4 sm:$0xff]   ;;  %v13238_v62 = vld [vmem:[#allocation21_spill] sm:$0xff] }
 0x2db   : > { %3354 = vmatpush1.bf16.msra.mxu1 %v10613_v40  ;;  %5916 = vmatpush1.bf16.msra.mxu0 %v8383_v56  ;;  %v8394_v40 = vld [vmem:[%s13128_s2 + $0x124] ss:$24 sps:$4 sm:$0xff]   ;;  %v8439_v56 = vld [vmem:[%s13128_s2 + $0x3f4] ss:$24 sps:$4 sm:$0xff]  }
 0x2dc   : > { %3355 = vmatprep.subr.bf16.mxu1 %v10618_v41  ;;  %5917 = vmatprep.subr.bf16.mxu0 %v8388_v32  ;;  %v8392_v41 = vld [vmem:[%s13128_s2 + $0x120] ss:$24 sps:$4 sm:$0xff]  }
 0x2dd   : > { %v13239_v32 = vld [vmem:[#allocation22_spill] sm:$0xff] }
 0x2df   : > { %3356 = vmatpush1.bf16.msra.mxu1 %v10631_v45  ;;  %5918 = vmatpush1.bf16.msra.mxu0 %v8386_v33  ;;  %v8397_v45 = vld [vmem:[%s13128_s2 + $0x154] ss:$24 sps:$4 sm:$0xff]   ;;  %v8437_v33 = vld [vmem:[%s13128_s2 + $0x3f0] ss:$24 sps:$4 sm:$0xff]  }
 0x2e0   : > { %3357 = vmatprep.subr.bf16.mxu1 %v10636_v46  ;;  %5919 = vmatprep.subr.bf16.mxu0 %v8391_v35  ;;  %v8395_v46 = vld [vmem:[%s13128_s2 + $0x150] ss:$24 sps:$4 sm:$0xff]  }
 0x2e1   : > { %v13240_v35 = vld [vmem:[#allocation23_spill] sm:$0xff] }
 0x2e3   : > { %3358 = vmatpush1.bf16.msra.mxu1 %v10649_v49  ;;  %5920 = vmatpush1.bf16.msra.mxu0 %v8389_v38  ;;  %v8400_v49 = vld [vmem:[%s13128_s2 + $0x184] ss:$24 sps:$4 sm:$0xff]  }
 0x2e4   : > { %3359 = vmatprep.subr.bf16.mxu1 %v10662_v53  ;;  %5921 = vmatprep.subr.bf16.mxu0 %v8394_v40  ;;  %v8398_v53 = vld [vmem:[%s13128_s2 + $0x180] ss:$24 sps:$4 sm:$0xff]   ;;  %v8442_v38 = vld [vmem:[%s13128_s2 + $0x424] ss:$24 sps:$4 sm:$0xff]  }
 0x2e7   : > { %3360 = vmatpush1.bf16.msra.mxu1 %v10671_v55  ;;  %5922 = vmatpush1.bf16.msra.mxu0 %v8392_v41  ;;  %v8403_v55 = vld [vmem:[%s13128_s2 + $0x1b4] ss:$24 sps:$4 sm:$0xff]  }
 0x2e8   : > { %3361 = vmatprep.subr.bf16.mxu1 %v10680_v57  ;;  %5923 = vmatprep.subr.bf16.mxu0 %v8397_v45  ;;  %v8401_v57 = vld [vmem:[%s13128_s2 + $0x1b0] ss:$24 sps:$4 sm:$0xff]  }
 0x2e9   : > { %v13241_v45 = vld [vmem:[#allocation24_spill] sm:$0xff] }
 0x2eb   : > { %3362 = vmatpush1.bf16.msra.mxu1 %v10689_v60  ;;  %5924 = vmatpush1.bf16.msra.mxu0 %v8395_v46  ;;  %v8406_v60 = vld [vmem:[%s13128_s2 + $0x1e4] ss:$24 sps:$4 sm:$0xff]   ;;  %v8440_v46 = vld [vmem:[%s13128_s2 + $0x420] ss:$24 sps:$4 sm:$0xff]  }
 0x2ec   : > { %3363 = vmatprep.subr.bf16.mxu1 %v10698_v63  ;;  %5925 = vmatprep.subr.bf16.mxu0 %v8400_v49  ;;  %v8404_v63 = vld [vmem:[%s13128_s2 + $0x1e0] ss:$24 sps:$4 sm:$0xff]  }
 0x2ef   : > { %3364 = vmatpush1.bf16.msra.mxu1 %v10707_v1  ;;  %5926 = vmatpush1.bf16.msra.mxu0 %v8398_v53  ;;  %v8409_v1 = vld [vmem:[%s13128_s2 + $0x214] ss:$24 sps:$4 sm:$0xff]   ;;  %v13242_v53 = vld [vmem:[#allocation25_spill] sm:$0xff] }
 0x2f0   : > { %3365 = vmatprep.subr.bf16.mxu1 %v10716_v4  ;;  %5927 = vmatprep.subr.bf16.mxu0 %v8403_v55  ;;  %v13219_v4 = vld [vmem:[#allocation2_spill] sm:$0xff]  ;;  %v8445_v55 = vld [vmem:[%s13128_s2 + $0x454] ss:$24 sps:$4 sm:$0xff]  }
 0x2f3   : > { %3366 = vmatpush1.bf16.msra.mxu1 %v10725_v7  ;;  %5928 = vmatpush1.bf16.msra.mxu0 %v8401_v57  ;;  %v13220_v7 = vld [vmem:[#allocation3_spill] sm:$0xff] }
 0x2f4   : > { %3367 = vmatprep.subr.bf16.mxu1 %v10734_v10  ;;  %5929 = vmatprep.subr.bf16.mxu0 %v8406_v60  ;;  %v13221_v10 = vld [vmem:[#allocation4_spill] sm:$0xff]  ;;  %v13243_v60 = vld [vmem:[#allocation29_spill] sm:$0xff] }
 0x2f7   : > { %3368 = vmatpush1.bf16.msra.mxu1 %v13219_v4  ;;  %5930 = vmatpush1.bf16.msra.mxu0 %v8404_v63  ;;  %v8443_v63 = vld [vmem:[%s13128_s2 + $0x450] ss:$24 sps:$4 sm:$0xff]   ;;  %v8448_v4 = vld [vmem:[%s13128_s2 + $0x484] ss:$24 sps:$4 sm:$0xff]  }
 0x2f8   : > { %3369 = vmatprep.subr.bf16.mxu1 %v13220_v7  ;;  %5931 = vmatprep.subr.bf16.mxu0 %v8409_v1  ;;  %v13244_v1 = vld [vmem:[#allocation31_spill] sm:$0xff]  ;;  %v8446_v7 = vld [vmem:[%s13128_s2 + $0x480] ss:$24 sps:$4 sm:$0xff]  }
 0x2fb   : > { %3370 = vmatpush1.bf16.msra.mxu1 %v13221_v10  ;;  %5932 = vmatpush1.bf16.msra.mxu0 %v8407_v50  ;;  %v13245_v50 = vld [vmem:[#allocation32_spill] sm:$0xff] }
 0x2fc   : > { %3371 = vmatprep.subr.bf16.mxu1 %v13222_v39  ;;  %5933 = vmatprep.subr.bf16.mxu0 %v8412_v47  ;;  %v13246_v47 = vld [vmem:[#allocation33_spill] sm:$0xff]  ;;  %v8451_v10 = vld [vmem:[%s13128_s2 + $0x4b4] ss:$24 sps:$4 sm:$0xff]   ;;  %v8449_v39 = vld [vmem:[%s13128_s2 + $0x4b0] ss:$24 sps:$4 sm:$0xff]  }
 0x2ff   : > { %3372 = vmatpush1.bf16.msra.mxu1 %v13223_v29  ;;  %5934 = vmatpush1.bf16.msra.mxu0 %v8410_v43  ;;  %v13247_v43 = vld [vmem:[#allocation34_spill] sm:$0xff] }
 0x300   : > { %3373 = vmatprep.subr.bf16.mxu1 %v13224_v25  ;;  %5935 = vmatprep.subr.bf16.mxu0 %v8415_v36  ;;  %v13248_v36 = vld [vmem:[#allocation35_spill] sm:$0xff]  ;;  %v8454_v29 = vld [vmem:[%s13128_s2 + $0x4e4] ss:$24 sps:$4 sm:$0xff]   ;;  %v8452_v25 = vld [vmem:[%s13128_s2 + $0x4e0] ss:$24 sps:$4 sm:$0xff]  }
 0x303   : > { %3374 = vmatpush1.bf16.msra.mxu1 %v13225_v21  ;;  %5936 = vmatpush1.bf16.msra.mxu0 %v8413_v27  ;;  %v13249_v27 = vld [vmem:[#allocation36_spill] sm:$0xff] }
 0x304   : > { %3375 = vmatprep.subr.bf16.mxu1 %v13226_v16  ;;  %5937 = vmatprep.subr.bf16.mxu0 %v8418_v14  ;;  %v13250_v14 = vld [vmem:[#allocation37_spill] sm:$0xff]  ;;  %v8457_v21 = vld [vmem:[%s13128_s2 + $0x514] ss:$24 sps:$4 sm:$0xff]   ;;  %v8455_v16 = vld [vmem:[%s13128_s2 + $0x510] ss:$24 sps:$4 sm:$0xff]  }
 0x307   : > { %3376 = vmatpush1.bf16.msra.mxu1 %v13227_v48  ;;  %5938 = vmatpush1.bf16.msra.mxu0 %v8416_v19  ;;  %v13251_v19 = vld [vmem:[#allocation38_spill] sm:$0xff] }
 0x308   : > { %3377 = vmatprep.subr.bf16.mxu1 %v13228_v54  ;;  %5939 = vmatprep.subr.bf16.mxu0 %v8421_v44  ;;  %v13252_v44 = vld [vmem:[#allocation39_spill] sm:$0xff]  ;;  %v8460_v48 = vld [vmem:[%s13128_s2 + $0x544] ss:$24 sps:$4 sm:$0xff]   ;;  %v8458_v54 = vld [vmem:[%s13128_s2 + $0x540] ss:$24 sps:$4 sm:$0xff]  }
 0x30b   : > { %3378 = vmatpush1.bf16.msra.mxu1 %v13229_v30  ;;  %5940 = vmatpush1.bf16.msra.mxu0 %v8419_v34  ;;  %v13253_v34 = vld [vmem:[#allocation40_spill] sm:$0xff] }
 0x30c   : > { %3390 = vmatprep.subr.bf16.mxu1 %v13230_v6  ;;  %5952 = vmatprep.subr.bf16.mxu0 %v8424_v51  ;;  %v13254_v51 = vld [vmem:[#allocation41_spill] sm:$0xff]  ;;  %v8463_v30 = vld [vmem:[%s13128_s2 + $0x574] ss:$24 sps:$4 sm:$0xff]   ;;  %v8461_v6 = vld [vmem:[%s13128_s2 + $0x570] ss:$24 sps:$4 sm:$0xff]  }
 0x30e   : > { %3380 = vmatmul.mubr.bf16.vlgmr.msra.gmra.mrb[4].mxu1 %v9730_v42  ;;  %5942 = vmatmul.mubr.bf16.vlgmr.msra.gmra.mrb[4].mxu0 %v9508_v11 }
 0x30f   : > { %3391 = vmatpush1.bf16.msra.mxu1 %v13231_v3  ;;  %5953 = vmatpush1.bf16.msra.mxu0 %v8422_v58  ;;  %v13255_v58 = vld [vmem:[#allocation42_spill] sm:$0xff] }
 0x310   : > { %3392 = vmatprep.subr.bf16.mxu1 %v13232_v9  ;;  %5954 = vmatprep.subr.bf16.mxu0 %v8427_v0  ;;  %v13256_v0 = vld [vmem:[#allocation43_spill] sm:$0xff]  ;;  %v8466_v3 = vld [vmem:[%s13128_s2 + $0x5a4] ss:$24 sps:$4 sm:$0xff]   ;;  %v8464_v9 = vld [vmem:[%s13128_s2 + $0x5a0] ss:$24 sps:$4 sm:$0xff]  }
 0x311   : > { %3422 = vmatprep.mubr.bf16.mxu1 %v9795_v8  ;;  %5984 = vmatprep.mubr.bf16.mxu0 %v9486_v59 }
 0x313   : > { %3393 = vmatpush1.bf16.msra.mxu1 %v13233_v17  ;;  %5955 = vmatpush1.bf16.msra.mxu0 %v8425_v5  ;;  %v13257_v5 = vld [vmem:[#allocation44_spill] sm:$0xff] }
 0x314   : > { %3394 = vmatprep.subr.bf16.mxu1 %v13234_v23  ;;  %5956 = vmatprep.subr.bf16.mxu0 %v8430_v15  ;;  %v13258_v15 = vld [vmem:[#allocation45_spill] sm:$0xff]  ;;  %v8469_v17 = vld [vmem:[%s13128_s2 + $0x5d4] ss:$24 sps:$4 sm:$0xff]   ;;  %v8467_v23 = vld [vmem:[%s13128_s2 + $0x5d0] ss:$24 sps:$4 sm:$0xff]  }
 0x317   : > { %3395 = vmatpush1.bf16.msra.mxu1 %v13235_v26  ;;  %5957 = vmatpush1.bf16.msra.mxu0 %v8428_v20  ;;  %v13259_v20 = vld [vmem:[#allocation46_spill] sm:$0xff] }
 0x318   : > { %3396 = vmatprep.subr.bf16.mxu1 %v13236_v24  ;;  %5958 = vmatprep.subr.bf16.mxu0 %v8433_v28  ;;  %v13260_v28 = vld [vmem:[#allocation47_spill] sm:$0xff]  ;;  %v8472_v26 = vld [vmem:[%s13128_s2 + $0x604] ss:$24 sps:$4 sm:$0xff]   ;;  %v8470_v24 = vld [vmem:[%s13128_s2 + $0x600] ss:$24 sps:$4 sm:$0xff]  }
 0x31b   : > { %3397 = vmatpush1.bf16.msra.mxu1 %v13237_v31  ;;  %5959 = vmatpush1.bf16.msra.mxu0 %v8431_v61  ;;  %v8475_v61 = vld [vmem:[%s13128_s2 + $0xc] ss:$24 sps:$4 sm:$0xff]  }
 0x31c   : > { %3398 = vmatprep.subr.bf16.mxu1 %v13238_v62  ;;  %5960 = vmatprep.subr.bf16.mxu0 %v8436_v22  ;;  %v8473_v22 = vld [vmem:[%s13128_s2 + $0x8] ss:$24 sps:$4 sm:$0xff]   ;;  %v8478_v31 = vld [vmem:[%s13128_s2 + $0x634] ss:$24 sps:$4 sm:$0xff]   ;;  %v8479_v62 = vld [vmem:[%s13128_s2 + $0x38] ss:$24 sps:$4 sm:$0xff]  }
 0x31f   : > { %3399 = vmatpush1.bf16.msra.mxu1 %v13239_v32  ;;  %5961 = vmatpush1.bf16.msra.mxu0 %v8434_v37  ;;  %v8481_v37 = vld [vmem:[%s13128_s2 + $0x3c] ss:$24 sps:$4 sm:$0xff]   ;;  %v8487_v32 = vld [vmem:[%s13128_s2 + $0x6c] ss:$24 sps:$4 sm:$0xff]  }
 0x320   : > { %3400 = vmatprep.subr.bf16.mxu1 %v13240_v35  ;;  %5962 = vmatprep.subr.bf16.mxu0 %v8439_v56  ;;  %v8484_v56 = vld [vmem:[%s13128_s2 + $0x664] ss:$24 sps:$4 sm:$0xff]   ;;  %v8485_v35 = vld [vmem:[%s13128_s2 + $0x68] ss:$24 sps:$4 sm:$0xff]  }
 0x321   : > { %v11955_v40 = vpop.f32.mrb[8].mxu1 }
 0x322   : > { %v11957_v41 = vpop.f32.mrb[9].mxu1 }
 0x323   : > { %3401 = vmatpush1.bf16.msra.mxu1 %v13241_v45  ;;  %5963 = vmatpush1.bf16.msra.mxu0 %v8437_v33  ;;  %v11963_v49 = vpop.f32.mrb[10].mxu1  ;;  %v8482_v33 = vld [vmem:[%s13128_s2 + $0x660] ss:$24 sps:$4 sm:$0xff]   ;;  %v8493_v45 = vld [vmem:[%s13128_s2 + $0x9c] ss:$24 sps:$4 sm:$0xff]  }
 0x324   : > { %3402 = vmatprep.subr.bf16.mxu1 %v13242_v53  ;;  %5964 = vmatprep.subr.bf16.mxu0 %v8442_v38  ;;  %v11969_v57 = vpop.f32.mrb[11].mxu1  ;;  %v8490_v38 = vld [vmem:[%s13128_s2 + $0x694] ss:$24 sps:$4 sm:$0xff]   ;;  %v8491_v53 = vld [vmem:[%s13128_s2 + $0x98] ss:$24 sps:$4 sm:$0xff]  }
 0x327   : > { %3403 = vmatpush1.bf16.msra.mxu1 %v13243_v60  ;;  %5965 = vmatpush1.bf16.msra.mxu0 %v8440_v46  ;;  %v8488_v46 = vld [vmem:[%s13128_s2 + $0x690] ss:$24 sps:$4 sm:$0xff]   ;;  %v8499_v60 = vld [vmem:[%s13128_s2 + $0xcc] ss:$24 sps:$4 sm:$0xff]  }
 0x328   : > { %3404 = vmatprep.subr.bf16.mxu1 %v13244_v1  ;;  %5966 = vmatprep.subr.bf16.mxu0 %v8445_v55  ;;  %v8496_v55 = vld [vmem:[%s13128_s2 + $0x6c4] ss:$24 sps:$4 sm:$0xff]   ;;  %v8497_v1 = vld [vmem:[%s13128_s2 + $0xc8] ss:$24 sps:$4 sm:$0xff]  }
 0x32b   : > { %3405 = vmatpush1.bf16.msra.mxu1 %v13245_v50  ;;  %5967 = vmatpush1.bf16.msra.mxu0 %v8443_v63  ;;  %v8494_v63 = vld [vmem:[%s13128_s2 + $0x6c0] ss:$24 sps:$4 sm:$0xff]   ;;  %v8505_v50 = vld [vmem:[%s13128_s2 + $0xfc] ss:$24 sps:$4 sm:$0xff]  }
 0x32c   : > { %3406 = vmatprep.subr.bf16.mxu1 %v13246_v47  ;;  %5968 = vmatprep.subr.bf16.mxu0 %v8448_v4  ;;  %v8502_v4 = vld [vmem:[%s13128_s2 + $0x6f4] ss:$24 sps:$4 sm:$0xff]   ;;  %v8503_v47 = vld [vmem:[%s13128_s2 + $0xf8] ss:$24 sps:$4 sm:$0xff]  }
 0x32f   : > { %3407 = vmatpush1.bf16.msra.mxu1 %v13247_v43  ;;  %5969 = vmatpush1.bf16.msra.mxu0 %v8446_v7  ;;  %v8500_v7 = vld [vmem:[%s13128_s2 + $0x6f0] ss:$24 sps:$4 sm:$0xff]   ;;  %v8511_v43 = vld [vmem:[%s13128_s2 + $0x12c] ss:$24 sps:$4 sm:$0xff]  }
 0x330   : > { %3408 = vmatprep.subr.bf16.mxu1 %v13248_v36  ;;  %5970 = vmatprep.subr.bf16.mxu0 %v8451_v10  ;;  %v8508_v10 = vld [vmem:[%s13128_s2 + $0x724] ss:$24 sps:$4 sm:$0xff]   ;;  %v8509_v36 = vld [vmem:[%s13128_s2 + $0x128] ss:$24 sps:$4 sm:$0xff]  }
 0x333   : > { %3409 = vmatpush1.bf16.msra.mxu1 %v13249_v27  ;;  %5971 = vmatpush1.bf16.msra.mxu0 %v8449_v39  ;;  %v8506_v39 = vld [vmem:[%s13128_s2 + $0x720] ss:$24 sps:$4 sm:$0xff]   ;;  %v8517_v27 = vld [vmem:[%s13128_s2 + $0x15c] ss:$24 sps:$4 sm:$0xff]  }
 0x334   : > { %3410 = vmatprep.subr.bf16.mxu1 %v13250_v14  ;;  %5972 = vmatprep.subr.bf16.mxu0 %v8454_v29  ;;  %v8514_v29 = vld [vmem:[%s13128_s2 + $0x754] ss:$24 sps:$4 sm:$0xff]   ;;  %v8515_v14 = vld [vmem:[%s13128_s2 + $0x158] ss:$24 sps:$4 sm:$0xff]  }
 0x337   : > { %3411 = vmatpush1.bf16.msra.mxu1 %v13251_v19  ;;  %5973 = vmatpush1.bf16.msra.mxu0 %v8452_v25  ;;  %v8512_v25 = vld [vmem:[%s13128_s2 + $0x750] ss:$24 sps:$4 sm:$0xff]   ;;  %v8523_v19 = vld [vmem:[%s13128_s2 + $0x18c] ss:$24 sps:$4 sm:$0xff]  }
 0x338   : > { %3412 = vmatprep.subr.bf16.mxu1 %v13252_v44  ;;  %5974 = vmatprep.subr.bf16.mxu0 %v8457_v21  ;;  %v8520_v21 = vld [vmem:[%s13128_s2 + $0x784] ss:$24 sps:$4 sm:$0xff]   ;;  %v8521_v44 = vld [vmem:[%s13128_s2 + $0x188] ss:$24 sps:$4 sm:$0xff]  }
 0x33b   : > { %3413 = vmatpush1.bf16.msra.mxu1 %v13253_v34  ;;  %5975 = vmatpush1.bf16.msra.mxu0 %v8455_v16  ;;  %v8518_v16 = vld [vmem:[%s13128_s2 + $0x780] ss:$24 sps:$4 sm:$0xff]   ;;  %v8529_v34 = vld [vmem:[%s13128_s2 + $0x1bc] ss:$24 sps:$4 sm:$0xff]  }
 0x33c   : > { %3414 = vmatprep.subr.bf16.mxu1 %v13254_v51  ;;  %5976 = vmatprep.subr.bf16.mxu0 %v8460_v48  ;;  %v8526_v48 = vld [vmem:[%s13128_s2 + $0x7b4] ss:$24 sps:$4 sm:$0xff]   ;;  %v8527_v51 = vld [vmem:[%s13128_s2 + $0x1b8] ss:$24 sps:$4 sm:$0xff]  }
 0x33f   : > { %3415 = vmatpush1.bf16.msra.mxu1 %v13255_v58  ;;  %5977 = vmatpush1.bf16.msra.mxu0 %v8458_v54  ;;  %v8524_v54 = vld [vmem:[%s13128_s2 + $0x7b0] ss:$24 sps:$4 sm:$0xff]   ;;  %v8535_v58 = vld [vmem:[%s13128_s2 + $0x1ec] ss:$24 sps:$4 sm:$0xff]  }
 0x340   : > { %3416 = vmatprep.subr.bf16.mxu1 %v13256_v0  ;;  %5978 = vmatprep.subr.bf16.mxu0 %v8463_v30  ;;  %v8532_v30 = vld [vmem:[%s13128_s2 + $0x7e4] ss:$24 sps:$4 sm:$0xff]   ;;  %v8533_v0 = vld [vmem:[%s13128_s2 + $0x1e8] ss:$24 sps:$4 sm:$0xff]  }
 0x343   : > { %3417 = vmatpush1.bf16.msra.mxu1 %v13257_v5  ;;  %5979 = vmatpush1.bf16.msra.mxu0 %v8461_v6  ;;  %v8530_v6 = vld [vmem:[%s13128_s2 + $0x7e0] ss:$24 sps:$4 sm:$0xff]   ;;  %v8541_v5 = vld [vmem:[%s13128_s2 + $0x21c] ss:$24 sps:$4 sm:$0xff]  }
 0x344   : > { %3418 = vmatprep.subr.bf16.mxu1 %v13258_v15  ;;  %5980 = vmatprep.subr.bf16.mxu0 %v8466_v3  ;;  %v8538_v3 = vld [vmem:[%s13128_s2 + $0x814] ss:$24 sps:$4 sm:$0xff]   ;;  %v8539_v15 = vld [vmem:[%s13128_s2 + $0x218] ss:$24 sps:$4 sm:$0xff]  }
 0x347   : > { %3419 = vmatpush1.bf16.msra.mxu1 %v13259_v20  ;;  %5981 = vmatpush1.bf16.msra.mxu0 %v8464_v9  ;;  %v8536_v9 = vld [vmem:[%s13128_s2 + $0x810] ss:$24 sps:$4 sm:$0xff]   ;;  %v8547_v20 = vld [vmem:[%s13128_s2 + $0x24c] ss:$24 sps:$4 sm:$0xff]  }
 0x348   : > { %3420 = vmatprep.subr.bf16.mxu1 %v13260_v28  ;;  %5982 = vmatprep.subr.bf16.mxu0 %v8469_v17  ;;  %v8544_v17 = vld [vmem:[%s13128_s2 + $0x844] ss:$24 sps:$4 sm:$0xff]   ;;  %v8545_v28 = vld [vmem:[%s13128_s2 + $0x248] ss:$24 sps:$4 sm:$0xff]  }
 0x34b   : > { %3421 = vmatpush1.bf16.msra.mxu1 %v11228_v18  ;;  %5983 = vmatpush1.bf16.msra.mxu0 %v8467_v23  ;;  %v8476_v18 = vld [vmem:[%s13128_s2 + $0x630] ss:$24 sps:$4 sm:$0xff]   ;;  %v8542_v23 = vld [vmem:[%s13128_s2 + $0x840] ss:$24 sps:$4 sm:$0xff]  }
 0x34c   : > { %5995 = vmatprep.subr.bf16.mxu0 %v8472_v26  ;;  %6081 = vmatprep.subr.bf16.mxu1 %v8475_v61  ;;  %v8550_v26 = vld [vmem:[%s13128_s2 + $0x874] ss:$24 sps:$4 sm:$0xff]  }
 0x34d   : > { %v8553_v61 = vld [vmem:[%s13128_s2 + $0x27c] ss:$24 sps:$4 sm:$0xff]  }
 0x34e   : > { %3423 = vmatmul.mubr.bf16.vlgmr.msra.gmra.mrb[4].mxu1 %v9942_v13  ;;  %5985 = vmatmul.mubr.bf16.vlgmr.msra.gmra.mrb[4].mxu0 %v9510_v12 }
 0x34f   : > { %5996 = vmatpush1.bf16.msra.mxu0 %v8470_v24  ;;  %6082 = vmatpush1.bf16.msra.mxu1 %v8473_v22  ;;  %v8548_v24 = vld [vmem:[%s13128_s2 + $0x870] ss:$24 sps:$4 sm:$0xff]  }
 0x350   : > { %5997 = vmatprep.subr.bf16.mxu0 %v8478_v31  ;;  %6083 = vmatprep.subr.bf16.mxu1 %v8481_v37  ;;  %v8551_v22 = vld [vmem:[%s13128_s2 + $0x278] ss:$24 sps:$4 sm:$0xff]   ;;  %v8556_v31 = vld [vmem:[%s13128_s2 + $0x8a4] ss:$24 sps:$4 sm:$0xff]  }
 0x351   : > { %6027 = vmatprep.mubr.bf16.mxu0 %v9643_v2  ;;  %6113 = vmatprep.mubr.bf16.mxu1 %v9474_v52  ;;  %v8559_v37 = vld [vmem:[%s13128_s2 + $0x2ac] ss:$24 sps:$4 sm:$0xff]  }
 0x353   : > { %5998 = vmatpush1.bf16.msra.mxu0 %v8476_v18  ;;  %6084 = vmatpush1.bf16.msra.mxu1 %v8479_v62  ;;  %v8554_v18 = vld [vmem:[%s13128_s2 + $0x8a0] ss:$24 sps:$4 sm:$0xff]  }
 0x354   : > { %5999 = vmatprep.subr.bf16.mxu0 %v8484_v56  ;;  %6085 = vmatprep.subr.bf16.mxu1 %v8487_v32  ;;  %v8557_v62 = vld [vmem:[%s13128_s2 + $0x2a8] ss:$24 sps:$4 sm:$0xff]   ;;  %v8562_v56 = vld [vmem:[%s13128_s2 + $0x8d4] ss:$24 sps:$4 sm:$0xff]  }
 0x355   : > { %v8565_v32 = vld [vmem:[%s13128_s2 + $0x2dc] ss:$24 sps:$4 sm:$0xff]  }
 0x357   : > { %6000 = vmatpush1.bf16.msra.mxu0 %v8482_v33  ;;  %6086 = vmatpush1.bf16.msra.mxu1 %v8485_v35  ;;  %v8560_v33 = vld [vmem:[%s13128_s2 + $0x8d0] ss:$24 sps:$4 sm:$0xff]  }
 0x358   : > { %6001 = vmatprep.subr.bf16.mxu0 %v8490_v38  ;;  %6087 = vmatprep.subr.bf16.mxu1 %v8493_v45  ;;  %v8563_v35 = vld [vmem:[%s13128_s2 + $0x2d8] ss:$24 sps:$4 sm:$0xff]   ;;  %v8568_v38 = vld [vmem:[%s13128_s2 + $0x904] ss:$24 sps:$4 sm:$0xff]  }
 0x359   : > { %v8571_v45 = vld [vmem:[%s13128_s2 + $0x30c] ss:$24 sps:$4 sm:$0xff]  }
 0x35b   : > { %6002 = vmatpush1.bf16.msra.mxu0 %v8488_v46  ;;  %6088 = vmatpush1.bf16.msra.mxu1 %v8491_v53  ;;  %v8566_v46 = vld [vmem:[%s13128_s2 + $0x900] ss:$24 sps:$4 sm:$0xff]  }
 0x35c   : > { %6003 = vmatprep.subr.bf16.mxu0 %v8496_v55  ;;  %6089 = vmatprep.subr.bf16.mxu1 %v8499_v60  ;;  %v8569_v53 = vld [vmem:[%s13128_s2 + $0x308] ss:$24 sps:$4 sm:$0xff]   ;;  %v8574_v55 = vld [vmem:[%s13128_s2 + $0x934] ss:$24 sps:$4 sm:$0xff]  }
 0x35d   : > { %v8577_v60 = vld [vmem:[%s13128_s2 + $0x33c] ss:$24 sps:$4 sm:$0xff]  }
 0x35f   : > { %6004 = vmatpush1.bf16.msra.mxu0 %v8494_v63  ;;  %6090 = vmatpush1.bf16.msra.mxu1 %v8497_v1  ;;  %v8572_v63 = vld [vmem:[%s13128_s2 + $0x930] ss:$24 sps:$4 sm:$0xff]  }
 0x360   : > { %6005 = vmatprep.subr.bf16.mxu0 %v8502_v4  ;;  %6091 = vmatprep.subr.bf16.mxu1 %v8505_v50  ;;  %v8575_v1 = vld [vmem:[%s13128_s2 + $0x338] ss:$24 sps:$4 sm:$0xff]   ;;  %v8580_v4 = vld [vmem:[%s13128_s2 + $0x964] ss:$24 sps:$4 sm:$0xff]  }
 0x361   : > { %v8583_v50 = vld [vmem:[%s13128_s2 + $0x36c] ss:$24 sps:$4 sm:$0xff]  }
 0x363   : > { %6006 = vmatpush1.bf16.msra.mxu0 %v8500_v7  ;;  %6092 = vmatpush1.bf16.msra.mxu1 %v8503_v47  ;;  %v8578_v7 = vld [vmem:[%s13128_s2 + $0x960] ss:$24 sps:$4 sm:$0xff]  }
 0x364   : > { %6007 = vmatprep.subr.bf16.mxu0 %v8508_v10  ;;  %6093 = vmatprep.subr.bf16.mxu1 %v8511_v43  ;;  %v8581_v47 = vld [vmem:[%s13128_s2 + $0x368] ss:$24 sps:$4 sm:$0xff]   ;;  %v8586_v10 = vld [vmem:[%s13128_s2 + $0x994] ss:$24 sps:$4 sm:$0xff]  }
 0x365   : > { %v8589_v43 = vld [vmem:[%s13128_s2 + $0x39c] ss:$24 sps:$4 sm:$0xff]  }
 0x367   : > { %6008 = vmatpush1.bf16.msra.mxu0 %v8506_v39  ;;  %6094 = vmatpush1.bf16.msra.mxu1 %v8509_v36  ;;  %v8584_v39 = vld [vmem:[%s13128_s2 + $0x990] ss:$24 sps:$4 sm:$0xff]  }
 0x368   : > { %6009 = vmatprep.subr.bf16.mxu0 %v8514_v29  ;;  %6095 = vmatprep.subr.bf16.mxu1 %v8517_v27  ;;  %v8587_v36 = vld [vmem:[%s13128_s2 + $0x398] ss:$24 sps:$4 sm:$0xff]   ;;  %v8592_v29 = vld [vmem:[%s13128_s2 + $0x9c4] ss:$24 sps:$4 sm:$0xff]  }
 0x369   : > { %v8595_v27 = vld [vmem:[%s13128_s2 + $0x3cc] ss:$24 sps:$4 sm:$0xff]  }
 0x36b   : > { %6010 = vmatpush1.bf16.msra.mxu0 %v8512_v25  ;;  %6096 = vmatpush1.bf16.msra.mxu1 %v8515_v14  ;;  %v8590_v25 = vld [vmem:[%s13128_s2 + $0x9c0] ss:$24 sps:$4 sm:$0xff]  }
 0x36c   : > { %6011 = vmatprep.subr.bf16.mxu0 %v8520_v21  ;;  %6097 = vmatprep.subr.bf16.mxu1 %v8523_v19  ;;  %v8593_v14 = vld [vmem:[%s13128_s2 + $0x3c8] ss:$24 sps:$4 sm:$0xff]   ;;  %v8598_v21 = vld [vmem:[%s13128_s2 + $0x9f4] ss:$24 sps:$4 sm:$0xff]  }
 0x36d   : > { %v8601_v19 = vld [vmem:[%s13128_s2 + $0x3fc] ss:$24 sps:$4 sm:$0xff]  }
 0x36f   : > { %6012 = vmatpush1.bf16.msra.mxu0 %v8518_v16  ;;  %6098 = vmatpush1.bf16.msra.mxu1 %v8521_v44  ;;  %v8596_v16 = vld [vmem:[%s13128_s2 + $0x9f0] ss:$24 sps:$4 sm:$0xff]  }
 0x370   : > { %6013 = vmatprep.subr.bf16.mxu0 %v8526_v48  ;;  %6099 = vmatprep.subr.bf16.mxu1 %v8529_v34  ;;  %v8599_v44 = vld [vmem:[%s13128_s2 + $0x3f8] ss:$24 sps:$4 sm:$0xff]   ;;  %v8604_v48 = vld [vmem:[%s13128_s2 + $0xa24] ss:$24 sps:$4 sm:$0xff]  }
 0x371   : > { %v8607_v34 = vld [vmem:[%s13128_s2 + $0x42c] ss:$24 sps:$4 sm:$0xff]  }
 0x373   : > { %6014 = vmatpush1.bf16.msra.mxu0 %v8524_v54  ;;  %6100 = vmatpush1.bf16.msra.mxu1 %v8527_v51  ;;  %v8602_v54 = vld [vmem:[%s13128_s2 + $0xa20] ss:$24 sps:$4 sm:$0xff]  }
 0x374   : > { %6015 = vmatprep.subr.bf16.mxu0 %v8532_v30  ;;  %6101 = vmatprep.subr.bf16.mxu1 %v8535_v58  ;;  %v8605_v51 = vld [vmem:[%s13128_s2 + $0x428] ss:$24 sps:$4 sm:$0xff]   ;;  %v8610_v30 = vld [vmem:[%s13128_s2 + $0xa54] ss:$24 sps:$4 sm:$0xff]  }
 0x375   : > { %v8613_v58 = vld [vmem:[%s13128_s2 + $0x45c] ss:$24 sps:$4 sm:$0xff]  }
 0x377   : > { %6016 = vmatpush1.bf16.msra.mxu0 %v8530_v6  ;;  %6102 = vmatpush1.bf16.msra.mxu1 %v8533_v0  ;;  %v8608_v6 = vld [vmem:[%s13128_s2 + $0xa50] ss:$24 sps:$4 sm:$0xff]  }
 0x378   : > { %6017 = vmatprep.subr.bf16.mxu0 %v8538_v3  ;;  %6103 = vmatprep.subr.bf16.mxu1 %v8541_v5  ;;  %v8611_v0 = vld [vmem:[%s13128_s2 + $0x458] ss:$24 sps:$4 sm:$0xff]   ;;  %v8616_v3 = vld [vmem:[%s13128_s2 + $0xa84] ss:$24 sps:$4 sm:$0xff]  }
 0x379   : > { %v8619_v5 = vld [vmem:[%s13128_s2 + $0x48c] ss:$24 sps:$4 sm:$0xff]  }
 0x37b   : > { %6018 = vmatpush1.bf16.msra.mxu0 %v8536_v9  ;;  %6104 = vmatpush1.bf16.msra.mxu1 %v8539_v15  ;;  %v8614_v9 = vld [vmem:[%s13128_s2 + $0xa80] ss:$24 sps:$4 sm:$0xff]  }
 0x37c   : > { %6019 = vmatprep.subr.bf16.mxu0 %v8544_v17  ;;  %6105 = vmatprep.subr.bf16.mxu1 %v8547_v20  ;;  %v8617_v15 = vld [vmem:[%s13128_s2 + $0x488] ss:$24 sps:$4 sm:$0xff]   ;;  %v8622_v17 = vld [vmem:[%s13128_s2 + $0xab4] ss:$24 sps:$4 sm:$0xff]  }
 0x37d   : > { %v8625_v20 = vld [vmem:[%s13128_s2 + $0x4bc] ss:$24 sps:$4 sm:$0xff]  }
 0x37f   : > { %6020 = vmatpush1.bf16.msra.mxu0 %v8542_v23  ;;  %6106 = vmatpush1.bf16.msra.mxu1 %v8545_v28  ;;  %v8620_v23 = vld [vmem:[%s13128_s2 + $0xab0] ss:$24 sps:$4 sm:$0xff]  }
 0x380   : > { %6021 = vmatprep.subr.bf16.mxu0 %v8550_v26  ;;  %6107 = vmatprep.subr.bf16.mxu1 %v8553_v61  ;;  %v8623_v28 = vld [vmem:[%s13128_s2 + $0x4b8] ss:$24 sps:$4 sm:$0xff]   ;;  %v8628_v26 = vld [vmem:[%s13128_s2 + $0xae4] ss:$24 sps:$4 sm:$0xff]  }
 0x381   : > { %v8631_v61 = vld [vmem:[%s13128_s2 + $0x4ec] ss:$24 sps:$4 sm:$0xff]  }
 0x383   : > { %6022 = vmatpush1.bf16.msra.mxu0 %v8548_v24  ;;  %6108 = vmatpush1.bf16.msra.mxu1 %v8551_v22  ;;  %v8626_v24 = vld [vmem:[%s13128_s2 + $0xae0] ss:$24 sps:$4 sm:$0xff]  }
 0x384   : > { %6023 = vmatprep.subr.bf16.mxu0 %v8556_v31  ;;  %6109 = vmatprep.subr.bf16.mxu1 %v8559_v37  ;;  %v8629_v22 = vld [vmem:[%s13128_s2 + $0x4e8] ss:$24 sps:$4 sm:$0xff]   ;;  %v8634_v31 = vld [vmem:[%s13128_s2 + $0xb14] ss:$24 sps:$4 sm:$0xff]  }
 0x385   : > { %v8637_v37 = vld [vmem:[%s13128_s2 + $0x51c] ss:$24 sps:$4 sm:$0xff]  }
 0x387   : > { %6024 = vmatpush1.bf16.msra.mxu0 %v8554_v18  ;;  %6110 = vmatpush1.bf16.msra.mxu1 %v8557_v62  ;;  %v8632_v18 = vld [vmem:[%s13128_s2 + $0xb10] ss:$24 sps:$4 sm:$0xff]  }
 0x388   : > { %6025 = vmatprep.subr.bf16.mxu0 %v8562_v56  ;;  %6111 = vmatprep.subr.bf16.mxu1 %v8565_v32  ;;  %v8635_v62 = vld [vmem:[%s13128_s2 + $0x518] ss:$24 sps:$4 sm:$0xff]   ;;  %v8640_v56 = vld [vmem:[%s13128_s2 + $0xb44] ss:$24 sps:$4 sm:$0xff]  }
 0x389   : > { %v8643_v32 = vld [vmem:[%s13128_s2 + $0x54c] ss:$24 sps:$4 sm:$0xff]  }
 0x38b   : > { %6026 = vmatpush1.bf16.msra.mxu0 %v8560_v33  ;;  %6112 = vmatpush1.bf16.msra.mxu1 %v8563_v35  ;;  %v8638_v33 = vld [vmem:[%s13128_s2 + $0xb40] ss:$24 sps:$4 sm:$0xff]  }
 0x38c   : > { %6038 = vmatprep.subr.bf16.mxu0 %v8568_v38  ;;  %6124 = vmatprep.subr.bf16.mxu1 %v8571_v45  ;;  %v8641_v35 = vld [vmem:[%s13128_s2 + $0x548] ss:$24 sps:$4 sm:$0xff]   ;;  %v8646_v38 = vld [vmem:[%s13128_s2 + $0xb74] ss:$24 sps:$4 sm:$0xff]  }
 0x38d   : > { %v8649_v45 = vld [vmem:[%s13128_s2 + $0x57c] ss:$24 sps:$4 sm:$0xff]  }
 0x38e   : > { %6028 = vmatmul.mubr.bf16.vlgmr.msra.gmra.mrb[4].mxu0 %v9730_v42  ;;  %6114 = vmatmul.mubr.bf16.vlgmr.msra.gmra.mrb[4].mxu1 %v9508_v11 }
 0x38f   : > { %6039 = vmatpush1.bf16.msra.mxu0 %v8566_v46  ;;  %6125 = vmatpush1.bf16.msra.mxu1 %v8569_v53  ;;  %v8644_v46 = vld [vmem:[%s13128_s2 + $0xb70] ss:$24 sps:$4 sm:$0xff]  }
 0x390   : > { %6040 = vmatprep.subr.bf16.mxu0 %v8574_v55  ;;  %6126 = vmatprep.subr.bf16.mxu1 %v8577_v60  ;;  %v8647_v53 = vld [vmem:[%s13128_s2 + $0x578] ss:$24 sps:$4 sm:$0xff]   ;;  %v8652_v55 = vld [vmem:[%s13128_s2 + $0xba4] ss:$24 sps:$4 sm:$0xff]  }
 0x391   : > { %6070 = vmatprep.mubr.bf16.mxu0 %v9795_v8  ;;  %6156 = vmatprep.mubr.bf16.mxu1 %v9486_v59  ;;  %v8655_v60 = vld [vmem:[%s13128_s2 + $0x5ac] ss:$24 sps:$4 sm:$0xff]  }
 0x393   : > { %6041 = vmatpush1.bf16.msra.mxu0 %v8572_v63  ;;  %6127 = vmatpush1.bf16.msra.mxu1 %v8575_v1  ;;  %v8650_v63 = vld [vmem:[%s13128_s2 + $0xba0] ss:$24 sps:$4 sm:$0xff]  }
 0x394   : > { %6042 = vmatprep.subr.bf16.mxu0 %v8580_v4  ;;  %6128 = vmatprep.subr.bf16.mxu1 %v8583_v50  ;;  %v8653_v1 = vld [vmem:[%s13128_s2 + $0x5a8] ss:$24 sps:$4 sm:$0xff]   ;;  %v8658_v4 = vld [vmem:[%s13128_s2 + $0xbd4] ss:$24 sps:$4 sm:$0xff]  }
 0x395   : > { %v8661_v50 = vld [vmem:[%s13128_s2 + $0x5dc] ss:$24 sps:$4 sm:$0xff]  }
 0x397   : > { %6043 = vmatpush1.bf16.msra.mxu0 %v8578_v7  ;;  %6129 = vmatpush1.bf16.msra.mxu1 %v8581_v47  ;;  %v8656_v7 = vld [vmem:[%s13128_s2 + $0xbd0] ss:$24 sps:$4 sm:$0xff]  }
 0x398   : > { %6044 = vmatprep.subr.bf16.mxu0 %v8586_v10  ;;  %6130 = vmatprep.subr.bf16.mxu1 %v8589_v43  ;;  %v8659_v47 = vld [vmem:[%s13128_s2 + $0x5d8] ss:$24 sps:$4 sm:$0xff]   ;;  %v8664_v10 = vld [vmem:[%s13128_s2 + $0x60c] ss:$24 sps:$4 sm:$0xff]  }
 0x399   : > { %v8667_v43 = vld [vmem:[%s13128_s2 + $0x14] ss:$24 sps:$4 sm:$0xff]  }
 0x39b   : > { %6045 = vmatpush1.bf16.msra.mxu0 %v8584_v39  ;;  %6131 = vmatpush1.bf16.msra.mxu1 %v8587_v36  ;;  %v8662_v39 = vld [vmem:[%s13128_s2 + $0x608] ss:$24 sps:$4 sm:$0xff]  }
 0x39c   : > { %6046 = vmatprep.subr.bf16.mxu0 %v8592_v29  ;;  %6132 = vmatprep.subr.bf16.mxu1 %v8595_v27  ;;  %v8665_v36 = vld [vmem:[%s13128_s2 + $0x10] ss:$24 sps:$4 sm:$0xff]   ;;  %v8670_v29 = vld [vmem:[%s13128_s2 + $0x63c] ss:$24 sps:$4 sm:$0xff]  }
 0x39d   : > { %v8673_v27 = vld [vmem:[%s13128_s2 + $0x44] ss:$24 sps:$4 sm:$0xff]  }
 0x39f   : > { %6047 = vmatpush1.bf16.msra.mxu0 %v8590_v25  ;;  %6133 = vmatpush1.bf16.msra.mxu1 %v8593_v14  ;;  %v8668_v25 = vld [vmem:[%s13128_s2 + $0x638] ss:$24 sps:$4 sm:$0xff]  }
 0x3a0   : > { %6048 = vmatprep.subr.bf16.mxu0 %v8598_v21  ;;  %6134 = vmatprep.subr.bf16.mxu1 %v8601_v19  ;;  %v8671_v14 = vld [vmem:[%s13128_s2 + $0x40] ss:$24 sps:$4 sm:$0xff]   ;;  %v8676_v21 = vld [vmem:[%s13128_s2 + $0x66c] ss:$24 sps:$4 sm:$0xff]  }
 0x3a1   : > { %v8679_v19 = vld [vmem:[%s13128_s2 + $0x74] ss:$24 sps:$4 sm:$0xff]  }
 0x3a3   : > { %6049 = vmatpush1.bf16.msra.mxu0 %v8596_v16  ;;  %6135 = vmatpush1.bf16.msra.mxu1 %v8599_v44  ;;  %v8674_v16 = vld [vmem:[%s13128_s2 + $0x668] ss:$24 sps:$4 sm:$0xff]  }
 0x3a4   : > { %6050 = vmatprep.subr.bf16.mxu0 %v8604_v48  ;;  %6136 = vmatprep.subr.bf16.mxu1 %v8607_v34  ;;  %v8677_v44 = vld [vmem:[%s13128_s2 + $0x70] ss:$24 sps:$4 sm:$0xff]   ;;  %v8682_v48 = vld [vmem:[%s13128_s2 + $0x69c] ss:$24 sps:$4 sm:$0xff]  }
 0x3a5   : > { %v8680_v34 = vld [vmem:[%s13128_s2 + $0x698] ss:$24 sps:$4 sm:$0xff]  }
 0x3a7   : > { %6051 = vmatpush1.bf16.msra.mxu0 %v8602_v54  ;;  %6137 = vmatpush1.bf16.msra.mxu1 %v8605_v51  ;;  %v8683_v54 = vld [vmem:[%s13128_s2 + $0xa0] ss:$24 sps:$4 sm:$0xff]   ;;  %v8688_v51 = vld [vmem:[%s13128_s2 + $0x6cc] ss:$24 sps:$4 sm:$0xff]  }
 0x3a8   : > { %6052 = vmatprep.subr.bf16.mxu0 %v8610_v30  ;;  %6138 = vmatprep.subr.bf16.mxu1 %v8613_v58  ;;  %v8691_v30 = vld [vmem:[%s13128_s2 + $0xd4] ss:$24 sps:$4 sm:$0xff]   ;;  %v8686_v58 = vld [vmem:[%s13128_s2 + $0x6c8] ss:$24 sps:$4 sm:$0xff]  }
 0x3ab   : > { %6053 = vmatpush1.bf16.msra.mxu0 %v8608_v6  ;;  %6139 = vmatpush1.bf16.msra.mxu1 %v8611_v0  ;;  %v8689_v6 = vld [vmem:[%s13128_s2 + $0xd0] ss:$24 sps:$4 sm:$0xff]   ;;  %v8694_v0 = vld [vmem:[%s13128_s2 + $0x6fc] ss:$24 sps:$4 sm:$0xff]  }
 0x3ac   : > { %6054 = vmatprep.subr.bf16.mxu0 %v8616_v3  ;;  %6140 = vmatprep.subr.bf16.mxu1 %v8619_v5  ;;  %v8697_v3 = vld [vmem:[%s13128_s2 + $0x104] ss:$24 sps:$4 sm:$0xff]   ;;  %v8692_v5 = vld [vmem:[%s13128_s2 + $0x6f8] ss:$24 sps:$4 sm:$0xff]  }
 0x3af   : > { %6055 = vmatpush1.bf16.msra.mxu0 %v8614_v9  ;;  %6141 = vmatpush1.bf16.msra.mxu1 %v8617_v15  ;;  %v8695_v9 = vld [vmem:[%s13128_s2 + $0x100] ss:$24 sps:$4 sm:$0xff]   ;;  %v8700_v15 = vld [vmem:[%s13128_s2 + $0x72c] ss:$24 sps:$4 sm:$0xff]  }
 0x3b0   : > { %6056 = vmatprep.subr.bf16.mxu0 %v8622_v17  ;;  %6142 = vmatprep.subr.bf16.mxu1 %v8625_v20  ;;  %v8703_v17 = vld [vmem:[%s13128_s2 + $0x134] ss:$24 sps:$4 sm:$0xff]   ;;  %v8698_v20 = vld [vmem:[%s13128_s2 + $0x728] ss:$24 sps:$4 sm:$0xff]  }
 0x3b3   : > { %6057 = vmatpush1.bf16.msra.mxu0 %v8620_v23  ;;  %6143 = vmatpush1.bf16.msra.mxu1 %v8623_v28  ;;  %v8701_v23 = vld [vmem:[%s13128_s2 + $0x130] ss:$24 sps:$4 sm:$0xff]   ;;  %v8706_v28 = vld [vmem:[%s13128_s2 + $0x75c] ss:$24 sps:$4 sm:$0xff]  }
 0x3b4   : > { %6058 = vmatprep.subr.bf16.mxu0 %v8628_v26  ;;  %6144 = vmatprep.subr.bf16.mxu1 %v8631_v61  ;;  %v8709_v26 = vld [vmem:[%s13128_s2 + $0x164] ss:$24 sps:$4 sm:$0xff]   ;;  %v8704_v61 = vld [vmem:[%s13128_s2 + $0x758] ss:$24 sps:$4 sm:$0xff]  }
 0x3b7   : > { %6059 = vmatpush1.bf16.msra.mxu0 %v8626_v24  ;;  %6145 = vmatpush1.bf16.msra.mxu1 %v8629_v22  ;;  %v8707_v24 = vld [vmem:[%s13128_s2 + $0x160] ss:$24 sps:$4 sm:$0xff]   ;;  %v8712_v22 = vld [vmem:[%s13128_s2 + $0x78c] ss:$24 sps:$4 sm:$0xff]  }
 0x3b8   : > { %6060 = vmatprep.subr.bf16.mxu0 %v8634_v31  ;;  %6146 = vmatprep.subr.bf16.mxu1 %v8637_v37  ;;  %v8715_v31 = vld [vmem:[%s13128_s2 + $0x194] ss:$24 sps:$4 sm:$0xff]   ;;  %v8710_v37 = vld [vmem:[%s13128_s2 + $0x788] ss:$24 sps:$4 sm:$0xff]  }
 0x3bb   : > { %6061 = vmatpush1.bf16.msra.mxu0 %v8632_v18  ;;  %6147 = vmatpush1.bf16.msra.mxu1 %v8635_v62  ;;  %v8713_v18 = vld [vmem:[%s13128_s2 + $0x190] ss:$24 sps:$4 sm:$0xff]   ;;  %v8718_v62 = vld [vmem:[%s13128_s2 + $0x7bc] ss:$24 sps:$4 sm:$0xff]  }
 0x3bc   : > { %6062 = vmatprep.subr.bf16.mxu0 %v8640_v56  ;;  %6148 = vmatprep.subr.bf16.mxu1 %v8643_v32  ;;  %v8721_v56 = vld [vmem:[%s13128_s2 + $0x1c4] ss:$24 sps:$4 sm:$0xff]   ;;  %v8716_v32 = vld [vmem:[%s13128_s2 + $0x7b8] ss:$24 sps:$4 sm:$0xff]  }
 0x3bf   : > { %6063 = vmatpush1.bf16.msra.mxu0 %v8638_v33  ;;  %6149 = vmatpush1.bf16.msra.mxu1 %v8641_v35  ;;  %v8719_v33 = vld [vmem:[%s13128_s2 + $0x1c0] ss:$24 sps:$4 sm:$0xff]   ;;  %v8724_v35 = vld [vmem:[%s13128_s2 + $0x7ec] ss:$24 sps:$4 sm:$0xff]  }
 0x3c0   : > { %6064 = vmatprep.subr.bf16.mxu0 %v8646_v38  ;;  %6150 = vmatprep.subr.bf16.mxu1 %v8649_v45  ;;  %v8727_v38 = vld [vmem:[%s13128_s2 + $0x1f4] ss:$24 sps:$4 sm:$0xff]   ;;  %v8722_v45 = vld [vmem:[%s13128_s2 + $0x7e8] ss:$24 sps:$4 sm:$0xff]  }
 0x3c3   : > { %6065 = vmatpush1.bf16.msra.mxu0 %v8644_v46  ;;  %6151 = vmatpush1.bf16.msra.mxu1 %v8647_v53  ;;  %v8725_v46 = vld [vmem:[%s13128_s2 + $0x1f0] ss:$24 sps:$4 sm:$0xff]   ;;  %v8730_v53 = vld [vmem:[%s13128_s2 + $0x81c] ss:$24 sps:$4 sm:$0xff]  }
 0x3c4   : > { %6066 = vmatprep.subr.bf16.mxu0 %v8652_v55  ;;  %6152 = vmatprep.subr.bf16.mxu1 %v8655_v60  ;;  %v8733_v55 = vld [vmem:[%s13128_s2 + $0x224] ss:$24 sps:$4 sm:$0xff]   ;;  %v8728_v60 = vld [vmem:[%s13128_s2 + $0x818] ss:$24 sps:$4 sm:$0xff]  }
 0x3c7   : > { %6067 = vmatpush1.bf16.msra.mxu0 %v8650_v63  ;;  %6153 = vmatpush1.bf16.msra.mxu1 %v8653_v1  ;;  %v8731_v63 = vld [vmem:[%s13128_s2 + $0x220] ss:$24 sps:$4 sm:$0xff]   ;;  %v8736_v1 = vld [vmem:[%s13128_s2 + $0x84c] ss:$24 sps:$4 sm:$0xff]  }
 0x3c8   : > { %6068 = vmatprep.subr.bf16.mxu0 %v8658_v4  ;;  %6154 = vmatprep.subr.bf16.mxu1 %v8661_v50  ;;  %v8739_v4 = vld [vmem:[%s13128_s2 + $0x254] ss:$24 sps:$4 sm:$0xff]   ;;  %v8734_v50 = vld [vmem:[%s13128_s2 + $0x848] ss:$24 sps:$4 sm:$0xff]  }
 0x3cb   : > { %6069 = vmatpush1.bf16.msra.mxu0 %v8656_v7  ;;  %6155 = vmatpush1.bf16.msra.mxu1 %v8659_v47  ;;  %v8737_v7 = vld [vmem:[%s13128_s2 + $0x250] ss:$24 sps:$4 sm:$0xff]   ;;  %v8742_v47 = vld [vmem:[%s13128_s2 + $0x87c] ss:$24 sps:$4 sm:$0xff]  }
 0x3cc   : > { %6167 = vmatprep.subr.bf16.mxu1 %v8664_v10  ;;  %6253 = vmatprep.subr.bf16.mxu0 %v8667_v43  ;;  %v8745_v10 = vld [vmem:[%s13128_s2 + $0x284] ss:$24 sps:$4 sm:$0xff]   ;;  %v8740_v43 = vld [vmem:[%s13128_s2 + $0x878] ss:$24 sps:$4 sm:$0xff]  }
 0x3ce   : > { %6071 = vmatmul.mubr.bf16.vlgmr.msra.gmra.mrb[4].mxu0 %v9942_v13  ;;  %6157 = vmatmul.mubr.bf16.vlgmr.msra.gmra.mrb[4].mxu1 %v9510_v12 }
 0x3cf   : > { %6168 = vmatpush1.bf16.msra.mxu1 %v8662_v39  ;;  %6254 = vmatpush1.bf16.msra.mxu0 %v8665_v36  ;;  %v8743_v39 = vld [vmem:[%s13128_s2 + $0x280] ss:$24 sps:$4 sm:$0xff]   ;;  %v8748_v36 = vld [vmem:[%s13128_s2 + $0x8ac] ss:$24 sps:$4 sm:$0xff]  }
 0x3d0   : > { %6169 = vmatprep.subr.bf16.mxu1 %v8670_v29  ;;  %6255 = vmatprep.subr.bf16.mxu0 %v8673_v27  ;;  %v8751_v29 = vld [vmem:[%s13128_s2 + $0x2b4] ss:$24 sps:$4 sm:$0xff]   ;;  %v8746_v27 = vld [vmem:[%s13128_s2 + $0x8a8] ss:$24 sps:$4 sm:$0xff]  }
 0x3d1   : > { %6199 = vmatprep.mubr.bf16.mxu1 %v9643_v2  ;;  %6285 = vmatprep.mubr.bf16.mxu0 %v9474_v52  ;;  %v8685_v52 = vld [vmem:[%s13128_s2 + $0xa4] ss:$24 sps:$4 sm:$0xff]  }
 0x3d3   : > { %6170 = vmatpush1.bf16.msra.mxu1 %v8668_v25  ;;  %6256 = vmatpush1.bf16.msra.mxu0 %v8671_v14  ;;  %v8749_v25 = vld [vmem:[%s13128_s2 + $0x2b0] ss:$24 sps:$4 sm:$0xff]   ;;  %v8754_v14 = vld [vmem:[%s13128_s2 + $0x8dc] ss:$24 sps:$4 sm:$0xff]  }
 0x3d4   : > { %6171 = vmatprep.subr.bf16.mxu1 %v8676_v21  ;;  %6257 = vmatprep.subr.bf16.mxu0 %v8679_v19  ;;  %v8757_v21 = vld [vmem:[%s13128_s2 + $0x2e4] ss:$24 sps:$4 sm:$0xff]   ;;  %v8752_v19 = vld [vmem:[%s13128_s2 + $0x8d8] ss:$24 sps:$4 sm:$0xff]  }
 0x3d7   : > { %6172 = vmatpush1.bf16.msra.mxu1 %v8674_v16  ;;  %6258 = vmatpush1.bf16.msra.mxu0 %v8677_v44  ;;  %v8755_v16 = vld [vmem:[%s13128_s2 + $0x2e0] ss:$24 sps:$4 sm:$0xff]   ;;  %v8760_v44 = vld [vmem:[%s13128_s2 + $0x90c] ss:$24 sps:$4 sm:$0xff]  }
 0x3d8   : > { %6173 = vmatprep.subr.bf16.mxu1 %v8682_v48  ;;  %6259 = vmatprep.subr.bf16.mxu0 %v8685_v52  ;;  %v8763_v48 = vld [vmem:[%s13128_s2 + $0x314] ss:$24 sps:$4 sm:$0xff]   ;;  %v8758_v52 = vld [vmem:[%s13128_s2 + $0x908] ss:$24 sps:$4 sm:$0xff]  }
 0x3db   : > { %6174 = vmatpush1.bf16.msra.mxu1 %v8680_v34  ;;  %6260 = vmatpush1.bf16.msra.mxu0 %v8683_v54  ;;  %v8761_v34 = vld [vmem:[%s13128_s2 + $0x310] ss:$24 sps:$4 sm:$0xff]   ;;  %v8766_v54 = vld [vmem:[%s13128_s2 + $0x93c] ss:$24 sps:$4 sm:$0xff]  }
 0x3dc   : > { %6175 = vmatprep.subr.bf16.mxu1 %v8688_v51  ;;  %6261 = vmatprep.subr.bf16.mxu0 %v8691_v30  ;;  %v8769_v51 = vld [vmem:[%s13128_s2 + $0x344] ss:$24 sps:$4 sm:$0xff]   ;;  %v8764_v30 = vld [vmem:[%s13128_s2 + $0x938] ss:$24 sps:$4 sm:$0xff]  }
 0x3df   : > { %6176 = vmatpush1.bf16.msra.mxu1 %v8686_v58  ;;  %6262 = vmatpush1.bf16.msra.mxu0 %v8689_v6  ;;  %v8767_v58 = vld [vmem:[%s13128_s2 + $0x340] ss:$24 sps:$4 sm:$0xff]   ;;  %v8772_v6 = vld [vmem:[%s13128_s2 + $0x96c] ss:$24 sps:$4 sm:$0xff]  }
 0x3e0   : > { %6177 = vmatprep.subr.bf16.mxu1 %v8694_v0  ;;  %6263 = vmatprep.subr.bf16.mxu0 %v8697_v3  ;;  %v8770_v0 = vld [vmem:[%s13128_s2 + $0x968] ss:$24 sps:$4 sm:$0xff]  }
 0x3e1   : > { %v8773_v3 = vld [vmem:[%s13128_s2 + $0x370] ss:$24 sps:$4 sm:$0xff]  }
 0x3e3   : > { %6178 = vmatpush1.bf16.msra.mxu1 %v8692_v5  ;;  %6264 = vmatpush1.bf16.msra.mxu0 %v8695_v9  ;;  %v8778_v5 = vld [vmem:[%s13128_s2 + $0x99c] ss:$24 sps:$4 sm:$0xff]   ;;  %v8776_v9 = vld [vmem:[%s13128_s2 + $0x998] ss:$24 sps:$4 sm:$0xff]  }
 0x3e4   : > { %6179 = vmatprep.subr.bf16.mxu1 %v8700_v15  ;;  %6265 = vmatprep.subr.bf16.mxu0 %v8703_v17  ;;  %v8779_v15 = vld [vmem:[%s13128_s2 + $0x3a0] ss:$24 sps:$4 sm:$0xff]   ;;  %v8784_v17 = vld [vmem:[%s13128_s2 + $0x9cc] ss:$24 sps:$4 sm:$0xff]  }
 0x3e7   : > { %6180 = vmatpush1.bf16.msra.mxu1 %v8698_v20  ;;  %6266 = vmatpush1.bf16.msra.mxu0 %v8701_v23  ;;  %v8787_v20 = vld [vmem:[%s13128_s2 + $0x3d4] ss:$24 sps:$4 sm:$0xff]   ;;  %v8782_v23 = vld [vmem:[%s13128_s2 + $0x9c8] ss:$24 sps:$4 sm:$0xff]  }
 0x3e8   : > { %6181 = vmatprep.subr.bf16.mxu1 %v8706_v28  ;;  %6267 = vmatprep.subr.bf16.mxu0 %v8709_v26  ;;  %v8785_v28 = vld [vmem:[%s13128_s2 + $0x3d0] ss:$24 sps:$4 sm:$0xff]   ;;  %v8790_v26 = vld [vmem:[%s13128_s2 + $0x9fc] ss:$24 sps:$4 sm:$0xff]  }
 0x3eb   : > { %6182 = vmatpush1.bf16.msra.mxu1 %v8704_v61  ;;  %6268 = vmatpush1.bf16.msra.mxu0 %v8707_v24  ;;  %v8793_v61 = vld [vmem:[%s13128_s2 + $0x404] ss:$24 sps:$4 sm:$0xff]   ;;  %v8788_v24 = vld [vmem:[%s13128_s2 + $0x9f8] ss:$24 sps:$4 sm:$0xff]  }
 0x3ec   : > { %6183 = vmatprep.subr.bf16.mxu1 %v8712_v22  ;;  %6269 = vmatprep.subr.bf16.mxu0 %v8715_v31  ;;  %v8791_v22 = vld [vmem:[%s13128_s2 + $0x400] ss:$24 sps:$4 sm:$0xff]   ;;  %v8796_v31 = vld [vmem:[%s13128_s2 + $0xa2c] ss:$24 sps:$4 sm:$0xff]  }
 0x3ef   : > { %6184 = vmatpush1.bf16.msra.mxu1 %v8710_v37  ;;  %6270 = vmatpush1.bf16.msra.mxu0 %v8713_v18  ;;  %v8799_v37 = vld [vmem:[%s13128_s2 + $0x434] ss:$24 sps:$4 sm:$0xff]   ;;  %v8794_v18 = vld [vmem:[%s13128_s2 + $0xa28] ss:$24 sps:$4 sm:$0xff]  }
 0x3f0   : > { %6185 = vmatprep.subr.bf16.mxu1 %v8718_v62  ;;  %6271 = vmatprep.subr.bf16.mxu0 %v8721_v56  ;;  %v8797_v62 = vld [vmem:[%s13128_s2 + $0x430] ss:$24 sps:$4 sm:$0xff]   ;;  %v8802_v56 = vld [vmem:[%s13128_s2 + $0xa5c] ss:$24 sps:$4 sm:$0xff]  }
 0x3f3   : > { %6186 = vmatpush1.bf16.msra.mxu1 %v8716_v32  ;;  %6272 = vmatpush1.bf16.msra.mxu0 %v8719_v33  ;;  %v8805_v32 = vld [vmem:[%s13128_s2 + $0x464] ss:$24 sps:$4 sm:$0xff]   ;;  %v8800_v33 = vld [vmem:[%s13128_s2 + $0xa58] ss:$24 sps:$4 sm:$0xff]  }
 0x3f4   : > { %6187 = vmatprep.subr.bf16.mxu1 %v8724_v35  ;;  %6273 = vmatprep.subr.bf16.mxu0 %v8727_v38  ;;  %v8803_v35 = vld [vmem:[%s13128_s2 + $0x460] ss:$24 sps:$4 sm:$0xff]   ;;  %v8808_v38 = vld [vmem:[%s13128_s2 + $0xa8c] ss:$24 sps:$4 sm:$0xff]  }
 0x3f7   : > { %6188 = vmatpush1.bf16.msra.mxu1 %v8722_v45  ;;  %6274 = vmatpush1.bf16.msra.mxu0 %v8725_v46  ;;  %v8811_v45 = vld [vmem:[%s13128_s2 + $0x494] ss:$24 sps:$4 sm:$0xff]   ;;  %v8806_v46 = vld [vmem:[%s13128_s2 + $0xa88] ss:$24 sps:$4 sm:$0xff]  }
 0x3f8   : > { %6189 = vmatprep.subr.bf16.mxu1 %v8730_v53  ;;  %6275 = vmatprep.subr.bf16.mxu0 %v8733_v55  ;;  %v8809_v53 = vld [vmem:[%s13128_s2 + $0x490] ss:$24 sps:$4 sm:$0xff]   ;;  %v8814_v55 = vld [vmem:[%s13128_s2 + $0xabc] ss:$24 sps:$4 sm:$0xff]  }
 0x3fb   : > { %6190 = vmatpush1.bf16.msra.mxu1 %v8728_v60  ;;  %6276 = vmatpush1.bf16.msra.mxu0 %v8731_v63  ;;  %v8817_v60 = vld [vmem:[%s13128_s2 + $0x4c4] ss:$24 sps:$4 sm:$0xff]   ;;  %v8812_v63 = vld [vmem:[%s13128_s2 + $0xab8] ss:$24 sps:$4 sm:$0xff]  }
 0x3fc   : > { %6191 = vmatprep.subr.bf16.mxu1 %v8736_v1  ;;  %6277 = vmatprep.subr.bf16.mxu0 %v8739_v4  ;;  %v8815_v1 = vld [vmem:[%s13128_s2 + $0x4c0] ss:$24 sps:$4 sm:$0xff]   ;;  %v8820_v4 = vld [vmem:[%s13128_s2 + $0xaec] ss:$24 sps:$4 sm:$0xff]  }
 0x3ff   : > { %6192 = vmatpush1.bf16.msra.mxu1 %v8734_v50  ;;  %6278 = vmatpush1.bf16.msra.mxu0 %v8737_v7  ;;  %v8823_v50 = vld [vmem:[%s13128_s2 + $0x4f4] ss:$24 sps:$4 sm:$0xff]   ;;  %v8818_v7 = vld [vmem:[%s13128_s2 + $0xae8] ss:$24 sps:$4 sm:$0xff]  }
 0x400   : > { %6193 = vmatprep.subr.bf16.mxu1 %v8742_v47  ;;  %6279 = vmatprep.subr.bf16.mxu0 %v8745_v10  ;;  %v8821_v47 = vld [vmem:[%s13128_s2 + $0x4f0] ss:$24 sps:$4 sm:$0xff]   ;;  %v8826_v10 = vld [vmem:[%s13128_s2 + $0xb1c] ss:$24 sps:$4 sm:$0xff]  }
 0x403   : > { %6194 = vmatpush1.bf16.msra.mxu1 %v8740_v43  ;;  %6280 = vmatpush1.bf16.msra.mxu0 %v8743_v39  ;;  %v8829_v43 = vld [vmem:[%s13128_s2 + $0x524] ss:$24 sps:$4 sm:$0xff]   ;;  %v8824_v39 = vld [vmem:[%s13128_s2 + $0xb18] ss:$24 sps:$4 sm:$0xff]  }
 0x404   : > { %6195 = vmatprep.subr.bf16.mxu1 %v8748_v36  ;;  %6281 = vmatprep.subr.bf16.mxu0 %v8751_v29  ;;  %v8827_v36 = vld [vmem:[%s13128_s2 + $0x520] ss:$24 sps:$4 sm:$0xff]   ;;  %v8832_v29 = vld [vmem:[%s13128_s2 + $0xb4c] ss:$24 sps:$4 sm:$0xff]  }
 0x407   : > { %6196 = vmatpush1.bf16.msra.mxu1 %v8746_v27  ;;  %6282 = vmatpush1.bf16.msra.mxu0 %v8749_v25  ;;  %v8835_v27 = vld [vmem:[%s13128_s2 + $0x554] ss:$24 sps:$4 sm:$0xff]   ;;  %v8830_v25 = vld [vmem:[%s13128_s2 + $0xb48] ss:$24 sps:$4 sm:$0xff]  }
 0x408   : > { %6197 = vmatprep.subr.bf16.mxu1 %v8754_v14  ;;  %6283 = vmatprep.subr.bf16.mxu0 %v8757_v21  ;;  %v8833_v14 = vld [vmem:[%s13128_s2 + $0x550] ss:$24 sps:$4 sm:$0xff]   ;;  %v8838_v21 = vld [vmem:[%s13128_s2 + $0xb7c] ss:$24 sps:$4 sm:$0xff]  }
 0x40b   : > { %6198 = vmatpush1.bf16.msra.mxu1 %v8752_v19  ;;  %6284 = vmatpush1.bf16.msra.mxu0 %v8755_v16  ;;  %v8841_v19 = vld [vmem:[%s13128_s2 + $0x584] ss:$24 sps:$4 sm:$0xff]   ;;  %v8836_v16 = vld [vmem:[%s13128_s2 + $0xb78] ss:$24 sps:$4 sm:$0xff]  }
 0x40c   : > { %6210 = vmatprep.subr.bf16.mxu1 %v8760_v44  ;;  %6296 = vmatprep.subr.bf16.mxu0 %v8763_v48  ;;  %v8839_v44 = vld [vmem:[%s13128_s2 + $0x580] ss:$24 sps:$4 sm:$0xff]   ;;  %v8844_v48 = vld [vmem:[%s13128_s2 + $0xbac] ss:$24 sps:$4 sm:$0xff]  }
 0x40e   : > { %6200 = vmatmul.mubr.bf16.vlgmr.msra.gmra.mrb[4].mxu1 %v9730_v42  ;;  %6286 = vmatmul.mubr.bf16.vlgmr.msra.gmra.mrb[0].mxu0 %v9508_v11  ;;  %v8775_v11 = vld [vmem:[%s13128_s2 + $0x374] ss:$24 sps:$4 sm:$0xff]  }
 0x40f   : > { %6211 = vmatpush1.bf16.msra.mxu1 %v8758_v52  ;;  %6297 = vmatpush1.bf16.msra.mxu0 %v8761_v34  ;;  %v8847_v52 = vld [vmem:[%s13128_s2 + $0x5b4] ss:$24 sps:$4 sm:$0xff]   ;;  %v8842_v34 = vld [vmem:[%s13128_s2 + $0xba8] ss:$24 sps:$4 sm:$0xff]  }
 0x410   : > { %6212 = vmatprep.subr.bf16.mxu1 %v8766_v54  ;;  %6298 = vmatprep.subr.bf16.mxu0 %v8769_v51  ;;  %v8845_v54 = vld [vmem:[%s13128_s2 + $0x5b0] ss:$24 sps:$4 sm:$0xff]   ;;  %v8850_v51 = vld [vmem:[%s13128_s2 + $0xbdc] ss:$24 sps:$4 sm:$0xff]  }
 0x411   : > { %6242 = vmatprep.mubr.bf16.mxu1 %v9795_v8  ;;  %6328 = vmatprep.mubr.bf16.mxu0 %v9486_v59  ;;  %v8781_v59 = vld [vmem:[%s13128_s2 + $0x3a4] ss:$24 sps:$4 sm:$0xff]  }
 0x413   : > { %6213 = vmatpush1.bf16.msra.mxu1 %v8764_v30  ;;  %6299 = vmatpush1.bf16.msra.mxu0 %v8767_v58  ;;  %v8853_v30 = vld [vmem:[%s13128_s2 + $0x5e4] ss:$24 sps:$4 sm:$0xff]   ;;  %v8848_v58 = vld [vmem:[%s13128_s2 + $0xbd8] ss:$24 sps:$4 sm:$0xff]  }
 0x414   : > { %6214 = vmatprep.subr.bf16.mxu1 %v8772_v6  ;;  %6300 = vmatprep.subr.bf16.mxu0 %v8775_v11  ;;  %v8851_v6 = vld [vmem:[%s13128_s2 + $0x5e0] ss:$24 sps:$4 sm:$0xff]   ;;  %v8856_v11 = vld [vmem:[%s13128_s2 + $0x614] ss:$24 sps:$4 sm:$0xff]  }
 0x417   : > { %6215 = vmatpush1.bf16.msra.mxu1 %v8770_v0  ;;  %6301 = vmatpush1.bf16.msra.mxu0 %v8773_v3  ;;  %v8854_v0 = vld [vmem:[%s13128_s2 + $0x610] ss:$24 sps:$4 sm:$0xff]   ;;  %v8859_v3 = vld [vmem:[%s13128_s2 + $0x644] ss:$24 sps:$4 sm:$0xff]  }
 0x418   : > { %6216 = vmatprep.subr.bf16.mxu1 %v8778_v5  ;;  %6302 = vmatprep.subr.bf16.mxu0 %v8781_v59  ;;  %v8857_v5 = vld [vmem:[%s13128_s2 + $0x640] ss:$24 sps:$4 sm:$0xff]   ;;  %v8862_v59 = vld [vmem:[%s13128_s2 + $0x674] ss:$24 sps:$4 sm:$0xff]  }
 0x41b   : > { %6217 = vmatpush1.bf16.msra.mxu1 %v8776_v9  ;;  %6303 = vmatpush1.bf16.msra.mxu0 %v8779_v15  ;;  %v8860_v9 = vld [vmem:[%s13128_s2 + $0x670] ss:$24 sps:$4 sm:$0xff]   ;;  %v8868_v15 = vld [vmem:[%s13128_s2 + $0x6d4] ss:$24 sps:$4 sm:$0xff]  }
 0x41c   : > { %6218 = vmatprep.subr.bf16.mxu1 %v8784_v17  ;;  %6304 = vmatprep.subr.bf16.mxu0 %v8787_v20  ;;  %v8866_v17 = vld [vmem:[%s13128_s2 + $0x6d0] ss:$24 sps:$4 sm:$0xff]   ;;  %v8871_v20 = vld [vmem:[%s13128_s2 + $0x704] ss:$24 sps:$4 sm:$0xff]  }
 0x41f   : > { %6219 = vmatpush1.bf16.msra.mxu1 %v8782_v23  ;;  %6305 = vmatpush1.bf16.msra.mxu0 %v8785_v28  ;;  %v8869_v23 = vld [vmem:[%s13128_s2 + $0x700] ss:$24 sps:$4 sm:$0xff]   ;;  %v8874_v28 = vld [vmem:[%s13128_s2 + $0x734] ss:$24 sps:$4 sm:$0xff]  }
 0x420   : > { %6220 = vmatprep.subr.bf16.mxu1 %v8790_v26  ;;  %6306 = vmatprep.subr.bf16.mxu0 %v8793_v61  ;;  %v8872_v26 = vld [vmem:[%s13128_s2 + $0x730] ss:$24 sps:$4 sm:$0xff]   ;;  %v8877_v61 = vld [vmem:[%s13128_s2 + $0x764] ss:$24 sps:$4 sm:$0xff]  }
 0x423   : > { %6221 = vmatpush1.bf16.msra.mxu1 %v8788_v24  ;;  %6307 = vmatpush1.bf16.msra.mxu0 %v8791_v22  ;;  %v8875_v24 = vld [vmem:[%s13128_s2 + $0x760] ss:$24 sps:$4 sm:$0xff]   ;;  %v8880_v22 = vld [vmem:[%s13128_s2 + $0x794] ss:$24 sps:$4 sm:$0xff]  }
 0x424   : > { %6222 = vmatprep.subr.bf16.mxu1 %v8796_v31  ;;  %6308 = vmatprep.subr.bf16.mxu0 %v8799_v37  ;;  %v8878_v31 = vld [vmem:[%s13128_s2 + $0x790] ss:$24 sps:$4 sm:$0xff]   ;;  %v8883_v37 = vld [vmem:[%s13128_s2 + $0x7c4] ss:$24 sps:$4 sm:$0xff]  }
 0x427   : > { %6223 = vmatpush1.bf16.msra.mxu1 %v8794_v18  ;;  %6309 = vmatpush1.bf16.msra.mxu0 %v8797_v62  ;;  %v8881_v18 = vld [vmem:[%s13128_s2 + $0x7c0] ss:$24 sps:$4 sm:$0xff]   ;;  %v8886_v62 = vld [vmem:[%s13128_s2 + $0x7f4] ss:$24 sps:$4 sm:$0xff]  }
 0x428   : > { %6224 = vmatprep.subr.bf16.mxu1 %v8802_v56  ;;  %6310 = vmatprep.subr.bf16.mxu0 %v8805_v32  ;;  %v8884_v56 = vld [vmem:[%s13128_s2 + $0x7f0] ss:$24 sps:$4 sm:$0xff]   ;;  %v8889_v32 = vld [vmem:[%s13128_s2 + $0x824] ss:$24 sps:$4 sm:$0xff]  }
 0x42b   : > { %6225 = vmatpush1.bf16.msra.mxu1 %v8800_v33  ;;  %6311 = vmatpush1.bf16.msra.mxu0 %v8803_v35  ;;  %v8887_v33 = vld [vmem:[%s13128_s2 + $0x820] ss:$24 sps:$4 sm:$0xff]   ;;  %v8892_v35 = vld [vmem:[%s13128_s2 + $0x854] ss:$24 sps:$4 sm:$0xff]  }
 0x42c   : > { %6226 = vmatprep.subr.bf16.mxu1 %v8808_v38  ;;  %6312 = vmatprep.subr.bf16.mxu0 %v8811_v45  ;;  %v8890_v38 = vld [vmem:[%s13128_s2 + $0x850] ss:$24 sps:$4 sm:$0xff]   ;;  %v8895_v45 = vld [vmem:[%s13128_s2 + $0x884] ss:$24 sps:$4 sm:$0xff]  }
 0x42f   : > { %6227 = vmatpush1.bf16.msra.mxu1 %v8806_v46  ;;  %6313 = vmatpush1.bf16.msra.mxu0 %v8809_v53  ;;  %v8893_v46 = vld [vmem:[%s13128_s2 + $0x880] ss:$24 sps:$4 sm:$0xff]   ;;  %v8898_v53 = vld [vmem:[%s13128_s2 + $0x8b4] ss:$24 sps:$4 sm:$0xff]  }
 0x430   : > { %6228 = vmatprep.subr.bf16.mxu1 %v8814_v55  ;;  %6314 = vmatprep.subr.bf16.mxu0 %v8817_v60  ;;  %v8896_v55 = vld [vmem:[%s13128_s2 + $0x8b0] ss:$24 sps:$4 sm:$0xff]   ;;  %v8901_v60 = vld [vmem:[%s13128_s2 + $0x8e4] ss:$24 sps:$4 sm:$0xff]  }
 0x433   : > { %6229 = vmatpush1.bf16.msra.mxu1 %v8812_v63  ;;  %6315 = vmatpush1.bf16.msra.mxu0 %v8815_v1  ;;  %v8899_v63 = vld [vmem:[%s13128_s2 + $0x8e0] ss:$24 sps:$4 sm:$0xff]   ;;  %v8904_v1 = vld [vmem:[%s13128_s2 + $0x914] ss:$24 sps:$4 sm:$0xff]  }
 0x434   : > { %6230 = vmatprep.subr.bf16.mxu1 %v8820_v4  ;;  %6316 = vmatprep.subr.bf16.mxu0 %v8823_v50  ;;  %v8902_v4 = vld [vmem:[%s13128_s2 + $0x910] ss:$24 sps:$4 sm:$0xff]   ;;  %v8907_v50 = vld [vmem:[%s13128_s2 + $0x944] ss:$24 sps:$4 sm:$0xff]  }
 0x437   : > { %6231 = vmatpush1.bf16.msra.mxu1 %v8818_v7  ;;  %6317 = vmatpush1.bf16.msra.mxu0 %v8821_v47  ;;  %v8905_v7 = vld [vmem:[%s13128_s2 + $0x940] ss:$24 sps:$4 sm:$0xff]   ;;  %v8910_v47 = vld [vmem:[%s13128_s2 + $0x974] ss:$24 sps:$4 sm:$0xff]  }
 0x438   : > { %6232 = vmatprep.subr.bf16.mxu1 %v8826_v10  ;;  %6318 = vmatprep.subr.bf16.mxu0 %v8829_v43  ;;  %v8908_v10 = vld [vmem:[%s13128_s2 + $0x970] ss:$24 sps:$4 sm:$0xff]   ;;  %v8916_v43 = vld [vmem:[%s13128_s2 + $0x9d4] ss:$24 sps:$4 sm:$0xff]  }
 0x43b   : > { %6233 = vmatpush1.bf16.msra.mxu1 %v8824_v39  ;;  %6319 = vmatpush1.bf16.msra.mxu0 %v8827_v36  ;;  %v8914_v39 = vld [vmem:[%s13128_s2 + $0x9d0] ss:$24 sps:$4 sm:$0xff]   ;;  %v8919_v36 = vld [vmem:[%s13128_s2 + $0xa04] ss:$24 sps:$4 sm:$0xff]  }
 0x43c   : > { %6234 = vmatprep.subr.bf16.mxu1 %v8832_v29  ;;  %6320 = vmatprep.subr.bf16.mxu0 %v8835_v27  ;;  %v8917_v29 = vld [vmem:[%s13128_s2 + $0xa00] ss:$24 sps:$4 sm:$0xff]   ;;  %v8922_v27 = vld [vmem:[%s13128_s2 + $0xa34] ss:$24 sps:$4 sm:$0xff]  }
 0x43f   : > { %6235 = vmatpush1.bf16.msra.mxu1 %v8830_v25  ;;  %6321 = vmatpush1.bf16.msra.mxu0 %v8833_v14  ;;  %v13261_v14 = vld [vmem:[#allocation26_spill] sm:$0xff] }
 0x440   : > { %6236 = vmatprep.subr.bf16.mxu1 %v8838_v21  ;;  %6322 = vmatprep.subr.bf16.mxu0 %v8841_v19 }
 0x443   : > { %6237 = vmatpush1.bf16.msra.mxu1 %v8836_v16  ;;  %6323 = vmatpush1.bf16.msra.mxu0 %v8839_v44  ;;  %v13262_v16 = vld [vmem:[#allocation27_spill] sm:$0xff] }
 0x444   : > { %6238 = vmatprep.subr.bf16.mxu1 %v8844_v48  ;;  %6324 = vmatprep.subr.bf16.mxu0 %v8847_v52  ;;  %v8920_v52 = vld [vmem:[%s13128_s2 + $0xa30] ss:$24 sps:$4 sm:$0xff]  }
 0x447   : > { %6239 = vmatpush1.bf16.msra.mxu1 %v8842_v34  ;;  %6325 = vmatpush1.bf16.msra.mxu0 %v8845_v54  ;;  %v13263_v34 = vld [vmem:[#allocation28_spill] sm:$0xff] }
 0x448   : > { %6240 = vmatprep.subr.bf16.mxu1 %v8850_v51  ;;  %6326 = vmatprep.subr.bf16.mxu0 %v8853_v30  ;;  %v8925_v30 = vld [vmem:[%s13128_s2 + $0xa64] ss:$24 sps:$4 sm:$0xff]  }
 0x44b   : > { %6241 = vmatpush1.bf16.msra.mxu1 %v8848_v58  ;;  %6327 = vmatpush1.bf16.msra.mxu0 %v8851_v6  ;;  %v13264_v58 = vld [vmem:[#allocation30_spill] sm:$0xff] }
 0x44c   : > { %6339 = vmatprep.subr.bf16.mxu0 %v8856_v11  ;;  %v8923_v11 = vld [vmem:[%s13128_s2 + $0xa60] ss:$24 sps:$4 sm:$0xff]  }
 0x44e   : > { %6243 = vmatmul.mubr.bf16.vlgmr.msra.gmra.mrb[4].mxu1 %v9942_v13  ;;  %6329 = vmatmul.mubr.bf16.vlgmr.msra.gmra.mrb[0].mxu0 %v9510_v12  ;;  %v8865_v12 = vld [vmem:[%s13128_s2 + $0x6a4] ss:$24 sps:$4 sm:$0xff]  }
 0x44f   : > { %6340 = vmatpush1.bf16.msra.mxu0 %v8854_v0  ;;  %6371 = vmatprep.mubr.bf16.mxu0 %v9643_v2  ;;  %v8863_v2 = vld [vmem:[%s13128_s2 + $0x6a0] ss:$24 sps:$4 sm:$0xff]   ;;  %v8928_v0 = vld [vmem:[%s13128_s2 + $0xa94] ss:$24 sps:$4 sm:$0xff]  }
 0x450   : > { %6341 = vmatprep.subr.bf16.mxu0 %v8859_v3  ;;  %v8950_v3 = vld [vmem:[%s13129_s3 + $0x40] sm:$0xff]  }
 0x451   : > { %7605 = vmatprep.subr.bf16.mxu1 %v8950_v3 }
 0x453   : > { %6342 = vmatpush1.bf16.msra.mxu0 %v8857_v5  ;;  %v8951_v5 = vld [vmem:[%s13129_s3] sm:$0xff]  }
 0x454   : > { %6343 = vmatprep.subr.bf16.mxu0 %v8862_v59  ;;  %v8952_v59 = vld [vmem:[%s13129_s3 + $0x48] sm:$0xff]   ;;  %7606 = vmatpush3.bf16.msra.mxu1 %v8951_v5 }
 0x455   : > { %7607 = vmatprep.subr.bf16.mxu1 %v8952_v59 }
 0x457   : > { %6344 = vmatpush1.bf16.msra.mxu0 %v8860_v9  ;;  %v8926_v9 = vld [vmem:[%s13128_s2 + $0xa90] ss:$24 sps:$4 sm:$0xff]  }
 0x458   : > { %6345 = vmatprep.subr.bf16.mxu0 %v8865_v12  ;;  %v8931_v12 = vld [vmem:[%s13128_s2 + $0xac4] ss:$24 sps:$4 sm:$0xff]  }
 0x45b   : > { %6346 = vmatpush1.bf16.msra.mxu0 %v8863_v2  ;;  %v8953_v2 = vld [vmem:[%s13129_s3 + $0x8] sm:$0xff]  }
 0x45c   : > { %6347 = vmatprep.subr.bf16.mxu0 %v8868_v15  ;;  %v8954_v15 = vld [vmem:[%s13129_s3 + $0x50] sm:$0xff]   ;;  %7608 = vmatpush3.bf16.msra.mxu1 %v8953_v2  ;;  %v8970_v2 = vld [vmem:[%s13129_s3 + $0xa0] sm:$0xff]  }
 0x45d   : > { %7609 = vmatprep.subr.bf16.mxu1 %v8954_v15  ;;  %v8971_v15 = vld [vmem:[%s13129_s3 + $0xa8] sm:$0xff]  }
 0x45f   : > { %6348 = vmatpush1.bf16.msra.mxu0 %v8866_v17  ;;  %v8929_v17 = vld [vmem:[%s13128_s2 + $0xac0] ss:$24 sps:$4 sm:$0xff]  }
 0x460   : > { %6349 = vmatprep.subr.bf16.mxu0 %v8871_v20  ;;  %v8934_v20 = vld [vmem:[%s13128_s2 + $0xaf4] ss:$24 sps:$4 sm:$0xff]  }
 0x463   : > { %6350 = vmatpush1.bf16.msra.mxu0 %v8869_v23  ;;  %v8955_v23 = vld [vmem:[%s13129_s3 + $0x10] sm:$0xff]  }
 0x464   : > { %6351 = vmatprep.subr.bf16.mxu0 %v8874_v28  ;;  %v8956_v28 = vld [vmem:[%s13129_s3 + $0x58] sm:$0xff]   ;;  %7610 = vmatpush3.bf16.msra.mxu1 %v8955_v23 }
 0x465   : > { %7611 = vmatprep.subr.bf16.mxu1 %v8956_v28 }
 0x467   : > { %6352 = vmatpush1.bf16.msra.mxu0 %v8872_v26  ;;  %v8932_v26 = vld [vmem:[%s13128_s2 + $0xaf0] ss:$24 sps:$4 sm:$0xff]  }
 0x468   : > { %6353 = vmatprep.subr.bf16.mxu0 %v8877_v61  ;;  %v8937_v61 = vld [vmem:[%s13128_s2 + $0xb24] ss:$24 sps:$4 sm:$0xff]  }
 0x46b   : > { %6354 = vmatpush1.bf16.msra.mxu0 %v8875_v24  ;;  %v8957_v24 = vld [vmem:[%s13129_s3 + $0x18] sm:$0xff]  }
 0x46c   : > { %6355 = vmatprep.subr.bf16.mxu0 %v8880_v22  ;;  %v8958_v22 = vld [vmem:[%s13129_s3 + $0x60] sm:$0xff]   ;;  %7612 = vmatpush3.bf16.msra.mxu1 %v8957_v24 }
 0x46d   : > { %7613 = vmatprep.subr.bf16.mxu1 %v8958_v22 }
 0x46f   : > { %6356 = vmatpush1.bf16.msra.mxu0 %v8878_v31  ;;  %v8935_v31 = vld [vmem:[%s13128_s2 + $0xb20] ss:$24 sps:$4 sm:$0xff]  }
 0x470   : > { %6357 = vmatprep.subr.bf16.mxu0 %v8883_v37  ;;  %v8940_v37 = vld [vmem:[%s13128_s2 + $0xb54] ss:$24 sps:$4 sm:$0xff]  }
 0x473   : > { %6358 = vmatpush1.bf16.msra.mxu0 %v8881_v18  ;;  %v8959_v18 = vld [vmem:[%s13129_s3 + $0x20] sm:$0xff]  }
 0x474   : > { %6359 = vmatprep.subr.bf16.mxu0 %v8886_v62  ;;  %v8960_v62 = vld [vmem:[%s13129_s3 + $0x68] sm:$0xff]   ;;  %7614 = vmatpush3.bf16.msra.mxu1 %v8959_v18 }
 0x475   : > { %7615 = vmatprep.subr.bf16.mxu1 %v8960_v62 }
 0x477   : > { %6360 = vmatpush1.bf16.msra.mxu0 %v8884_v56  ;;  %v8938_v56 = vld [vmem:[%s13128_s2 + $0xb50] ss:$24 sps:$4 sm:$0xff]  }
 0x478   : > { %6361 = vmatprep.subr.bf16.mxu0 %v8889_v32  ;;  %v8943_v32 = vld [vmem:[%s13128_s2 + $0xb84] ss:$24 sps:$4 sm:$0xff]  }
 0x47b   : > { %6362 = vmatpush1.bf16.msra.mxu0 %v8887_v33  ;;  %v8941_v33 = vld [vmem:[%s13128_s2 + $0xb80] ss:$24 sps:$4 sm:$0xff]  }
 0x47c   : > { %6363 = vmatprep.subr.bf16.mxu0 %v8892_v35  ;;  %v8946_v35 = vld [vmem:[%s13128_s2 + $0xbb4] ss:$24 sps:$4 sm:$0xff]  }
 0x47f   : > { %6364 = vmatpush1.bf16.msra.mxu0 %v8890_v38  ;;  %v8944_v38 = vld [vmem:[%s13128_s2 + $0xbb0] ss:$24 sps:$4 sm:$0xff]  }
 0x480   : > { %6365 = vmatprep.subr.bf16.mxu0 %v8895_v45  ;;  %v8949_v45 = vld [vmem:[%s13128_s2 + $0xbe4] ss:$24 sps:$4 sm:$0xff]  }
 0x483   : > { %6366 = vmatpush1.bf16.msra.mxu0 %v8893_v46  ;;  %v8947_v46 = vld [vmem:[%s13128_s2 + $0xbe0] ss:$24 sps:$4 sm:$0xff]  }
 0x484   : > { %6367 = vmatprep.subr.bf16.mxu0 %v8898_v53  ;;  %v8961_v53 = vld [vmem:[%s13129_s3 + $0x28] sm:$0xff]  }
 0x485   : > { %7616 = vmatpush3.bf16.msra.mxu1 %v8961_v53 }
 0x487   : > { %6368 = vmatpush1.bf16.msra.mxu0 %v8896_v55 }
 0x488   : > { %6369 = vmatprep.subr.bf16.mxu0 %v8901_v60 }
 0x48b   : > { %6370 = vmatpush1.bf16.msra.mxu0 %v8899_v63  ;;  %v8962_v63 = vld [vmem:[%s13129_s3 + $0x70] sm:$0xff]  }
 0x48c   : > { %6382 = vmatprep.subr.bf16.mxu0 %v8904_v1  ;;  %7617 = vmatprep.subr.bf16.mxu1 %v8962_v63 }
 0x48e   : > { %6372 = vmatmul.mubr.bf16.vlgmr.msra.gmra.mrb[0].mxu0 %v9730_v42  ;;  %v8913_v42 = vld [vmem:[%s13128_s2 + $0x9a4] ss:$24 sps:$4 sm:$0xff]  }
 0x48f   : > { %6383 = vmatpush1.bf16.msra.mxu0 %v8902_v4  ;;  %6414 = vmatprep.mubr.bf16.mxu0 %v9795_v8  ;;  %v8911_v8 = vld [vmem:[%s13128_s2 + $0x9a0] ss:$24 sps:$4 sm:$0xff]  }
 0x490   : > { %6384 = vmatprep.subr.bf16.mxu0 %v8907_v50 }
 0x493   : > { %6385 = vmatpush1.bf16.msra.mxu0 %v8905_v7 }
 0x494   : > { %6386 = vmatprep.subr.bf16.mxu0 %v8910_v47 }
 0x497   : > { %6387 = vmatpush1.bf16.msra.mxu0 %v8908_v10 }
 0x498   : > { %6388 = vmatprep.subr.bf16.mxu0 %v8913_v42 }
 0x49b   : > { %6389 = vmatpush1.bf16.msra.mxu0 %v8911_v8  ;;  %v8964_v8 = vld [vmem:[%s13129_s3 + $0x78] sm:$0xff]  }
 0x49c   : > { %6390 = vmatprep.subr.bf16.mxu0 %v8916_v43 }
 0x49f   : > { %6391 = vmatpush1.bf16.msra.mxu0 %v8914_v39  ;;  %v8965_v39 = vld [vmem:[%s13129_s3 + $0x38] sm:$0xff]  }
 0x4a0   : > { %6392 = vmatprep.subr.bf16.mxu0 %v8919_v36 }
 0x4a1   : > { %v6072_v25 = vpop.f32.mrb[4].mxu0 }
 0x4a2   : > { %v12966_v21 = vadd.f32 %v6072_v25, %v13261_v14  ;;  %v6074_v19 = vpop.f32.mrb[5].mxu0 }
 0x4a3   : > { %v12969_v44 = vadd.f32 %v6074_v19, %v13262_v16  ;;  %v6076_v48 = vpop.f32.mrb[6].mxu0  ;;  %6393 = vmatpush1.bf16.msra.mxu0 %v8917_v29  ;;  %v9277_v29 = vmov 0.0  }
 0x4a4   : > { %v12975_v54 = vadd.f32 %v6076_v48, %v13263_v34  ;;  %v6078_v51 = vpop.f32.mrb[7].mxu0  ;;  %6394 = vmatprep.subr.bf16.mxu0 %v8922_v27  ;;  %v6437_v1 = vmul.f32 %v12966_v21, %v12966_v21 }
 0x4a5   : > { %v12981_v6 = vadd.f32 %v6078_v51, %v13264_v58  ;;  %v6438_v16 = vmul.f32 %v12969_v44, %v12969_v44 }
 0x4a6   : > { %v6440_v47 = vmul.f32 %v12975_v54, %v12975_v54 }
 0x4a7   : > { %6395 = vmatpush1.bf16.msra.mxu0 %v8920_v52  ;;  %v6441_v58 = vmul.f32 %v12981_v6, %v12981_v6  ;;  %v8968_v6 = vld [vmem:[%s13129_s3 + $0x90] sm:$0xff]  }
 0x4a8   : > { %6396 = vmatprep.subr.bf16.mxu0 %v8925_v30 }
 0x4ab   : > { %6397 = vmatpush1.bf16.msra.mxu0 %v8923_v11 }
 0x4ac   : > { %6398 = vmatprep.subr.bf16.mxu0 %v8928_v0 }
 0x4af   : > { %6399 = vmatpush1.bf16.msra.mxu0 %v8926_v9 }
 0x4b0   : > { %6400 = vmatprep.subr.bf16.mxu0 %v8931_v12  ;;  %v8969_v12 = vld [vmem:[%s13129_s3 + $0x98] sm:$0xff]  }
 0x4b3   : > { %6401 = vmatpush1.bf16.msra.mxu0 %v8929_v17  ;;  %v8972_v17 = vld [vmem:[%s13129_s3 + $0xb0] sm:$0xff]  }
 0x4b4   : > { %6402 = vmatprep.subr.bf16.mxu0 %v8934_v20  ;;  %v8973_v20 = vld [vmem:[%s13129_s3 + $0xb8] sm:$0xff]  }
 0x4b7   : > { %6403 = vmatpush1.bf16.msra.mxu0 %v8932_v26 }
 0x4b8   : > { %6404 = vmatprep.subr.bf16.mxu0 %v8937_v61 }
 0x4bb   : > { %6405 = vmatpush1.bf16.msra.mxu0 %v8935_v31 }
 0x4bc   : > { %6406 = vmatprep.subr.bf16.mxu0 %v8940_v37 }
 0x4bf   : > { %6407 = vmatpush1.bf16.msra.mxu0 %v8938_v56 }
 0x4c0   : > { %6408 = vmatprep.subr.bf16.mxu0 %v8943_v32 }
 0x4c3   : > { %6409 = vmatpush1.bf16.msra.mxu0 %v8941_v33 }
 0x4c4   : > { %6410 = vmatprep.subr.bf16.mxu0 %v8946_v35 }
 0x4c7   : > { %6411 = vmatpush1.bf16.msra.mxu0 %v8944_v38 }
 0x4c8   : > { %6412 = vmatprep.subr.bf16.mxu0 %v8949_v45 }
 0x4cb   : > { %6413 = vmatpush1.bf16.msra.mxu0 %v8947_v46 }
 0x4ce   : > { %6415 = vmatmul.mubr.bf16.vlgmr.msra.gmra.mrb[0].mxu0 %v9942_v13  ;;  %v8963_v13 = vld [vmem:[%s13129_s3 + $0x30] sm:$0xff]  }
 0x4cf   : > { %7618 = vmatpush3.bf16.msra.mxu1 %v8963_v13 }
 0x4d0   : > { %7619 = vmatprep.subr.bf16.mxu1 %v8964_v8 }
 0x4d3   : > { %7620 = vmatpush3.bf16.msra.mxu1 %v8965_v39 }
 0x4d4   : > { %7636 = vmatprep.subr.bf16.mxu1 %v9277_v29 }
 0x521   : > { %v6244_v55 = vpop.f32.mrb[4].mxu1 }
 0x522   : > { %v6246_v60 = vpop.f32.mrb[5].mxu1  ;;  %v6439_v54 = vmul.f32 %v6244_v55, %v6244_v55 }
 0x523   : > { %v6443_v4 = vmul.f32 %v6246_v60, %v6246_v60  ;;  %v6248_v50 = vpop.f32.mrb[6].mxu1 }
 0x524   : > { %v6250_v7 = vpop.f32.mrb[7].mxu1  ;;  %v6442_v0 = vmul.f32 %v6248_v50, %v6248_v50 }
 0x525   : > { %v6449_v10 = vadd.f32 %v6443_v4, %v6437_v1  ;;  %v6446_v42 = vmul.f32 %v6250_v7, %v6250_v7 }
 0x527   : > { %v6452_v43 = vadd.f32 %v6446_v42, %v6440_v47 }
 0x529   : > { %v6455_v36 = vpack.c.bf16 %v6452_v43, %v6449_v10 }
 0x5a1   : > { %v6416_v27 = vpop.f32.mrb[0].mxu0 }
 0x5a2   : > { %v7660_v25 = vadd.f32 %v6416_v27, %v11955_v40  ;;  %v6418_v14 = vpop.f32.mrb[1].mxu0 }
 0x5a3   : > { %v7661_v21 = vadd.f32 %v6418_v14, %v11957_v41  ;;  %v6420_v19 = vpop.f32.mrb[2].mxu0 }
 0x5a4   : > { %v6444_v48 = vmul.f32 %v7660_v25, %v7660_v25  ;;  %v7662_v52 = vadd.f32 %v6420_v19, %v11963_v49  ;;  %v6422_v34 = vpop.f32.mrb[3].mxu0  ;;  %v8966_v49 = vld [vmem:[%s13129_s3 + $0x80] sm:$0xff]  }
 0x5a5   : > { %v6445_v51 = vmul.f32 %v7661_v21, %v7661_v21  ;;  %v7663_v30 = vadd.f32 %v6422_v34, %v11969_v57  ;;  %v8967_v57 = vld [vmem:[%s13129_s3 + $0x88] sm:$0xff]  }
 0x5a6   : > { %v6450_v11 = vadd.f32 %v6444_v48, %v6438_v16  ;;  %v6447_v40 = vmul.f32 %v7662_v52, %v7662_v52 }
 0x5a7   : > { %v6451_v3 = vadd.f32 %v6445_v51, %v6439_v54  ;;  %v6448_v41 = vmul.f32 %v7663_v30, %v7663_v30 }
 0x5a8   : > { %v6453_v5 = vadd.f32 %v6447_v40, %v6441_v58 }
 0x5a9   : > { %v6454_v59 = vadd.f32 %v6448_v41, %v6442_v0 }
 0x5aa   : > { %v6456_v9 = vpack.c.bf16 %v6453_v5, %v6450_v11 }
 0x5ab   : > { %v6457_v44 = vpack.c.bf16 %v6454_v59, %v6451_v3 }
 0x5ac   : > { %6682 = vmatprep.mubr.bf16.mxu1 %v6456_v9 }
 0x5ad   : > { %6683 = vmatmul.mubr.bf16.vlgmr.msra.gmra.mrb[12].mxu1 %v6455_v36 }
 0x5ae   : > { %7637 = vmatpush3.bf16.msra.mxu1 %v8966_v49  ;;  %7652 = vmatprep.mubr.msk.bf16.mxu1 %vm9278_vm0, %v9277_v29 }
 0x5af   : > { %7638 = vmatprep.subr.bf16.mxu1 %v9277_v29 }
 0x5b2   : > { %7639 = vmatpush3.bf16.msra.mxu1 %v8967_v57 }
 0x5b3   : > { %7640 = vmatprep.subr.bf16.mxu1 %v9277_v29 }
 0x5b6   : > { %7641 = vmatpush3.bf16.msra.mxu1 %v8968_v6 }
 0x5b7   : > { %7642 = vmatprep.subr.bf16.mxu1 %v9277_v29 }
 0x5ba   : > { %7643 = vmatpush3.bf16.msra.mxu1 %v8969_v12 }
 0x5bb   : > { %7644 = vmatprep.subr.bf16.mxu1 %v9277_v29 }
 0x5be   : > { %7645 = vmatpush3.bf16.msra.mxu1 %v8970_v2 }
 0x5bf   : > { %7646 = vmatprep.subr.bf16.mxu1 %v9277_v29 }
 0x5c2   : > { %7647 = vmatpush3.bf16.msra.mxu1 %v8971_v15 }
 0x5c3   : > { %7648 = vmatprep.subr.bf16.mxu1 %v9277_v29 }
 0x5c6   : > { %7649 = vmatpush3.bf16.msra.mxu1 %v8972_v17 }
 0x5c7   : > { %7650 = vmatprep.subr.bf16.mxu1 %v9277_v29 }
 0x5ca   : > { %7651 = vmatpush3.bf16.msra.mxu1 %v8973_v20 }
 0x5cd   : > { %7653 = vmatmul.mubr.bf16.vlgmr.msra.gmra.mrb[16].mxu1 %v6457_v44 }
 0x680   : > { %v7621_v23 = vpop.f32.mrb[12].mxu1 }
 0x681   : > { %v7622_v28 = vpop.f32.mrb[13].mxu1 }
 0x682   : > { %v7623_v26 = vadd.f32 %v7622_v28, %v7621_v23  ;;  %v7624_v61 = vpop.f32.mrb[14].mxu1 }
 0x683   : > { %v7625_v24 = vpop.f32.mrb[15].mxu1 }
 0x684   : > { %v7626_v22 = vadd.f32 %v7625_v24, %v7624_v61 }
 0x6a0   : > { %v6725_v31 = vpop.f32.mrb[16].mxu1 }
 0x6a1   : > { %v6726_v37 = vadd.f32 %v7623_v26, %v6725_v31  ;;  %v7654_v18 = vpop.f32.mrb[17].mxu1 }
 0x6a2   : > { %v6728_v62 = vpop.f32.mrb[18].mxu1 }
 0x6a3   : > { %v6732_v56 = vmax.f32 %v6726_v37, 1e-10  ;;  %v6729_v32 = vadd.f32 %v7626_v22, %v6728_v62  ;;  %v7655_v33 = vpop.f32.mrb[19].mxu1 }
 0x6a5   : > { %8974 = vlog2.f32 %v6732_v56  ;;  %v6733_v35 = vmax.f32 %v6729_v32, 1e-10 }
 0x6a7   : > { %8976 = vlog2.f32 %v6733_v35 }
 0x6af   : > { %v8975_v38 = vpop.eup %8974 }
 0x6b0   : > { %v6735_v45 = vmul.f32 0.6931472, %v8975_v38 }
 0x6b1   : > { %v8977_v46 = vpop.eup %8976 }
 0x6b2   : > { %v6738_v53 = vmul.f32 0.4342945, %v6735_v45  ;;  %v6737_v55 = vmul.f32 0.6931472, %v8977_v46 }
 0x6b4   : > { %v6740_v60 = vmul.f32 10.0, %v6738_v53  ;;  %v6739_v63 = vmul.f32 0.4342945, %v6737_v55 }
 0x6b6   : > { %6742 = vst [vmem:[%s202_s18] sm:$0xff] %v6740_v60  ;;  %v6741_v1 = vmul.f32 10.0, %v6739_v63 }
 0x6b8   : > { %6743 = vst [vmem:[%s202_s18 + $0x8] sm:$0xff] %v6741_v1 }
 0x6b9 PF: > { %s14_s15 = sadd.s32 1, %s9275_s15  }
 0x6ba   : > { %p11_p4 = scmp.ge.s32.totalorder %s14_s15, 4  }
 0x6bc   :  { %13 = sbr.rel (!%p11_p4) target bundleno = 1 (0x1), region = 66 }

</bundles_post_ra>
